<compile_context>
chip_gen: v5e
topology: v5e:2x2
jax: 0.10.0
libtpu: 0.0.40
codegen_flags: <defaults>
</compile_context>

<pallas_src>
import jax
import jax.numpy as jnp
from jax.experimental import pallas as pl
from jax.experimental.pallas import tpu as pltpu

K_PAD = 256    # padded contraction dim of layer 1 (orig 200)
N_PAD = 128    # padded output lane width (orig 2)
H1, H2, H3 = 1024, 512, 256


def _round_up(n, m):
    return ((n + m - 1) // m) * m


def _choose_tile(B, max_tile):
    """Batch tile: multiple of 16 (bf16 sublane packing), >=2 programs when the batch
    allows it (v7x has 2 TensorCores), and minimal padding waste on the last tile."""
    b = _round_up(B, 16)
    n_tiles = max(pl.cdiv(b, max_tile), 2 if b > 16 else 1)
    return _round_up(pl.cdiv(b, n_tiles), 16)


def mlp_kernel(x_ref, w1_ref, b1_ref, w2_ref, b2_ref,
               w3_ref, b3_ref, w4_ref, b4_ref, o_ref):
    # Fused 4-layer MLP on one batch tile. bf16 operands, f32 accumulation,
    # f32 bias+ReLU epilogue (portable across v5e/v6e/v7x).
    h = jnp.dot(x_ref[...], w1_ref[...], preferred_element_type=jnp.float32) + b1_ref[...]
    h = jnp.maximum(h, 0.0).astype(jnp.bfloat16)
    h = jnp.dot(h, w2_ref[...], preferred_element_type=jnp.float32) + b2_ref[...]
    h = jnp.maximum(h, 0.0).astype(jnp.bfloat16)
    h = jnp.dot(h, w3_ref[...], preferred_element_type=jnp.float32) + b3_ref[...]
    h = jnp.maximum(h, 0.0).astype(jnp.bfloat16)
    o_ref[...] = (jnp.dot(h, w4_ref[...], preferred_element_type=jnp.float32)
                  + b4_ref[...]).astype(o_ref.dtype)


def damping_frequency_nn(x, kparams, max_tile=1024):
    """x: (B, 200) float32. kparams: padded / bf16 kernel params (see prepare_kernel_params)."""
    B, K = x.shape
    TB = _choose_tile(B, max_tile)
    B_pad = _round_up(B, TB)

    # Zero-pad batch (tile multiple) + contraction dim (200 -> 256), cast to bf16 once
    # in the wrapper so the kernel streams half the x bytes and skips the VPU cast.
    x_pad = jnp.zeros((B_pad, K_PAD), jnp.bfloat16).at[:B, :K].set(
        x.astype(jnp.bfloat16))

    grid = (B_pad // TB,)

    # Activations stream; weights/biases stay resident (constant block index).
    in_specs = [
        pl.BlockSpec((TB, K_PAD), lambda i: (i, 0)),          # x tile (bf16)
        pl.BlockSpec((K_PAD, H1), lambda i: (0, 0)),          # w1
        pl.BlockSpec((1, H1),     lambda i: (0, 0)),          # b1
        pl.BlockSpec((H1, H2),    lambda i: (0, 0)),          # w2
        pl.BlockSpec((1, H2),     lambda i: (0, 0)),          # b2
        pl.BlockSpec((H2, H3),    lambda i: (0, 0)),          # w3
        pl.BlockSpec((1, H3),     lambda i: (0, 0)),          # b3
        pl.BlockSpec((H3, N_PAD), lambda i: (0, 0)),          # w4 (padded to 128 lanes)
        pl.BlockSpec((1, N_PAD),  lambda i: (0, 0)),          # b4 (padded to 128 lanes)
    ]
    out_specs = pl.BlockSpec((TB, N_PAD), lambda i: (i, 0))   # lane-dense f32 store

    weight_bytes = 2 * (K_PAD * H1 + H1 * H2 + H2 * H3 + H3 * N_PAD)   # bf16
    bias_bytes = 4 * (H1 + H2 + H3 + N_PAD)                            # f32
    cost = pl.CostEstimate(
        flops=2 * B_pad * (K_PAD * H1 + H1 * H2 + H2 * H3 + H3 * N_PAD),
        transcendentals=0,
        bytes_accessed=weight_bytes + bias_bytes
        + 2 * B_pad * K_PAD          # bf16 x stream
        + 4 * B_pad * N_PAD,         # f32 out stream
    )

    out_pad = pl.pallas_call(
        mlp_kernel,
        out_shape=jax.ShapeDtypeStruct((B_pad, N_PAD), jnp.float32),
        grid=grid,
        in_specs=in_specs,
        out_specs=out_specs,
        compiler_params=pltpu.CompilerParams(
            dimension_semantics=("parallel",),
            vmem_limit_bytes=32 * 1024 * 1024,   # under v7x's 64 MiB physical VMEM
        ),
        cost_estimate=cost,
    )(x_pad,
      kparams["w1"], kparams["b1"],
      kparams["w2"], kparams["b2"],
      kparams["w3"], kparams["b3"],
      kparams["w4"], kparams["b4"])

    return out_pad[:B, :2]


def init_params(key):
    """Deterministic PyTorch-style uniform init (bound = 1/sqrt(fan_in)); f32 masters,
    stored pre-transposed as (in, out) so y = x @ W + b == nn.Linear's x @ W.T + b."""
    dims = [(200, H1), (H1, H2), (H2, H3), (H3, 2)]
    params = {}
    for i, (fan_in, fan_out) in enumerate(dims, start=1):
        key, kw, kb = jax.random.split(key, 3)
        bound = 1.0 / (fan_in ** 0.5)
        params[f"w{i}"] = jax.random.uniform(
            kw, (fan_in, fan_out), jnp.float32, -bound, bound)
        params[f"b{i}"] = jax.random.uniform(
            kb, (1, fan_out), jnp.float32, -bound, bound)
    return params


def prepare_kernel_params(params):
    """Pad w1 rows 200->256, pad w4/b4 lanes 2->128, cast weights to bf16 (biases f32)."""
    w1 = jnp.zeros((K_PAD, H1), jnp.float32).at[:200, :].set(params["w1"])
    w4 = jnp.zeros((H3, N_PAD), jnp.float32).at[:, :2].set(params["w4"])
    b4 = jnp.zeros((1, N_PAD), jnp.float32).at[:, :2].set(params["b4"])
    return {
        "w1": w1.astype(jnp.bfloat16),            "b1": params["b1"],
        "w2": params["w2"].astype(jnp.bfloat16),  "b2": params["b2"],
        "w3": params["w3"].astype(jnp.bfloat16),  "b3": params["b3"],
        "w4": w4.astype(jnp.bfloat16),            "b4": b4,
    }


def reference_forward(x, kparams):
    """Pure-JAX reference using the same bf16-weight / f32-accumulation regime."""
    B, K = x.shape
    xb = jnp.zeros((B, K_PAD), jnp.bfloat16).at[:, :K].set(x.astype(jnp.bfloat16))
    h = jnp.dot(xb, kparams["w1"], preferred_element_type=jnp.float32) + kparams["b1"]
    h = jnp.maximum(h, 0.0).astype(jnp.bfloat16)
    h = jnp.dot(h, kparams["w2"], preferred_element_type=jnp.float32) + kparams["b2"]
    h = jnp.maximum(h, 0.0).astype(jnp.bfloat16)
    h = jnp.dot(h, kparams["w3"], preferred_element_type=jnp.float32) + kparams["b3"]
    h = jnp.maximum(h, 0.0).astype(jnp.bfloat16)
    out = jnp.dot(h, kparams["w4"], preferred_element_type=jnp.float32) + kparams["b4"]
    return out[:, :2]


if __name__ == "__main__":
    key = jax.random.PRNGKey(0)
    key, kx = jax.random.split(key)
    batch = 8
    x = jax.random.normal(kx, (batch, 200), jnp.float32)

    params = init_params(key)
    kparams = prepare_kernel_params(params)

    out = damping_frequency_nn(x, kparams)
    out = jax.block_until_ready(out)

    ref = reference_forward(x, kparams)
    assert out.shape == (batch, 2), out.shape
    assert jnp.allclose(out, ref, atol=1e-2, rtol=1e-2), "mismatch vs reference"
    print("KERNEL_OK")
</pallas_src>

<mosaic_0001>
module attributes {stable_mosaic.version = 11 : i64} {
  func.func @mlp_kernel(%arg0: i32, %arg1: memref<16x256xbf16, #tpu.memory_space<vmem>>, %arg2: memref<256x1024xbf16, #tpu.memory_space<vmem>>, %arg3: memref<1x1024xf32, #tpu.memory_space<vmem>>, %arg4: memref<1024x512xbf16, #tpu.memory_space<vmem>>, %arg5: memref<1x512xf32, #tpu.memory_space<vmem>>, %arg6: memref<512x256xbf16, #tpu.memory_space<vmem>>, %arg7: memref<1x256xf32, #tpu.memory_space<vmem>>, %arg8: memref<256x128xbf16, #tpu.memory_space<vmem>>, %arg9: memref<1x128xf32, #tpu.memory_space<vmem>>, %arg10: memref<16x128xf32, #tpu.memory_space<vmem>>) attributes {dimension_semantics = [#tpu.dimension_semantics<parallel>], iteration_bounds = array<i64: 1>, scalar_prefetch = 0 : i64, scratch_operands = 0 : i64, tpu.core_type = #tpu.core_type<tc>, window_params = [{transform_indices = @transform_0, window_bounds = array<i64: 16, 256>}, {pipeline_mode = #tpu.pipeline_mode<synchronous>, transform_indices = @transform_1, window_bounds = array<i64: 256, 1024>}, {pipeline_mode = #tpu.pipeline_mode<synchronous>, transform_indices = @transform_2, window_bounds = array<i64: 1, 1024>}, {pipeline_mode = #tpu.pipeline_mode<synchronous>, transform_indices = @transform_3, window_bounds = array<i64: 1024, 512>}, {pipeline_mode = #tpu.pipeline_mode<synchronous>, transform_indices = @transform_4, window_bounds = array<i64: 1, 512>}, {pipeline_mode = #tpu.pipeline_mode<synchronous>, transform_indices = @transform_5, window_bounds = array<i64: 512, 256>}, {pipeline_mode = #tpu.pipeline_mode<synchronous>, transform_indices = @transform_6, window_bounds = array<i64: 1, 256>}, {pipeline_mode = #tpu.pipeline_mode<synchronous>, transform_indices = @transform_7, window_bounds = array<i64: 256, 128>}, {pipeline_mode = #tpu.pipeline_mode<synchronous>, transform_indices = @transform_8, window_bounds = array<i64: 1, 128>}, {transform_indices = @transform_9, window_bounds = array<i64: 16, 128>}]} {
    %c0 = arith.constant 0 : index
    %c0_0 = arith.constant 0 : index
    %0 = vector.load %arg1[%c0, %c0_0] : memref<16x256xbf16, #tpu.memory_space<vmem>>, vector<16x256xbf16>
    %c0_1 = arith.constant 0 : index
    %c0_2 = arith.constant 0 : index
    %1 = vector.load %arg2[%c0_1, %c0_2] : memref<256x1024xbf16, #tpu.memory_space<vmem>>, vector<256x1024xbf16>
    %cst = arith.constant dense<0.000000e+00> : vector<16x1024xf32>
    %2 = tpu.matmul %0, %1, %cst {dimension_numbers = #tpu.dot_dimension_numbers<[1], [0], [0], [1], [0, 0, 1, 1], [], []>} : vector<16x256xbf16>, vector<256x1024xbf16>, vector<16x1024xf32> -> vector<16x1024xf32>
    %c0_3 = arith.constant 0 : index
    %c0_4 = arith.constant 0 : index
    %3 = vector.load %arg3[%c0_3, %c0_4] : memref<1x1024xf32, #tpu.memory_space<vmem>>, vector<1x1024xf32>
    %4 = vector.broadcast %3 : vector<1x1024xf32> to vector<16x1024xf32>
    %5 = arith.addf %2, %4 : vector<16x1024xf32>
    %cst_5 = arith.constant 0.000000e+00 : f32
    %6 = vector.broadcast %cst_5 : f32 to vector<16x1024xf32>
    %7 = arith.maximumf %5, %6 : vector<16x1024xf32>
    %8 = arith.truncf %7 : vector<16x1024xf32> to vector<16x1024xbf16>
    %c0_6 = arith.constant 0 : index
    %c0_7 = arith.constant 0 : index
    %9 = vector.load %arg4[%c0_6, %c0_7] : memref<1024x512xbf16, #tpu.memory_space<vmem>>, vector<1024x512xbf16>
    %cst_8 = arith.constant dense<0.000000e+00> : vector<16x512xf32>
    %10 = tpu.matmul %8, %9, %cst_8 {dimension_numbers = #tpu.dot_dimension_numbers<[1], [0], [0], [1], [0, 0, 1, 1], [], []>} : vector<16x1024xbf16>, vector<1024x512xbf16>, vector<16x512xf32> -> vector<16x512xf32>
    %c0_9 = arith.constant 0 : index
    %c0_10 = arith.constant 0 : index
    %11 = vector.load %arg5[%c0_9, %c0_10] : memref<1x512xf32, #tpu.memory_space<vmem>>, vector<1x512xf32>
    %12 = vector.broadcast %11 : vector<1x512xf32> to vector<16x512xf32>
    %13 = arith.addf %10, %12 : vector<16x512xf32>
    %cst_11 = arith.constant 0.000000e+00 : f32
    %14 = vector.broadcast %cst_11 : f32 to vector<16x512xf32>
    %15 = arith.maximumf %13, %14 : vector<16x512xf32>
    %16 = arith.truncf %15 : vector<16x512xf32> to vector<16x512xbf16>
    %c0_12 = arith.constant 0 : index
    %c0_13 = arith.constant 0 : index
    %17 = vector.load %arg6[%c0_12, %c0_13] : memref<512x256xbf16, #tpu.memory_space<vmem>>, vector<512x256xbf16>
    %cst_14 = arith.constant dense<0.000000e+00> : vector<16x256xf32>
    %18 = tpu.matmul %16, %17, %cst_14 {dimension_numbers = #tpu.dot_dimension_numbers<[1], [0], [0], [1], [0, 0, 1, 1], [], []>} : vector<16x512xbf16>, vector<512x256xbf16>, vector<16x256xf32> -> vector<16x256xf32>
    %c0_15 = arith.constant 0 : index
    %c0_16 = arith.constant 0 : index
    %19 = vector.load %arg7[%c0_15, %c0_16] : memref<1x256xf32, #tpu.memory_space<vmem>>, vector<1x256xf32>
    %20 = vector.broadcast %19 : vector<1x256xf32> to vector<16x256xf32>
    %21 = arith.addf %18, %20 : vector<16x256xf32>
    %cst_17 = arith.constant 0.000000e+00 : f32
    %22 = vector.broadcast %cst_17 : f32 to vector<16x256xf32>
    %23 = arith.maximumf %21, %22 : vector<16x256xf32>
    %24 = arith.truncf %23 : vector<16x256xf32> to vector<16x256xbf16>
    %c0_18 = arith.constant 0 : index
    %c0_19 = arith.constant 0 : index
    %25 = vector.load %arg8[%c0_18, %c0_19] : memref<256x128xbf16, #tpu.memory_space<vmem>>, vector<256x128xbf16>
    %cst_20 = arith.constant dense<0.000000e+00> : vector<16x128xf32>
    %26 = tpu.matmul %24, %25, %cst_20 {dimension_numbers = #tpu.dot_dimension_numbers<[1], [0], [0], [1], [0, 0, 1, 1], [], []>} : vector<16x256xbf16>, vector<256x128xbf16>, vector<16x128xf32> -> vector<16x128xf32>
    %c0_21 = arith.constant 0 : index
    %c0_22 = arith.constant 0 : index
    %27 = vector.load %arg9[%c0_21, %c0_22] : memref<1x128xf32, #tpu.memory_space<vmem>>, vector<1x128xf32>
    %28 = vector.broadcast %27 : vector<1x128xf32> to vector<16x128xf32>
    %29 = arith.addf %26, %28 : vector<16x128xf32>
    %c0_23 = arith.constant 0 : index
    %c0_24 = arith.constant 0 : index
    %30 = vector.load %arg10[%c0_23, %c0_24] : memref<16x128xf32, #tpu.memory_space<vmem>>, vector<16x128xf32>
    tpu.vector_store %arg10[%c0_23, %c0_24], %29 {strides = array<i32>} : memref<16x128xf32, #tpu.memory_space<vmem>>, vector<16x128xf32>,
    return
  }
  func.func @transform_0(%arg0: i32) -> (i32, i32) {
    %c0_i32 = arith.constant 0 : i32
    %c0_i32_0 = arith.constant 0 : i32
    return %arg0, %c0_i32 : i32, i32
  }
  func.func @transform_1(%arg0: i32) -> (i32, i32) {
    %c0_i32 = arith.constant 0 : i32
    %c0_i32_0 = arith.constant 0 : i32
    %c0_i32_1 = arith.constant 0 : i32
    return %c0_i32, %c0_i32_0 : i32, i32
  }
  func.func @transform_2(%arg0: i32) -> (i32, i32) {
    %c0_i32 = arith.constant 0 : i32
    %c0_i32_0 = arith.constant 0 : i32
    %c0_i32_1 = arith.constant 0 : i32
    return %c0_i32, %c0_i32_0 : i32, i32
  }
  func.func @transform_3(%arg0: i32) -> (i32, i32) {
    %c0_i32 = arith.constant 0 : i32
    %c0_i32_0 = arith.constant 0 : i32
    %c0_i32_1 = arith.constant 0 : i32
    return %c0_i32, %c0_i32_0 : i32, i32
  }
  func.func @transform_4(%arg0: i32) -> (i32, i32) {
    %c0_i32 = arith.constant 0 : i32
    %c0_i32_0 = arith.constant 0 : i32
    %c0_i32_1 = arith.constant 0 : i32
    return %c0_i32, %c0_i32_0 : i32, i32
  }
  func.func @transform_5(%arg0: i32) -> (i32, i32) {
    %c0_i32 = arith.constant 0 : i32
    %c0_i32_0 = arith.constant 0 : i32
    %c0_i32_1 = arith.constant 0 : i32
    return %c0_i32, %c0_i32_0 : i32, i32
  }
  func.func @transform_6(%arg0: i32) -> (i32, i32) {
    %c0_i32 = arith.constant 0 : i32
    %c0_i32_0 = arith.constant 0 : i32
    %c0_i32_1 = arith.constant 0 : i32
    return %c0_i32, %c0_i32_0 : i32, i32
  }
  func.func @transform_7(%arg0: i32) -> (i32, i32) {
    %c0_i32 = arith.constant 0 : i32
    %c0_i32_0 = arith.constant 0 : i32
    %c0_i32_1 = arith.constant 0 : i32
    return %c0_i32, %c0_i32_0 : i32, i32
  }
  func.func @transform_8(%arg0: i32) -> (i32, i32) {
    %c0_i32 = arith.constant 0 : i32
    %c0_i32_0 = arith.constant 0 : i32
    %c0_i32_1 = arith.constant 0 : i32
    return %c0_i32, %c0_i32_0 : i32, i32
  }
  func.func @transform_9(%arg0: i32) -> (i32, i32) {
    %c0_i32 = arith.constant 0 : i32
    %c0_i32_0 = arith.constant 0 : i32
    return %arg0, %c0_i32 : i32, i32
  }
}

</mosaic_0001>

<bundles_post_ra>
// kernel: tpu_custom_call.1
= control target key start
LH: loop header
LB: loop body
LE: loop exit
PB: predicated region body
PF: predicated region fallthrough
CT: control target
= control target key end

     0   :  { %14 = vsyncpa [#allocation3], 0  ;;  %s6657_s0 = inlined_call_operand.hbm [shape: bf16[16,256], index: 0, kind: input, shape index: {}]   ;;  %s6658_s1 = inlined_call_operand.hbm [shape: bf16[256,1024], index: 1, kind: input, shape index: {}]   ;;  %s6659_s2 = inlined_call_operand.hbm [shape: f32[1,1024], index: 2, kind: input, shape index: {}]   ;;  %s6660_s3 = inlined_call_operand.hbm [shape: bf16[1024,512], index: 3, kind: input, shape index: {}]   ;;  %s6661_s4 = inlined_call_operand.hbm [shape: f32[1,512], index: 4, kind: input, shape index: {}]   ;;  %s6662_s5 = inlined_call_operand.hbm [shape: bf16[512,256], index: 5, kind: input, shape index: {}]   ;;  %s6663_s6 = inlined_call_operand.vmem [shape: f32[1,256], index: 6, kind: input, shape index: {}]   ;;  %s6664_s7 = inlined_call_operand.hbm [shape: bf16[256,128], index: 7, kind: input, shape index: {}]   ;;  %s6665_s8 = inlined_call_operand.vmem [shape: f32[1,128], index: 8, kind: input, shape index: {}]   ;;  %s6666_s9 = inlined_call_operand.hbm [shape: f32[16,128], index: 9, kind: output, shape index: {}]  }
   0x1   :  { %15 = vsyncpa [#allocation6], 0 }
   0x2   :  { %16 = vsyncpa [#allocation9], 0 }
   0x3   :  { %17 = vsyncpa [#allocation12], 0  ;;  %s36_s11 = sshll.u32 %s6658_s1, 4  ;;  %s37_s11 = int_to_ptr.hbm [resolvable:$true] %s36_s11 }
   0x4   :  { %18 = vsyncpa [#allocation4], 0  ;;  %s6431_s12 = smov [#allocation5]   ;;  %s60_s16 = sshll.u32 %s6660_s3, 4  ;;  %s61_s16 = int_to_ptr.hbm [resolvable:$true] %s60_s16 }
   0x5   :  { %s38_s13 = sshll.u32 %s6431_s12, 4  ;;  %s6432_s17 = smov 512   ;;  %s39_s13 = int_to_ptr.vmem [resolvable:$true] %s38_s13 }
   0x6   :  { %s6433_s18 = smov 32   ;;  %s6434_s19 = smov [#allocation8]  }
   0x7   :  { %44 = dma.hbm_to_vmem [thread:$0]  %s37_s11, 16384, %s39_s13, [#allocation6], %s6432_s17, %s6432_s17, %s6433_s18  }
   0x8   :  { %s62_s20 = sshll.u32 %s6434_s19, 4  ;;  %s6435_s21 = smov 256   ;;  %s63_s20 = int_to_ptr.vmem [resolvable:$true] %s62_s20 }
   0x9   :  { %s6436_s22 = smov 16   ;;  %s84_s24 = sshll.u32 %s6662_s5, 4  ;;  %s85_s24 = int_to_ptr.hbm [resolvable:$true] %s84_s24 }
   0xa   :  { %68 = dma.hbm_to_vmem [thread:$0]  %s61_s16, 32768, %s63_s20, [#allocation9], %s6435_s21, %s6435_s21, %s6436_s22  }
   0xb   :  { %s6437_s25 = smov [#allocation11]   ;;  %s23_s28 = sshll.u32 %s6657_s0, 4  ;;  %s24_s28 = int_to_ptr.hbm [resolvable:$true] %s23_s28 }
   0xc   :  { %s86_s26 = sshll.u32 %s6437_s25, 4  ;;  %s6438_s29 = smov 128   ;;  %s87_s26 = int_to_ptr.vmem [resolvable:$true] %s86_s26 }
   0xd   :  { %s6439_s30 = smov 8   ;;  %s6440_s10 = smov [#allocation2]  }
   0xe   :  { %92 = dma.hbm_to_vmem [thread:$0]  %s85_s24, 8192, %s87_s26, [#allocation12], %s6438_s29, %s6438_s29, %s6439_s30  }
   0xf   :  { %s25_s11 = sshll.u32 %s6440_s10, 4  ;;  %s50_s5 = sshll.u32 %s6659_s2, 4  ;;  %s26_s11 = int_to_ptr.vmem [resolvable:$true] %s25_s11  ;;  %s51_s5 = int_to_ptr.hbm [resolvable:$true] %s50_s5 }
  0x10   :  { %31 = dma.hbm_to_vmem [thread:$0]  %s24_s28, 256, %s26_s11, [#allocation3], %s6438_s29, %s6438_s29, %s6439_s30  }
  0x11   :  { %s74_s15 = sshll.u32 %s6661_s4, 4  ;;  %s6441_s16 = smov [#allocation7]   ;;  %s75_s15 = int_to_ptr.hbm [resolvable:$true] %s74_s15 }
  0x12   :  { %s52_s17 = sshll.u32 %s6441_s16, 4  ;;  %s6442_s18 = smov [#allocation10]   ;;  %s53_s17 = int_to_ptr.vmem [resolvable:$true] %s52_s17 }
  0x13   :  { %55 = dma.hbm_to_vmem [thread:$0]  %s51_s5, 128, %s53_s17, [#allocation6]  }
  0x14   :  { %s76_s19 = sshll.u32 %s6442_s18, 4  ;;  %s99_s2 = sshll.u32 %s6664_s7, 4  ;;  %s77_s19 = int_to_ptr.vmem [resolvable:$true] %s76_s19  ;;  %s100_s2 = int_to_ptr.hbm [resolvable:$true] %s99_s2 }
  0x15   :  { %79 = dma.hbm_to_vmem [thread:$0]  %s75_s15, 64, %s77_s19, [#allocation9]  }
  0x16   :  { %s6443_s22 = smov [#allocation13]   ;;  %s6444_s23 = smov 64  }
  0x17   :  { %s101_s1 = sshll.u32 %s6443_s22, 4  ;;  %s6445_s24 = smov 4   ;;  %s102_s1 = int_to_ptr.vmem [resolvable:$true] %s101_s1 }
  0x18   :  { %107 = dma.hbm_to_vmem [thread:$0]  %s100_s2, 2048, %s102_s1, [#allocation12], %s6444_s23, %s6444_s23, %s6445_s24  }
  0x19   :  { %6421 = dma.done.wait [#allocation3], 256  }
  0x1a   :  { %6422 = vsyncadd [#allocation3], 4294967040 }
  0x1b   :  { %6423 = dma.done.wait [#allocation6], 16512  }
  0x1c   :  { %6424 = vsyncadd [#allocation6], 4294950784 }
  0x1d   :  { %6425 = dma.done.wait [#allocation9], 32832  }
  0x1e   :  { %6426 = vsyncadd [#allocation9], 4294934464 }
  0x1f   :  { %6427 = dma.done.wait [#allocation12], 10240  }
  0x20   :  { %6428 = vsyncadd [#allocation12], 4294957056  ;;  %v4116_v0 = vld [vmem:[#allocation5 + $0x1c0] sm:$0xf]  ;;  %v5804_v5 = vld [vmem:[#allocation5 + $0x1c4] sm:$0xf] }
  0x21   :  { %v5808_v1 = vld [vmem:[#allocation5 + $0x1dc] sm:$0xf0]  ;;  %v4118_v6 = vld [vmem:[#allocation5 + $0x1e0] sm:$0xf0]  ;;  %s6446_s26 = smov [#allocation14]   ;;  %s3866_s10 = sshll.u32 %s6666_s9, 4  ;;  %s3867_s10 = int_to_ptr.hbm [resolvable:$true] %s3866_s10 }
  0x22   :  { %v4372_v2 = vld [vmem:[#allocation5 + $0x3c0] sm:$0xf]  ;;  %v4117_v3 = vor.u32 %v5808_v1, %v4116_v0  ;;  %v4121_v8 = vor.u32 %v5804_v5, %v4118_v6  ;;  %v5868_v9 = vld [vmem:[#allocation5 + $0x3c4] sm:$0xf]  ;;  %s3864_s27 = sshll.u32 %s6446_s26, 4  ;;  %s3865_s27 = int_to_ptr.vmem [resolvable:$true] %s3864_s27 }
  0x23   :  { %v5872_v4 = vld [vmem:[#allocation5 + $0x3dc] sm:$0xf0]  ;;  %v4374_v10 = vld [vmem:[#allocation5 + $0x3e0] sm:$0xf0] }
  0x24   :  { %v4373_v7 = vor.u32 %v5872_v4, %v4372_v2  ;;  %v4084_v11 = vld [vmem:[#allocation5 + $0x180] sm:$0xf]  ;;  %936 = vmatpush.bf16.msra.mxu0 %v4117_v3  ;;  %v4377_v12 = vor.u32 %v5868_v9, %v4374_v10  ;;  %964 = vmatpush.bf16.msra.mxu2 %v4121_v8  ;;  %v5796_v18 = vld [vmem:[#allocation5 + $0x184] sm:$0xf] }
  0x25   :  { %v5800_v13 = vld [vmem:[#allocation5 + $0x19c] sm:$0xf0]  ;;  %v4086_v19 = vld [vmem:[#allocation5 + $0x1a0] sm:$0xf0] }
  0x26   :  { %v4340_v14 = vld [vmem:[#allocation5 + $0x380] sm:$0xf]  ;;  %950 = vmatpush.bf16.msra.mxu1 %v4373_v7  ;;  %v4085_v16 = vor.u32 %v5800_v13, %v4084_v11  ;;  %v5860_v20 = vld [vmem:[#allocation5 + $0x384] sm:$0xf]  ;;  %978 = vmatpush.bf16.msra.mxu3 %v4377_v12  ;;  %v4089_v21 = vor.u32 %v5796_v18, %v4086_v19 }
  0x27   :  { %v5864_v15 = vld [vmem:[#allocation5 + $0x39c] sm:$0xf0]  ;;  %v4342_v22 = vld [vmem:[#allocation5 + $0x3a0] sm:$0xf0] }
  0x28   :  { %v4341_v17 = vor.u32 %v5864_v15, %v4340_v14  ;;  %v4052_v23 = vld [vmem:[#allocation5 + $0x140] sm:$0xf]  ;;  %v4345_v25 = vor.u32 %v5860_v20, %v4342_v22  ;;  %v5788_v28 = vld [vmem:[#allocation5 + $0x144] sm:$0xf]  ;;  %937 = vmatpush.bf16.msra.mxu0 %v4085_v16  ;;  %965 = vmatpush.bf16.msra.mxu2 %v4089_v21 }
  0x29   :  { %v5792_v24 = vld [vmem:[#allocation5 + $0x15c] sm:$0xf0]  ;;  %v4054_v30 = vld [vmem:[#allocation5 + $0x160] sm:$0xf0] }
  0x2a   :  { %v4308_v26 = vld [vmem:[#allocation5 + $0x340] sm:$0xf]  ;;  %v4053_v29 = vor.u32 %v5792_v24, %v4052_v23  ;;  %v5852_v31 = vld [vmem:[#allocation5 + $0x344] sm:$0xf]  ;;  %951 = vmatpush.bf16.msra.mxu1 %v4341_v17  ;;  %v4057_v34 = vor.u32 %v5788_v28, %v4054_v30  ;;  %979 = vmatpush.bf16.msra.mxu3 %v4345_v25  ;;  %v4124_v28 = vld [vmem:[#allocation5 + $0x1c8] sm:$0xf] }
  0x2b   :  { %v5856_v27 = vld [vmem:[#allocation5 + $0x35c] sm:$0xf0]  ;;  %v4310_v32 = vld [vmem:[#allocation5 + $0x360] sm:$0xf0]  ;;  %v4380_v30 = vld [vmem:[#allocation5 + $0x3c8] sm:$0xf] }
  0x2c   :  { %v4309_v33 = vor.u32 %v5856_v27, %v4308_v26  ;;  %v4020_v35 = vld [vmem:[#allocation5 + $0x100] sm:$0xf]  ;;  %v4313_v38 = vor.u32 %v5852_v31, %v4310_v32  ;;  %v5780_v40 = vld [vmem:[#allocation5 + $0x104] sm:$0xf]  ;;  %938 = vmatpush.bf16.msra.mxu0 %v4053_v29  ;;  %966 = vmatpush.bf16.msra.mxu2 %v4057_v34  ;;  %v5809_v29 = vld [vmem:[#allocation5 + $0x1e4] sm:$0xf0] }
  0x2d   :  { %v5784_v36 = vld [vmem:[#allocation5 + $0x11c] sm:$0xf0]  ;;  %v4022_v41 = vld [vmem:[#allocation5 + $0x120] sm:$0xf0]  ;;  %v5873_v32 = vld [vmem:[#allocation5 + $0x3e4] sm:$0xf0] }
  0x2e   :  { %v4276_v37 = vld [vmem:[#allocation5 + $0x300] sm:$0xf]  ;;  %v5844_v42 = vld [vmem:[#allocation5 + $0x304] sm:$0xf]  ;;  %v4021_v44 = vor.u32 %v5784_v36, %v4020_v35  ;;  %952 = vmatpush.bf16.msra.mxu1 %v4309_v33  ;;  %v4025_v46 = vor.u32 %v5780_v40, %v4022_v41  ;;  %980 = vmatpush.bf16.msra.mxu3 %v4313_v38  ;;  %v5805_v33 = vld [vmem:[#allocation5 + $0x1cc] sm:$0xf]  ;;  %v4125_v40 = vor.u32 %v5809_v29, %v4124_v28 }
  0x2f   :  { %v5848_v39 = vld [vmem:[#allocation5 + $0x31c] sm:$0xf0]  ;;  %v4278_v43 = vld [vmem:[#allocation5 + $0x320] sm:$0xf0]  ;;  %v4126_v34 = vld [vmem:[#allocation5 + $0x1e8] sm:$0xf0] }
  0x30   :  { %v4277_v45 = vor.u32 %v5848_v39, %v4276_v37  ;;  %v3988_v47 = vld [vmem:[#allocation5 + $0xc0] sm:$0xf]  ;;  %v4281_v50 = vor.u32 %v5844_v42, %v4278_v43  ;;  %v5772_v52 = vld [vmem:[#allocation5 + $0xc4] sm:$0xf]  ;;  %939 = vmatpush.bf16.msra.mxu0 %v4021_v44  ;;  %967 = vmatpush.bf16.msra.mxu2 %v4025_v46  ;;  %v5869_v37 = vld [vmem:[#allocation5 + $0x3cc] sm:$0xf]  ;;  %v4381_v43 = vor.u32 %v5873_v32, %v4380_v30 }
  0x31   :  { %v5776_v48 = vld [vmem:[#allocation5 + $0xdc] sm:$0xf0]  ;;  %v3990_v53 = vld [vmem:[#allocation5 + $0xe0] sm:$0xf0]  ;;  %v4382_v38 = vld [vmem:[#allocation5 + $0x3e8] sm:$0xf0]  ;;  %v4129_v44 = vor.u32 %v5805_v33, %v4126_v34 }
  0x32   :  { %v4244_v49 = vld [vmem:[#allocation5 + $0x2c0] sm:$0xf]  ;;  %v5836_v54 = vld [vmem:[#allocation5 + $0x2c4] sm:$0xf]  ;;  %v3989_v56 = vor.u32 %v5776_v48, %v3988_v47  ;;  %953 = vmatpush.bf16.msra.mxu1 %v4277_v45  ;;  %v3993_v58 = vor.u32 %v5772_v52, %v3990_v53  ;;  %981 = vmatpush.bf16.msra.mxu3 %v4281_v50  ;;  %v4092_v41 = vld [vmem:[#allocation5 + $0x188] sm:$0xf]  ;;  %v4385_v48 = vor.u32 %v5869_v37, %v4382_v38 }
  0x33   :  { %v5840_v51 = vld [vmem:[#allocation5 + $0x2dc] sm:$0xf0]  ;;  %v4246_v55 = vld [vmem:[#allocation5 + $0x2e0] sm:$0xf0]  ;;  %v5801_v42 = vld [vmem:[#allocation5 + $0x1a4] sm:$0xf0] }
  0x34   :  { %v4245_v57 = vor.u32 %v5840_v51, %v4244_v49  ;;  %v3956_v59 = vld [vmem:[#allocation5 + $0x80] sm:$0xf]  ;;  %v4249_v62 = vor.u32 %v5836_v54, %v4246_v55  ;;  %v5764_v0 = vld [vmem:[#allocation5 + $0x84] sm:$0xf]  ;;  %940 = vmatpush.bf16.msra.mxu0 %v3989_v56  ;;  %968 = vmatpush.bf16.msra.mxu2 %v3993_v58  ;;  %v4348_v45 = vld [vmem:[#allocation5 + $0x388] sm:$0xf]  ;;  %v4093_v55 = vor.u32 %v5801_v42, %v4092_v41 }
  0x35   :  { %v5768_v60 = vld [vmem:[#allocation5 + $0x9c] sm:$0xf0]  ;;  %v3958_v1 = vld [vmem:[#allocation5 + $0xa0] sm:$0xf0]  ;;  %v5865_v46 = vld [vmem:[#allocation5 + $0x3a4] sm:$0xf0] }
  0x36   :  { %v4212_v61 = vld [vmem:[#allocation5 + $0x280] sm:$0xf]  ;;  %v5828_v2 = vld [vmem:[#allocation5 + $0x284] sm:$0xf]  ;;  %v3957_v4 = vor.u32 %v5768_v60, %v3956_v59  ;;  %954 = vmatpush.bf16.msra.mxu1 %v4245_v57  ;;  %v3961_v6 = vor.u32 %v5764_v0, %v3958_v1  ;;  %982 = vmatpush.bf16.msra.mxu3 %v4249_v62  ;;  %v5797_v47 = vld [vmem:[#allocation5 + $0x18c] sm:$0xf]  ;;  %v4349_v58 = vor.u32 %v5865_v46, %v4348_v45 }
  0x37   :  { %v5832_v63 = vld [vmem:[#allocation5 + $0x29c] sm:$0xf0]  ;;  %v4214_v3 = vld [vmem:[#allocation5 + $0x2a0] sm:$0xf0]  ;;  %v4094_v49 = vld [vmem:[#allocation5 + $0x1a8] sm:$0xf0] }
  0x38   :  { %v4213_v5 = vor.u32 %v5832_v63, %v4212_v61  ;;  %v3924_v7 = vld [vmem:[#allocation5 + $0x40] sm:$0xf]  ;;  %v4217_v10 = vor.u32 %v5828_v2, %v4214_v3  ;;  %v5756_v12 = vld [vmem:[#allocation5 + $0x44] sm:$0xf]  ;;  %941 = vmatpush.bf16.msra.mxu0 %v3957_v4  ;;  %969 = vmatpush.bf16.msra.mxu2 %v3961_v6  ;;  %v5861_v50 = vld [vmem:[#allocation5 + $0x38c] sm:$0xf]  ;;  %v4097_v59 = vor.u32 %v5797_v47, %v4094_v49 }
  0x39   :  { %v5760_v8 = vld [vmem:[#allocation5 + $0x5c] sm:$0xf0]  ;;  %v3926_v13 = vld [vmem:[#allocation5 + $0x60] sm:$0xf0]  ;;  %v4350_v51 = vld [vmem:[#allocation5 + $0x3a8] sm:$0xf0] }
  0x3a   :  { %v4180_v9 = vld [vmem:[#allocation5 + $0x240] sm:$0xf]  ;;  %v5820_v14 = vld [vmem:[#allocation5 + $0x244] sm:$0xf]  ;;  %v3925_v16 = vor.u32 %v5760_v8, %v3924_v7  ;;  %955 = vmatpush.bf16.msra.mxu1 %v4213_v5  ;;  %v3929_v20 = vor.u32 %v5756_v12, %v3926_v13  ;;  %983 = vmatpush.bf16.msra.mxu3 %v4217_v10  ;;  %v3884_v52 = vld [vmem:[#allocation2] sm:$0xf]  ;;  %v4353_v0 = vor.u32 %v5861_v50, %v4350_v51 }
  0x3b   :  { %v5824_v11 = vld [vmem:[#allocation5 + $0x25c] sm:$0xf0]  ;;  %v4182_v15 = vld [vmem:[#allocation5 + $0x260] sm:$0xf0]  ;;  %v5747_v53 = vld [vmem:[#allocation2 + $0x4] sm:$0xf0] }
  0x3c   :  { %v3892_v17 = vld [vmem:[#allocation5] sm:$0xf]  ;;  %v4181_v19 = vor.u32 %v5824_v11, %v4180_v9  ;;  %v5748_v23 = vld [vmem:[#allocation5 + $0x4] sm:$0xf]  ;;  %v4185_v24 = vor.u32 %v5820_v14, %v4182_v15  ;;  %942 = vmatpush.bf16.msra.mxu0 %v3925_v16  ;;  %970 = vmatpush.bf16.msra.mxu2 %v3929_v20  ;;  %v5746_v54 = vld [vmem:[#allocation2 + $0x4] sm:$0xf]  ;;  %v6524_v56 = vor.u32 %v5747_v53, %v3884_v52 }
  0x3d   :  { %v5752_v18 = vld [vmem:[#allocation5 + $0x1c] sm:$0xf0]  ;;  %v3894_v25 = vld [vmem:[#allocation5 + $0x20] sm:$0xf0]  ;;  %v3886_v57 = vld [vmem:[#allocation2 + $0x8] sm:$0xf0] }
  0x3e   :  { %v4148_v21 = vld [vmem:[#allocation5 + $0x200] sm:$0xf]  ;;  %v5812_v26 = vld [vmem:[#allocation5 + $0x204] sm:$0xf]  ;;  %v3893_v31 = vor.u32 %v5752_v18, %v3892_v17  ;;  %956 = vmatpush.bf16.msra.mxu1 %v4181_v19  ;;  %v3897_v36 = vor.u32 %v5748_v23, %v3894_v25  ;;  %984 = vmatpush.bf16.msra.mxu3 %v4185_v24  ;;  %v4060_v60 = vld [vmem:[#allocation5 + $0x148] sm:$0xf]  ;;  %v6526_v63 = vor.u32 %v5746_v54, %v3886_v57 }
  0x3f   :  { %v5816_v22 = vld [vmem:[#allocation5 + $0x21c] sm:$0xf0]  ;;  %v4150_v27 = vld [vmem:[#allocation5 + $0x220] sm:$0xf0]  ;;  %v5793_v61 = vld [vmem:[#allocation5 + $0x164] sm:$0xf0] }
  0x40   :  { %v4149_v35 = vor.u32 %v5816_v22, %v4148_v21  ;;  %v4153_v39 = vor.u32 %v5812_v26, %v4150_v27  ;;  %943 = vmatpush.bf16.msra.mxu0 %v3893_v31  ;;  %971 = vmatpush.bf16.msra.mxu2 %v3897_v36  ;;  %v4316_v62 = vld [vmem:[#allocation5 + $0x348] sm:$0xf]  ;;  %v5789_v2 = vld [vmem:[#allocation5 + $0x14c] sm:$0xf]  ;;  %v4061_v6 = vor.u32 %v5793_v61, %v4060_v60 }
  0x41   :  { %v5857_v1 = vld [vmem:[#allocation5 + $0x364] sm:$0xf0]  ;;  %v4062_v3 = vld [vmem:[#allocation5 + $0x168] sm:$0xf0] }
  0x42   :  { %957 = vmatpush.bf16.msra.mxu1 %v4149_v35  ;;  %985 = vmatpush.bf16.msra.mxu3 %v4153_v39  ;;  %v5853_v4 = vld [vmem:[#allocation5 + $0x34c] sm:$0xf]  ;;  %v4317_v7 = vor.u32 %v5857_v1, %v4316_v62  ;;  %v4065_v8 = vor.u32 %v5789_v2, %v4062_v3  ;;  %v4028_v9 = vld [vmem:[#allocation5 + $0x108] sm:$0xf] }
  0x43   :  { %972 = vmatmul.bf16.vlgmr.msra.gmra.mxu2 %v6524_v56  ;;  %v4318_v5 = vld [vmem:[#allocation5 + $0x368] sm:$0xf0]  ;;  %944 = vmatmul.bf16.vlgmr.msra.gmra.mxu0 %v6524_v56  ;;  %v5785_v10 = vld [vmem:[#allocation5 + $0x124] sm:$0xf0] }
  0x44   :  { %992 = vmatpush.bf16.msrb.mxu0 %v4125_v40  ;;  %1020 = vmatpush.bf16.msrb.mxu2 %v4129_v44  ;;  %v4284_v11 = vld [vmem:[#allocation5 + $0x308] sm:$0xf]  ;;  %v4321_v12 = vor.u32 %v5853_v4, %v4318_v5  ;;  %v5781_v14 = vld [vmem:[#allocation5 + $0x10c] sm:$0xf]  ;;  %v4029_v18 = vor.u32 %v5785_v10, %v4028_v9  ;;  %v4132_v4 = vld [vmem:[#allocation5 + $0x1d0] sm:$0xf] }
  0x45   :  { %986 = vmatmul.bf16.vlgmr.msra.gmra.mxu3 %v6526_v63  ;;  %958 = vmatmul.bf16.vlgmr.msra.gmra.mxu1 %v6526_v63  ;;  %v5849_v13 = vld [vmem:[#allocation5 + $0x324] sm:$0xf0]  ;;  %v4030_v15 = vld [vmem:[#allocation5 + $0x128] sm:$0xf0]  ;;  %v5810_v5 = vld [vmem:[#allocation5 + $0x1ec] sm:$0xf0] }
  0x46   :  { %1006 = vmatpush.bf16.msrb.mxu1 %v4381_v43  ;;  %1034 = vmatpush.bf16.msrb.mxu3 %v4385_v48  ;;  %v5845_v16 = vld [vmem:[#allocation5 + $0x30c] sm:$0xf]  ;;  %v4285_v19 = vor.u32 %v5849_v13, %v4284_v11  ;;  %v4033_v20 = vor.u32 %v5781_v14, %v4030_v15  ;;  %v3996_v21 = vld [vmem:[#allocation5 + $0xc8] sm:$0xf]  ;;  %v5806_v9 = vld [vmem:[#allocation5 + $0x1d4] sm:$0xf] }
  0x47   :  { %v4286_v17 = vld [vmem:[#allocation5 + $0x328] sm:$0xf0]  ;;  %v5777_v22 = vld [vmem:[#allocation5 + $0xe4] sm:$0xf0]  ;;  %v4134_v10 = vld [vmem:[#allocation5 + $0x1f0] sm:$0xf0] }
  0x48   :  { %993 = vmatpush.bf16.msrb.mxu0 %v4093_v55  ;;  %1021 = vmatpush.bf16.msrb.mxu2 %v4097_v59  ;;  %v4252_v23 = vld [vmem:[#allocation5 + $0x2c8] sm:$0xf]  ;;  %v4289_v24 = vor.u32 %v5845_v16, %v4286_v17  ;;  %v5773_v26 = vld [vmem:[#allocation5 + $0xcc] sm:$0xf]  ;;  %v3997_v30 = vor.u32 %v5777_v22, %v3996_v21  ;;  %v5870_v13 = vld [vmem:[#allocation5 + $0x3d4] sm:$0xf]  ;;  %v4133_v16 = vor.u32 %v5810_v5, %v4132_v4 }
  0x49   :  { %v5841_v25 = vld [vmem:[#allocation5 + $0x2e4] sm:$0xf0]  ;;  %v3998_v27 = vld [vmem:[#allocation5 + $0xe8] sm:$0xf0]  ;;  %v4390_v14 = vld [vmem:[#allocation5 + $0x3f0] sm:$0xf0] }
  0x4a   :  { %1007 = vmatpush.bf16.msrb.mxu1 %v4349_v58  ;;  %1035 = vmatpush.bf16.msrb.mxu3 %v4353_v0  ;;  %v5837_v28 = vld [vmem:[#allocation5 + $0x2cc] sm:$0xf]  ;;  %v4253_v31 = vor.u32 %v5841_v25, %v4252_v23  ;;  %v4001_v32 = vor.u32 %v5773_v26, %v3998_v27  ;;  %v3964_v33 = vld [vmem:[#allocation5 + $0x88] sm:$0xf]  ;;  %v4356_v21 = vld [vmem:[#allocation5 + $0x390] sm:$0xf]  ;;  %v4393_v22 = vor.u32 %v5870_v13, %v4390_v14 }
  0x4b   :  { %v4254_v29 = vld [vmem:[#allocation5 + $0x2e8] sm:$0xf0]  ;;  %v5769_v34 = vld [vmem:[#allocation5 + $0xa4] sm:$0xf0]  ;;  %v5866_v23 = vld [vmem:[#allocation5 + $0x3ac] sm:$0xf0] }
  0x4c   :  { %994 = vmatpush.bf16.msrb.mxu0 %v4061_v6  ;;  %1022 = vmatpush.bf16.msrb.mxu2 %v4065_v8  ;;  %v4220_v35 = vld [vmem:[#allocation5 + $0x288] sm:$0xf]  ;;  %v4257_v36 = vor.u32 %v5837_v28, %v4254_v29  ;;  %v5765_v38 = vld [vmem:[#allocation5 + $0x8c] sm:$0xf]  ;;  %v3965_v42 = vor.u32 %v5769_v34, %v3964_v33  ;;  %v4388_v6 = vld [vmem:[#allocation5 + $0x3d0] sm:$0xf]  ;;  %v4357_v29 = vor.u32 %v5866_v23, %v4356_v21 }
  0x4d   :  { %v5833_v37 = vld [vmem:[#allocation5 + $0x2a4] sm:$0xf0]  ;;  %v3966_v39 = vld [vmem:[#allocation5 + $0xa8] sm:$0xf0]  ;;  %v5874_v8 = vld [vmem:[#allocation5 + $0x3ec] sm:$0xf0] }
  0x4e   :  { %1008 = vmatpush.bf16.msrb.mxu1 %v4317_v7  ;;  %1036 = vmatpush.bf16.msrb.mxu3 %v4321_v12  ;;  %v5829_v40 = vld [vmem:[#allocation5 + $0x28c] sm:$0xf]  ;;  %v4221_v43 = vor.u32 %v5833_v37, %v4220_v35  ;;  %v3969_v44 = vor.u32 %v5765_v38, %v3966_v39  ;;  %v3932_v45 = vld [vmem:[#allocation5 + $0x48] sm:$0xf]  ;;  %v4389_v17 = vor.u32 %v5874_v8, %v4388_v6  ;;  %v4102_v25 = vld [vmem:[#allocation5 + $0x1b0] sm:$0xf0] }
  0x4f   :  { %v4222_v41 = vld [vmem:[#allocation5 + $0x2a8] sm:$0xf0]  ;;  %v5761_v46 = vld [vmem:[#allocation5 + $0x64] sm:$0xf0]  ;;  %v5862_v26 = vld [vmem:[#allocation5 + $0x394] sm:$0xf] }
  0x50   :  { %995 = vmatpush.bf16.msrb.mxu0 %v4029_v18  ;;  %1023 = vmatpush.bf16.msrb.mxu2 %v4033_v20  ;;  %v4188_v47 = vld [vmem:[#allocation5 + $0x248] sm:$0xf]  ;;  %v4225_v48 = vor.u32 %v5829_v40, %v4222_v41  ;;  %v5757_v50 = vld [vmem:[#allocation5 + $0x4c] sm:$0xf]  ;;  %v3933_v54 = vor.u32 %v5761_v46, %v3932_v45  ;;  %v4137_v18 = vor.u32 %v5806_v9, %v4134_v10  ;;  %v5802_v20 = vld [vmem:[#allocation5 + $0x1ac] sm:$0xf0] }
  0x51   :  { %v5825_v49 = vld [vmem:[#allocation5 + $0x264] sm:$0xf0]  ;;  %v3934_v51 = vld [vmem:[#allocation5 + $0x68] sm:$0xf0]  ;;  %v4358_v27 = vld [vmem:[#allocation5 + $0x3b0] sm:$0xf0] }
  0x52   :  { %1009 = vmatpush.bf16.msrb.mxu1 %v4285_v19  ;;  %1037 = vmatpush.bf16.msrb.mxu3 %v4289_v24  ;;  %v5821_v52 = vld [vmem:[#allocation5 + $0x24c] sm:$0xf]  ;;  %v3900_v55 = vld [vmem:[#allocation5 + $0x8] sm:$0xf]  ;;  %v4189_v58 = vor.u32 %v5825_v49, %v4188_v47  ;;  %v3937_v59 = vor.u32 %v5757_v50, %v3934_v51  ;;  %v4100_v19 = vld [vmem:[#allocation5 + $0x190] sm:$0xf]  ;;  %v4361_v34 = vor.u32 %v5862_v26, %v4358_v27 }
  0x53   :  { %v4190_v53 = vld [vmem:[#allocation5 + $0x268] sm:$0xf0]  ;;  %v5753_v57 = vld [vmem:[#allocation5 + $0x24] sm:$0xf0]  ;;  %v5798_v24 = vld [vmem:[#allocation5 + $0x194] sm:$0xf]  ;;  %v4101_v28 = vor.u32 %v5802_v20, %v4100_v19 }
  0x54   :  { %996 = vmatpush.bf16.msrb.mxu0 %v3997_v30  ;;  %1024 = vmatpush.bf16.msrb.mxu2 %v4001_v32  ;;  %v4156_v60 = vld [vmem:[#allocation5 + $0x208] sm:$0xf]  ;;  %v5749_v62 = vld [vmem:[#allocation5 + $0xc] sm:$0xf]  ;;  %v4193_v0 = vor.u32 %v5821_v52, %v4190_v53  ;;  %v3901_v7 = vor.u32 %v5753_v57, %v3900_v55  ;;  %v4105_v30 = vor.u32 %v5798_v24, %v4102_v25  ;;  %v5794_v32 = vld [vmem:[#allocation5 + $0x16c] sm:$0xf0] }
  0x55   :  { %v5817_v61 = vld [vmem:[#allocation5 + $0x224] sm:$0xf0]  ;;  %v3902_v1 = vld [vmem:[#allocation5 + $0x28] sm:$0xf0]  ;;  %v4324_v33 = vld [vmem:[#allocation5 + $0x350] sm:$0xf] }
  0x56   :  { %1010 = vmatpush.bf16.msrb.mxu1 %v4253_v31  ;;  %1038 = vmatpush.bf16.msrb.mxu3 %v4257_v36  ;;  %v5813_v2 = vld [vmem:[#allocation5 + $0x20c] sm:$0xf]  ;;  %v4157_v11 = vor.u32 %v5817_v61, %v4156_v60  ;;  %v3905_v12 = vor.u32 %v5749_v62, %v3902_v1  ;;  %v4068_v31 = vld [vmem:[#allocation5 + $0x150] sm:$0xf]  ;;  %v5790_v36 = vld [vmem:[#allocation5 + $0x154] sm:$0xf] }
  0x57   :  { %v4158_v3 = vld [vmem:[#allocation5 + $0x228] sm:$0xf0]  ;;  %v5858_v35 = vld [vmem:[#allocation5 + $0x36c] sm:$0xf0]  ;;  %v4070_v37 = vld [vmem:[#allocation5 + $0x170] sm:$0xf0]  ;;  %v4069_v40 = vor.u32 %v5794_v32, %v4068_v31 }
  0x58   :  { %997 = vmatpush.bf16.msrb.mxu0 %v3965_v42  ;;  %1025 = vmatpush.bf16.msrb.mxu2 %v3969_v44  ;;  %v4161_v15 = vor.u32 %v5813_v2, %v4158_v3  ;;  %v5854_v38 = vld [vmem:[#allocation5 + $0x354] sm:$0xf]  ;;  %v4325_v41 = vor.u32 %v5858_v35, %v4324_v33  ;;  %v4073_v42 = vor.u32 %v5790_v36, %v4070_v37  ;;  %v5786_v44 = vld [vmem:[#allocation5 + $0x12c] sm:$0xf0] }
  0x59   :  { %v4326_v39 = vld [vmem:[#allocation5 + $0x370] sm:$0xf0]  ;;  %v4292_v45 = vld [vmem:[#allocation5 + $0x310] sm:$0xf] }
  0x5a   :  { %1011 = vmatpush.bf16.msrb.mxu1 %v4221_v43  ;;  %1039 = vmatpush.bf16.msrb.mxu3 %v4225_v48  ;;  %v4036_v43 = vld [vmem:[#allocation5 + $0x110] sm:$0xf]  ;;  %v4329_v46 = vor.u32 %v5854_v38, %v4326_v39  ;;  %v5782_v48 = vld [vmem:[#allocation5 + $0x114] sm:$0xf]  ;;  %v4140_v38 = vld [vmem:[#allocation5 + $0x1d8] sm:$0xf] }
  0x5b   :  { %v5850_v47 = vld [vmem:[#allocation5 + $0x32c] sm:$0xf0]  ;;  %v4038_v49 = vld [vmem:[#allocation5 + $0x130] sm:$0xf0]  ;;  %v4037_v52 = vor.u32 %v5786_v44, %v4036_v43  ;;  %v5811_v39 = vld [vmem:[#allocation5 + $0x1f4] sm:$0xf0] }
  0x5c   :  { %998 = vmatpush.bf16.msrb.mxu0 %v3933_v54  ;;  %1026 = vmatpush.bf16.msrb.mxu2 %v3937_v59  ;;  %v5846_v50 = vld [vmem:[#allocation5 + $0x314] sm:$0xf]  ;;  %v4293_v53 = vor.u32 %v5850_v47, %v4292_v45  ;;  %v4041_v54 = vor.u32 %v5782_v48, %v4038_v49  ;;  %v4004_v55 = vld [vmem:[#allocation5 + $0xd0] sm:$0xf]  ;;  %v5807_v43 = vld [vmem:[#allocation5 + $0x1dc] sm:$0xf] }
  0x5d   :  { %v4294_v51 = vld [vmem:[#allocation5 + $0x330] sm:$0xf0]  ;;  %v5778_v57 = vld [vmem:[#allocation5 + $0xec] sm:$0xf0]  ;;  %v4142_v44 = vld [vmem:[#allocation5 + $0x1f8] sm:$0xf0] }
  0x5e   :  { %1012 = vmatpush.bf16.msrb.mxu1 %v4189_v58  ;;  %1040 = vmatpush.bf16.msrb.mxu3 %v4193_v0  ;;  %v4260_v58 = vld [vmem:[#allocation5 + $0x2d0] sm:$0xf]  ;;  %v4297_v59 = vor.u32 %v5846_v50, %v4294_v51  ;;  %v5774_v61 = vld [vmem:[#allocation5 + $0xd4] sm:$0xf]  ;;  %v4005_v2 = vor.u32 %v5778_v57, %v4004_v55  ;;  %v5871_v47 = vld [vmem:[#allocation5 + $0x3dc] sm:$0xf]  ;;  %v4141_v50 = vor.u32 %v5811_v39, %v4140_v38 }
  0x5f   :  { %v5842_v60 = vld [vmem:[#allocation5 + $0x2ec] sm:$0xf0]  ;;  %v4006_v62 = vld [vmem:[#allocation5 + $0xf0] sm:$0xf0]  ;;  %v4398_v48 = vld [vmem:[#allocation5 + $0x3f8] sm:$0xf0] }
  0x60   :  { %999 = vmatpush.bf16.msrb.mxu0 %v3901_v7  ;;  %1027 = vmatpush.bf16.msrb.mxu2 %v3905_v12  ;;  %v5838_v0 = vld [vmem:[#allocation5 + $0x2d4] sm:$0xf]  ;;  %v4261_v3 = vor.u32 %v5842_v60, %v4260_v58  ;;  %v4009_v4 = vor.u32 %v5774_v61, %v4006_v62  ;;  %v3972_v5 = vld [vmem:[#allocation5 + $0x90] sm:$0xf]  ;;  %v4364_v55 = vld [vmem:[#allocation5 + $0x398] sm:$0xf]  ;;  %v4401_v57 = vor.u32 %v5871_v47, %v4398_v48 }
  0x61   :  { %v4262_v1 = vld [vmem:[#allocation5 + $0x2f0] sm:$0xf0]  ;;  %v5770_v6 = vld [vmem:[#allocation5 + $0xac] sm:$0xf0]  ;;  %v5867_v58 = vld [vmem:[#allocation5 + $0x3b4] sm:$0xf0] }
  0x62   :  { %1013 = vmatpush.bf16.msrb.mxu1 %v4157_v11  ;;  %1041 = vmatpush.bf16.msrb.mxu3 %v4161_v15  ;;  %v4228_v7 = vld [vmem:[#allocation5 + $0x290] sm:$0xf]  ;;  %v4265_v8 = vor.u32 %v5838_v0, %v4262_v1  ;;  %v5766_v10 = vld [vmem:[#allocation5 + $0x94] sm:$0xf]  ;;  %v3973_v14 = vor.u32 %v5770_v6, %v3972_v5  ;;  %v4110_v60 = vld [vmem:[#allocation5 + $0x1b8] sm:$0xf0]  ;;  %v4365_v1 = vor.u32 %v5867_v58, %v4364_v55 }
  0x63   :  { %1000 = vmatmul.bf16.vlgmr.msrb.gmra.mxu0 %v6524_v56  ;;  %1028 = vmatmul.bf16.vlgmr.msrb.gmra.mxu2 %v6524_v56  ;;  %v5834_v9 = vld [vmem:[#allocation5 + $0x2ac] sm:$0xf0]  ;;  %v3974_v11 = vld [vmem:[#allocation5 + $0xb0] sm:$0xf0]  ;;  %v5863_v61 = vld [vmem:[#allocation5 + $0x39c] sm:$0xf] }
  0x64   :  { %1048 = vmatpush.bf16.msra.mxu0 %v4133_v16  ;;  %1076 = vmatpush.bf16.msra.mxu2 %v4137_v18  ;;  %v5830_v12 = vld [vmem:[#allocation5 + $0x294] sm:$0xf]  ;;  %v4229_v15 = vor.u32 %v5834_v9, %v4228_v7  ;;  %v3977_v16 = vor.u32 %v5766_v10, %v3974_v11  ;;  %v5762_v18 = vld [vmem:[#allocation5 + $0x6c] sm:$0xf0]  ;;  %v4366_v62 = vld [vmem:[#allocation5 + $0x3b8] sm:$0xf0] }
  0x65   :  { %1014 = vmatmul.bf16.vlgmr.msrb.gmra.mxu1 %v6526_v63  ;;  %1042 = vmatmul.bf16.vlgmr.msrb.gmra.mxu3 %v6526_v63  ;;  %v4230_v13 = vld [vmem:[#allocation5 + $0x2b0] sm:$0xf0]  ;;  %v4196_v19 = vld [vmem:[#allocation5 + $0x250] sm:$0xf]  ;;  %v4332_v5 = vld [vmem:[#allocation5 + $0x358] sm:$0xf]  ;;  %v4369_v6 = vor.u32 %v5863_v61, %v4366_v62 }
  0x66   :  { %1062 = vmatpush.bf16.msra.mxu1 %v4389_v17  ;;  %1090 = vmatpush.bf16.msra.mxu3 %v4393_v22  ;;  %v3940_v17 = vld [vmem:[#allocation5 + $0x50] sm:$0xf]  ;;  %v4233_v20 = vor.u32 %v5830_v12, %v4230_v13  ;;  %v5758_v22 = vld [vmem:[#allocation5 + $0x54] sm:$0xf]  ;;  %v5859_v7 = vld [vmem:[#allocation5 + $0x374] sm:$0xf0] }
  0x67   :  { %v5826_v21 = vld [vmem:[#allocation5 + $0x26c] sm:$0xf0]  ;;  %v3942_v23 = vld [vmem:[#allocation5 + $0x70] sm:$0xf0]  ;;  %v3941_v26 = vor.u32 %v5762_v18, %v3940_v17  ;;  %v4078_v9 = vld [vmem:[#allocation5 + $0x178] sm:$0xf0]  ;;  %v4333_v13 = vor.u32 %v5859_v7, %v4332_v5 }
  0x68   :  { %1049 = vmatpush.bf16.msra.mxu0 %v4101_v28  ;;  %1077 = vmatpush.bf16.msra.mxu2 %v4105_v30  ;;  %v5822_v24 = vld [vmem:[#allocation5 + $0x254] sm:$0xf]  ;;  %v3908_v27 = vld [vmem:[#allocation5 + $0x10] sm:$0xf]  ;;  %v3945_v30 = vor.u32 %v5758_v22, %v3942_v23  ;;  %v5855_v10 = vld [vmem:[#allocation5 + $0x35c] sm:$0xf] }
  0x69   :  { %v4198_v25 = vld [vmem:[#allocation5 + $0x270] sm:$0xf0]  ;;  %v5754_v28 = vld [vmem:[#allocation5 + $0x2c] sm:$0xf0]  ;;  %v4334_v11 = vld [vmem:[#allocation5 + $0x378] sm:$0xf0] }
  0x6a   :  { %1063 = vmatpush.bf16.msra.mxu1 %v4357_v29  ;;  %1091 = vmatpush.bf16.msra.mxu3 %v4361_v34  ;;  %v4197_v29 = vor.u32 %v5826_v21, %v4196_v19  ;;  %v4164_v31 = vld [vmem:[#allocation5 + $0x210] sm:$0xf]  ;;  %v5750_v33 = vld [vmem:[#allocation5 + $0x14] sm:$0xf]  ;;  %v4201_v34 = vor.u32 %v5822_v24, %v4198_v25  ;;  %v4300_v17 = vld [vmem:[#allocation5 + $0x318] sm:$0xf]  ;;  %v4337_v18 = vor.u32 %v5855_v10, %v4334_v11 }
  0x6b   :  { %v5818_v32 = vld [vmem:[#allocation5 + $0x22c] sm:$0xf0]  ;;  %v3910_v35 = vld [vmem:[#allocation5 + $0x30] sm:$0xf0]  ;;  %v5851_v19 = vld [vmem:[#allocation5 + $0x334] sm:$0xf0] }
  0x6c   :  { %1050 = vmatpush.bf16.msra.mxu0 %v4069_v40  ;;  %1078 = vmatpush.bf16.msra.mxu2 %v4073_v42  ;;  %v5814_v36 = vld [vmem:[#allocation5 + $0x214] sm:$0xf]  ;;  %v4396_v40 = vld [vmem:[#allocation5 + $0x3d8] sm:$0xf]  ;;  %v4165_v45 = vor.u32 %v5818_v32, %v4164_v31  ;;  %v4046_v21 = vld [vmem:[#allocation5 + $0x138] sm:$0xf0]  ;;  %v4301_v25 = vor.u32 %v5851_v19, %v4300_v17 }
  0x6d   :  { %v4166_v37 = vld [vmem:[#allocation5 + $0x230] sm:$0xf0]  ;;  %v5875_v42 = vld [vmem:[#allocation5 + $0x3f4] sm:$0xf0]  ;;  %v5847_v22 = vld [vmem:[#allocation5 + $0x31c] sm:$0xf] }
  0x6e   :  { %1064 = vmatpush.bf16.msra.mxu1 %v4325_v41  ;;  %1092 = vmatpush.bf16.msra.mxu3 %v4329_v46  ;;  %v3909_v41 = vor.u32 %v5754_v28, %v3908_v27  ;;  %v3913_v46 = vor.u32 %v5750_v33, %v3910_v35  ;;  %v4169_v49 = vor.u32 %v5814_v36, %v4166_v37  ;;  %v4302_v23 = vld [vmem:[#allocation5 + $0x338] sm:$0xf0]  ;;  %v4012_v27 = vld [vmem:[#allocation5 + $0xd8] sm:$0xf]  ;;  %v4516_v10 = vld [vmem:[#allocation8 + $0xe0] sm:$0xf] }
  0x6f   :  { %v4397_v51 = vor.u32 %v5875_v42, %v4396_v40  ;;  %v5779_v28 = vld [vmem:[#allocation5 + $0xf4] sm:$0xf0]  ;;  %v5775_v32 = vld [vmem:[#allocation5 + $0xdc] sm:$0xf]  ;;  %v4500_v19 = vld [vmem:[#allocation8 + $0xc0] sm:$0xf] }
  0x70   :  { %1051 = vmatpush.bf16.msra.mxu0 %v4037_v52  ;;  %1079 = vmatpush.bf16.msra.mxu2 %v4041_v54  ;;  %v4145_v52 = vor.u32 %v5807_v43, %v4142_v44  ;;  %v5803_v54 = vld [vmem:[#allocation5 + $0x1b4] sm:$0xf0]  ;;  %v4014_v33 = vld [vmem:[#allocation5 + $0xf8] sm:$0xf0]  ;;  %v4013_v36 = vor.u32 %v5779_v28, %v4012_v27  ;;  %v4612_v28 = vld [vmem:[#allocation8 + $0x1a0] sm:$0xf] }
  0x71   :  { %v5843_v31 = vld [vmem:[#allocation5 + $0x2f4] sm:$0xf0]  ;;  %v4270_v35 = vld [vmem:[#allocation5 + $0x2f8] sm:$0xf0]  ;;  %v4017_v38 = vor.u32 %v5775_v32, %v4014_v33 }
  0x72   :  { %1065 = vmatpush.bf16.msra.mxu1 %v4293_v53  ;;  %1093 = vmatpush.bf16.msra.mxu3 %v4297_v59  ;;  %v4108_v53 = vld [vmem:[#allocation5 + $0x198] sm:$0xf]  ;;  %v5799_v59 = vld [vmem:[#allocation5 + $0x19c] sm:$0xf] }
  0x73   :  { %v4109_v0 = vor.u32 %v5803_v54, %v4108_v53  ;;  %v3980_v39 = vld [vmem:[#allocation5 + $0x98] sm:$0xf]  ;;  %v5767_v44 = vld [vmem:[#allocation5 + $0x9c] sm:$0xf] }
  0x74   :  { %1052 = vmatpush.bf16.msra.mxu0 %v4005_v2  ;;  %1080 = vmatpush.bf16.msra.mxu2 %v4009_v4  ;;  %v4113_v2 = vor.u32 %v5799_v59, %v4110_v60  ;;  %v5795_v4 = vld [vmem:[#allocation5 + $0x174] sm:$0xf0]  ;;  %v4238_v47 = vld [vmem:[#allocation5 + $0x2b8] sm:$0xf0] }
  0x75   :  { %v5771_v40 = vld [vmem:[#allocation5 + $0xb4] sm:$0xf0]  ;;  %v3950_v58 = vld [vmem:[#allocation5 + $0x78] sm:$0xf0] }
  0x76   :  { %1066 = vmatpush.bf16.msra.mxu1 %v4261_v3  ;;  %1094 = vmatpush.bf16.msra.mxu3 %v4265_v8  ;;  %v4076_v3 = vld [vmem:[#allocation5 + $0x158] sm:$0xf]  ;;  %v5791_v8 = vld [vmem:[#allocation5 + $0x15c] sm:$0xf]  ;;  %v3981_v48 = vor.u32 %v5771_v40, %v3980_v39  ;;  %v4580_v40 = vld [vmem:[#allocation8 + $0x160] sm:$0xf] }
  0x77   :  { %v4077_v12 = vor.u32 %v5795_v4, %v4076_v3  ;;  %v5835_v43 = vld [vmem:[#allocation5 + $0x2b4] sm:$0xf0]  ;;  %v5823_v59 = vld [vmem:[#allocation5 + $0x25c] sm:$0xf] }
  0x78   :  { %1053 = vmatpush.bf16.msra.mxu0 %v3973_v14  ;;  %1081 = vmatpush.bf16.msra.mxu2 %v3977_v16  ;;  %v4081_v14 = vor.u32 %v5791_v8, %v4078_v9  ;;  %v5787_v16 = vld [vmem:[#allocation5 + $0x134] sm:$0xf0]  ;;  %v4206_v60 = vld [vmem:[#allocation5 + $0x278] sm:$0xf0] }
  0x79   :  { %v4204_v53 = vld [vmem:[#allocation5 + $0x258] sm:$0xf]  ;;  %v4209_v5 = vor.u32 %v5823_v59, %v4206_v60  ;;  %v3918_v7 = vld [vmem:[#allocation5 + $0x38] sm:$0xf0]  ;;  %v4548_v59 = vld [vmem:[#allocation8 + $0x120] sm:$0xf] }
  0x7a   :  { %1067 = vmatpush.bf16.msra.mxu1 %v4229_v15  ;;  %1095 = vmatpush.bf16.msra.mxu3 %v4233_v20  ;;  %v4044_v15 = vld [vmem:[#allocation5 + $0x118] sm:$0xf]  ;;  %v5783_v20 = vld [vmem:[#allocation5 + $0x11c] sm:$0xf] }
  0x7b   :  { %v4045_v24 = vor.u32 %v5787_v16, %v4044_v15  ;;  %v5827_v55 = vld [vmem:[#allocation5 + $0x274] sm:$0xf0]  ;;  %v5815_v8 = vld [vmem:[#allocation5 + $0x21c] sm:$0xf] }
  0x7c   :  { %1054 = vmatpush.bf16.msra.mxu0 %v3941_v26  ;;  %1082 = vmatpush.bf16.msra.mxu2 %v3945_v30  ;;  %v4049_v26 = vor.u32 %v5783_v20, %v4046_v21  ;;  %v4305_v30 = vor.u32 %v5847_v22, %v4302_v23  ;;  %v3916_v62 = vld [vmem:[#allocation5 + $0x18] sm:$0xf]  ;;  %v4174_v9 = vld [vmem:[#allocation5 + $0x238] sm:$0xf0]  ;;  %v4628_v22 = vld [vmem:[#allocation8 + $0x1c0] sm:$0xf] }
  0x7d   :  { %v4172_v3 = vld [vmem:[#allocation5 + $0x218] sm:$0xf]  ;;  %v4177_v17 = vor.u32 %v5815_v8, %v4174_v9 }
  0x7e   :  { %1068 = vmatpush.bf16.msra.mxu1 %v4197_v29  ;;  %1096 = vmatpush.bf16.msra.mxu3 %v4201_v34  ;;  %v4268_v29 = vld [vmem:[#allocation5 + $0x2d8] sm:$0xf]  ;;  %v5839_v34 = vld [vmem:[#allocation5 + $0x2dc] sm:$0xf] }
  0x7f   :  { %v4269_v37 = vor.u32 %v5843_v31, %v4268_v29  ;;  %v4273_v42 = vor.u32 %v5839_v34, %v4270_v35  ;;  %v5819_v4 = vld [vmem:[#allocation5 + $0x234] sm:$0xf0]  ;;  %v4468_v31 = vld [vmem:[#allocation8 + $0x80] sm:$0xf] }
  0x80   :  { %1055 = vmatpush.bf16.msra.mxu0 %v3909_v41  ;;  %1083 = vmatpush.bf16.msra.mxu2 %v3913_v46  ;;  %v4236_v41 = vld [vmem:[#allocation5 + $0x298] sm:$0xf]  ;;  %v5831_v46 = vld [vmem:[#allocation5 + $0x29c] sm:$0xf]  ;;  %v4173_v15 = vor.u32 %v5819_v4, %v4172_v3  ;;  %v4596_v34 = vld [vmem:[#allocation8 + $0x180] sm:$0xf] }
  0x81   :  { %v4241_v54 = vor.u32 %v5831_v46, %v4238_v47  ;;  %v5906_v11 = vld [vmem:[#allocation8 + $0xec] sm:$0xf0]  ;;  %v4564_v47 = vld [vmem:[#allocation8 + $0x140] sm:$0xf] }
  0x82   :  { %1069 = vmatpush.bf16.msra.mxu1 %v4165_v45  ;;  %1097 = vmatpush.bf16.msra.mxu3 %v4169_v49  ;;  %v3982_v45 = vld [vmem:[#allocation5 + $0xb8] sm:$0xf0]  ;;  %v4237_v49 = vor.u32 %v5835_v43, %v4236_v41  ;;  %v5902_v20 = vld [vmem:[#allocation8 + $0xcc] sm:$0xf0]  ;;  %v4772_v41 = vld [vmem:[#allocation8 + $0x2e0] sm:$0xf] }
  0x83   :  { %1056 = vmatmul.bf16.vlgmr.msra.gmra.mxu0 %v6524_v56  ;;  %1084 = vmatmul.bf16.vlgmr.msra.gmra.mxu2 %v6524_v56  ;;  %v5934_v23 = vld [vmem:[#allocation8 + $0x1cc] sm:$0xf0] }
  0x84   :  { %1104 = vmatpush.bf16.msrb.mxu0 %v4141_v50  ;;  %1132 = vmatpush.bf16.msrb.mxu2 %v4145_v52  ;;  %v3985_v50 = vor.u32 %v5767_v44, %v3982_v45  ;;  %v5763_v52 = vld [vmem:[#allocation5 + $0x74] sm:$0xf0]  ;;  %v4629_v27 = vor.u32 %v5934_v23, %v4628_v22  ;;  %v4436_v44 = vld [vmem:[#allocation8 + $0x40] sm:$0xf] }
  0x85   :  { %1070 = vmatmul.bf16.vlgmr.msra.gmra.mxu1 %v6526_v63  ;;  %1098 = vmatmul.bf16.vlgmr.msra.gmra.mxu3 %v6526_v63  ;;  %v5930_v29 = vld [vmem:[#allocation8 + $0x1ac] sm:$0xf0] }
  0x86   :  { %1118 = vmatpush.bf16.msrb.mxu1 %v4397_v51  ;;  %1146 = vmatpush.bf16.msrb.mxu3 %v4401_v57  ;;  %v3948_v51 = vld [vmem:[#allocation5 + $0x58] sm:$0xf]  ;;  %v5759_v57 = vld [vmem:[#allocation5 + $0x5c] sm:$0xf]  ;;  %v4613_v33 = vor.u32 %v5930_v29, %v4612_v28 }
  0x87   :  { %v3949_v61 = vor.u32 %v5763_v52, %v3948_v51  ;;  %v5894_v32 = vld [vmem:[#allocation8 + $0x8c] sm:$0xf0]  ;;  %v4900_v52 = vld [vmem:[#allocation8 + $0x3e0] sm:$0xf] }
  0x88   :  { %1105 = vmatpush.bf16.msrb.mxu0 %v4109_v0  ;;  %1133 = vmatpush.bf16.msrb.mxu2 %v4113_v2  ;;  %v4205_v0 = vor.u32 %v5827_v55, %v4204_v53  ;;  %v5755_v2 = vld [vmem:[#allocation5 + $0x34] sm:$0xf0]  ;;  %v4420_v53 = vld [vmem:[#allocation8 + $0x20] sm:$0xf] }
  0x89   :  { %v5926_v35 = vld [vmem:[#allocation8 + $0x18c] sm:$0xf0] }
  0x8a   :  { %1119 = vmatpush.bf16.msrb.mxu1 %v4365_v1  ;;  %1147 = vmatpush.bf16.msrb.mxu3 %v4369_v6  ;;  %v3953_v1 = vor.u32 %v5759_v57, %v3950_v58  ;;  %v5751_v6 = vld [vmem:[#allocation5 + $0x1c] sm:$0xf]  ;;  %v4597_v39 = vor.u32 %v5926_v35, %v4596_v34  ;;  %v5886_v45 = vld [vmem:[#allocation8 + $0x4c] sm:$0xf0]  ;;  %v4980_v34 = vld [vmem:[#allocation8 + $0x480] sm:$0xf] }
  0x8b   :  { %v3921_v16 = vor.u32 %v5751_v6, %v3918_v7  ;;  %v5966_v51 = vld [vmem:[#allocation8 + $0x2cc] sm:$0xf0]  ;;  %v4740_v6 = vld [vmem:[#allocation8 + $0x2a0] sm:$0xf] }
  0x8c   :  { %1106 = vmatpush.bf16.msrb.mxu0 %v4077_v12  ;;  %1134 = vmatpush.bf16.msrb.mxu2 %v4081_v14  ;;  %v3917_v12 = vor.u32 %v5755_v2, %v3916_v62  ;;  %v5938_v14 = vld [vmem:[#allocation8 + $0x1ec] sm:$0xf0]  ;;  %v4404_v62 = vld [vmem:[#allocation8] sm:$0xf] }
  0x8d   :  { %v6002_v58 = vld [vmem:[#allocation8 + $0x3ec] sm:$0xf0]  ;;  %v5028_v2 = vld [vmem:[#allocation8 + $0x4e0] sm:$0xf] }
  0x8e   :  { %1120 = vmatpush.bf16.msrb.mxu1 %v4333_v13  ;;  %1148 = vmatpush.bf16.msrb.mxu3 %v4337_v18  ;;  %v4644_v13 = vld [vmem:[#allocation8 + $0x1e0] sm:$0xf]  ;;  %v4517_v18 = vor.u32 %v5906_v11, %v4516_v10  ;;  %v5914_v60 = vld [vmem:[#allocation8 + $0x12c] sm:$0xf0] }
  0x8f   :  { %v4645_v21 = vor.u32 %v5938_v14, %v4644_v13  ;;  %v6034_v3 = vld [vmem:[#allocation8 + $0x4ec] sm:$0xf0]  ;;  %v4549_v4 = vor.u32 %v5914_v60, %v4548_v59  ;;  %v4884_v10 = vld [vmem:[#allocation8 + $0x3c0] sm:$0xf] }
  0x90   :  { %1107 = vmatpush.bf16.msrb.mxu0 %v4045_v24  ;;  %1135 = vmatpush.bf16.msrb.mxu2 %v4049_v26  ;;  %v4501_v24 = vor.u32 %v5902_v20, %v4500_v19  ;;  %v5898_v26 = vld [vmem:[#allocation8 + $0xac] sm:$0xf0] }
  0x91   :  { %v5962_v7 = vld [vmem:[#allocation8 + $0x2ac] sm:$0xf0] }
  0x92   :  { %1121 = vmatpush.bf16.msrb.mxu1 %v4301_v25  ;;  %1149 = vmatpush.bf16.msrb.mxu3 %v4305_v30  ;;  %v4484_v25 = vld [vmem:[#allocation8 + $0xa0] sm:$0xf]  ;;  %v5910_v8 = vld [vmem:[#allocation8 + $0x10c] sm:$0xf0]  ;;  %v4741_v9 = vor.u32 %v5962_v7, %v4740_v6 }
  0x93   :  { %v4485_v30 = vor.u32 %v5898_v26, %v4484_v25  ;;  %v5998_v11 = vld [vmem:[#allocation8 + $0x3cc] sm:$0xf0]  ;;  %v4676_v6 = vld [vmem:[#allocation8 + $0x220] sm:$0xf] }
  0x94   :  { %1108 = vmatpush.bf16.msrb.mxu0 %v4013_v36  ;;  %1136 = vmatpush.bf16.msrb.mxu2 %v4017_v38  ;;  %v4469_v36 = vor.u32 %v5894_v32, %v4468_v31  ;;  %v5890_v38 = vld [vmem:[#allocation8 + $0x6c] sm:$0xf0]  ;;  %v4885_v14 = vor.u32 %v5998_v11, %v4884_v10  ;;  %v4868_v32 = vld [vmem:[#allocation8 + $0x3a0] sm:$0xf] }
  0x95   :  { %v6066_v13 = vld [vmem:[#allocation8 + $0x5ec] sm:$0xf0] }
  0x96   :  { %1122 = vmatpush.bf16.msrb.mxu1 %v4269_v37  ;;  %1150 = vmatpush.bf16.msrb.mxu3 %v4273_v42  ;;  %v4452_v37 = vld [vmem:[#allocation8 + $0x60] sm:$0xf]  ;;  %v5970_v42 = vld [vmem:[#allocation8 + $0x2ec] sm:$0xf0] }
  0x97   :  { %v4773_v43 = vor.u32 %v5970_v42, %v4772_v41  ;;  %v6030_v19 = vld [vmem:[#allocation8 + $0x4cc] sm:$0xf0] }
  0x98   :  { %1109 = vmatpush.bf16.msrb.mxu0 %v3981_v48  ;;  %1137 = vmatpush.bf16.msrb.mxu2 %v3985_v50  ;;  %v5918_v48 = vld [vmem:[#allocation8 + $0x14c] sm:$0xf0]  ;;  %v4756_v50 = vld [vmem:[#allocation8 + $0x2c0] sm:$0xf] }
  0x99   :  { %v4565_v55 = vor.u32 %v5918_v48, %v4564_v47  ;;  %v4757_v57 = vor.u32 %v5966_v51, %v4756_v50  ;;  %v5958_v22 = vld [vmem:[#allocation8 + $0x28c] sm:$0xf0]  ;;  %v4964_v47 = vld [vmem:[#allocation8 + $0x460] sm:$0xf] }
  0x9a   :  { %1123 = vmatpush.bf16.msrb.mxu1 %v4237_v49  ;;  %1151 = vmatpush.bf16.msrb.mxu3 %v4241_v54  ;;  %v4437_v49 = vor.u32 %v5886_v45, %v4436_v44  ;;  %v5882_v54 = vld [vmem:[#allocation8 + $0x2c] sm:$0xf0]  ;;  %v4852_v45 = vld [vmem:[#allocation8 + $0x380] sm:$0xf] }
  0x9b   :  { %v6062_v25 = vld [vmem:[#allocation8 + $0x5cc] sm:$0xf0] }
  0x9c   :  { %1110 = vmatpush.bf16.msrb.mxu0 %v3949_v61  ;;  %1138 = vmatpush.bf16.msrb.mxu2 %v3953_v1  ;;  %v4901_v61 = vor.u32 %v6002_v58, %v4900_v52  ;;  %v5878_v1 = vld [vmem:[#allocation8 + $0xc] sm:$0xf0]  ;;  %v4692_v52 = vld [vmem:[#allocation8 + $0x240] sm:$0xf] }
  0x9d   :  { %v6026_v28 = vld [vmem:[#allocation8 + $0x4ac] sm:$0xf0] }
  0x9e   :  { %1124 = vmatpush.bf16.msrb.mxu1 %v4205_v0  ;;  %1152 = vmatpush.bf16.msrb.mxu3 %v4209_v5  ;;  %v4421_v0 = vor.u32 %v5882_v54, %v4420_v53  ;;  %v4532_v5 = vld [vmem:[#allocation8 + $0x100] sm:$0xf]  ;;  %v6018_v50 = vld [vmem:[#allocation8 + $0x46c] sm:$0xf0] }
  0x9f   :  { %v4965_v51 = vor.u32 %v6018_v50, %v4964_v47  ;;  %v5950_v53 = vld [vmem:[#allocation8 + $0x24c] sm:$0xf0]  ;;  %v5108_v54 = vld [vmem:[#allocation8 + $0x580] sm:$0xf] }
  0xa0   :  { %1111 = vmatpush.bf16.msrb.mxu0 %v3917_v12  ;;  %1139 = vmatpush.bf16.msrb.mxu2 %v3921_v16  ;;  %v5156_v12 = vld [vmem:[#allocation8 + $0x5e0] sm:$0xf]  ;;  %v5029_v16 = vor.u32 %v6034_v3, %v5028_v2  ;;  %v6054_v58 = vld [vmem:[#allocation8 + $0x58c] sm:$0xf0] }
  0xa1   :  { %v5157_v20 = vor.u32 %v6066_v13, %v5156_v12  ;;  %v5109_v60 = vor.u32 %v6054_v58, %v5108_v54  ;;  %v4948_v3 = vld [vmem:[#allocation8 + $0x440] sm:$0xf]  ;;  %v5946_v7 = vld [vmem:[#allocation8 + $0x22c] sm:$0xf0] }
  0xa2   :  { %1125 = vmatpush.bf16.msrb.mxu1 %v4173_v15  ;;  %1153 = vmatpush.bf16.msrb.mxu3 %v4177_v17  ;;  %v4405_v15 = vor.u32 %v5878_v1, %v4404_v62  ;;  %v5012_v17 = vld [vmem:[#allocation8 + $0x4c0] sm:$0xf]  ;;  %v5986_v62 = vld [vmem:[#allocation8 + $0x36c] sm:$0xf0]  ;;  %v4677_v11 = vor.u32 %v5946_v7, %v4676_v6  ;;  %v5936_v7 = vld [vmem:[#allocation8 + $0x1e4] sm:$0xf] }
  0xa3   :  { %1112 = vmatmul.bf16.vlgmr.msrb.gmra.mxu0 %v6524_v56  ;;  %1140 = vmatmul.bf16.vlgmr.msrb.gmra.mxu2 %v6524_v56  ;;  %v5922_v56 = vld [vmem:[#allocation8 + $0x16c] sm:$0xf0]  ;;  %v5013_v26 = vor.u32 %v6030_v19, %v5012_v17  ;;  %v4932_v17 = vld [vmem:[#allocation8 + $0x420] sm:$0xf] }
  0xa4   :  { %2730 = vmatpush.bf16.msra.mxu0 %v4517_v18  ;;  %v4581_v46 = vor.u32 %v5922_v56, %v4580_v40  ;;  %2758 = vmatpush.bf16.msra.mxu2 %v4773_v43  ;;  %v4533_v18 = vor.u32 %v5910_v8, %v4532_v5  ;;  %v5954_v40 = vld [vmem:[#allocation8 + $0x26c] sm:$0xf0]  ;;  %v5124_v56 = vld [vmem:[#allocation8 + $0x5a0] sm:$0xf] }
  0xa5   :  { %1126 = vmatmul.bf16.vlgmr.msrb.gmra.mxu1 %v6526_v63  ;;  %1154 = vmatmul.bf16.vlgmr.msrb.gmra.mxu3 %v6526_v63  ;;  %v4453_v63 = vor.u32 %v5890_v38, %v4452_v37  ;;  %v6022_v37 = vld [vmem:[#allocation8 + $0x48c] sm:$0xf0]  ;;  %v5092_v8 = vld [vmem:[#allocation8 + $0x560] sm:$0xf] }
  0xa6   :  { %2744 = vmatpush.bf16.msra.mxu1 %v4645_v21  ;;  %2772 = vmatpush.bf16.msra.mxu3 %v4901_v61  ;;  %v4724_v21 = vld [vmem:[#allocation8 + $0x280] sm:$0xf]  ;;  %v4981_v38 = vor.u32 %v6022_v37, %v4980_v34  ;;  %v6050_v12 = vld [vmem:[#allocation8 + $0x56c] sm:$0xf0] }
  0xa7   :  { %v4725_v23 = vor.u32 %v5958_v22, %v4724_v21  ;;  %v4836_v61 = vld [vmem:[#allocation8 + $0x360] sm:$0xf]  ;;  %v6010_v21 = vld [vmem:[#allocation8 + $0x42c] sm:$0xf0] }
  0xa8   :  { %2731 = vmatpush.bf16.msra.mxu0 %v4501_v24  ;;  %2759 = vmatpush.bf16.msra.mxu2 %v4757_v57  ;;  %v5140_v24 = vld [vmem:[#allocation8 + $0x5c0] sm:$0xf]  ;;  %v4693_v57 = vor.u32 %v5950_v53, %v4692_v52  ;;  %v4837_v2 = vor.u32 %v5986_v62, %v4836_v61  ;;  %v6042_v50 = vld [vmem:[#allocation8 + $0x52c] sm:$0xf0]  ;;  %v4502_v61 = vld [vmem:[#allocation8 + $0xd0] sm:$0xf0] }
  0xa9   :  { %v5141_v29 = vor.u32 %v6062_v25, %v5140_v24  ;;  %v4660_v24 = vld [vmem:[#allocation8 + $0x200] sm:$0xf]  ;;  %v5942_v25 = vld [vmem:[#allocation8 + $0x20c] sm:$0xf0] }
  0xaa   :  { %2745 = vmatpush.bf16.msra.mxu1 %v4629_v27  ;;  %2773 = vmatpush.bf16.msra.mxu3 %v4885_v14  ;;  %v4996_v27 = vld [vmem:[#allocation8 + $0x4a0] sm:$0xf]  ;;  %v5093_v14 = vor.u32 %v6050_v12, %v5092_v8  ;;  %v5974_v53 = vld [vmem:[#allocation8 + $0x30c] sm:$0xf0]  ;;  %v4646_v8 = vld [vmem:[#allocation8 + $0x1f0] sm:$0xf0] }
  0xab   :  { %v4997_v31 = vor.u32 %v6026_v28, %v4996_v27  ;;  %v4661_v28 = vor.u32 %v5942_v25, %v4660_v24  ;;  %v4804_v34 = vld [vmem:[#allocation8 + $0x320] sm:$0xf]  ;;  %v6094_v58 = vld [vmem:[#allocation8 + $0x6cc] sm:$0xf0]  ;;  %v5896_v12 = vld [vmem:[#allocation8 + $0xa4] sm:$0xf] }
  0xac   :  { %2732 = vmatpush.bf16.msra.mxu0 %v4485_v30  ;;  %2760 = vmatpush.bf16.msra.mxu2 %v4741_v9  ;;  %v6544_v30 = vld [vmem:[#allocation7] sm:$0xff]  ;;  %v4788_v52 = vld [vmem:[#allocation8 + $0x300] sm:$0xf]  ;;  %v5892_v24 = vld [vmem:[#allocation8 + $0x84] sm:$0xf] }
  0xad   :  { %v270_v35 = vperm.slane %v6544_v30, 0  ;;  %v5044_v62 = vld [vmem:[#allocation8 + $0x500] sm:$0xf]  ;;  %v272_v25 = vperm.slane %v6544_v30, 2 }
  0xae   :  { %2746 = vmatpush.bf16.msra.mxu1 %v4613_v33  ;;  %v5994_v33 = vld [vmem:[#allocation8 + $0x3ac] sm:$0xf0] }
  0xb0   :  { %2733 = vmatpush.bf16.msra.mxu0 %v4469_v36  ;;  %2761 = vmatpush.bf16.msra.mxu2 %v4725_v23  ;;  %v4869_v36 = vor.u32 %v5994_v33, %v4868_v32  ;;  %v4933_v23 = vor.u32 %v6010_v21, %v4932_v17  ;;  %v5932_v17 = vld [vmem:[#allocation8 + $0x1c4] sm:$0xf] }
  0xb2   :  { %2747 = vmatpush.bf16.msra.mxu1 %v4597_v39  ;;  %v4708_v39 = vld [vmem:[#allocation8 + $0x260] sm:$0xf]  ;;  %2774 = vmatpush.bf16.msra.mxu3 %v4869_v36 }
  0xb3   :  { %v4709_v42 = vor.u32 %v5954_v40, %v4708_v39  ;;  %v4916_v39 = vld [vmem:[#allocation8 + $0x400] sm:$0xf]  ;;  %v6006_v40 = vld [vmem:[#allocation8 + $0x40c] sm:$0xf0] }
  0xb4   :  { %2734 = vmatpush.bf16.msra.mxu0 %v4453_v63  ;;  %v6058_v63 = vld [vmem:[#allocation8 + $0x5ac] sm:$0xf0] }
  0xb5   :  { %v5125_v44 = vor.u32 %v6058_v63, %v5124_v56  ;;  %2762 = vmatpush.bf16.msra.mxu2 %v4709_v42  ;;  %v5284_v56 = vld [vmem:[#allocation8 + $0x6e0] sm:$0xf]  ;;  %v4917_v42 = vor.u32 %v6006_v40, %v4916_v39  ;;  %v6098_v63 = vld [vmem:[#allocation8 + $0x6ec] sm:$0xf0]  ;;  %v5888_v40 = vld [vmem:[#allocation8 + $0x64] sm:$0xf] }
  0xb6   :  { %2748 = vmatpush.bf16.msra.mxu1 %v4581_v46  ;;  %v5990_v46 = vld [vmem:[#allocation8 + $0x38c] sm:$0xf0]  ;;  %v5285_v47 = vor.u32 %v6098_v63, %v5284_v56  ;;  %v4454_v63 = vld [vmem:[#allocation8 + $0x70] sm:$0xf0] }
  0xb7   :  { %v6082_v39 = vld [vmem:[#allocation8 + $0x66c] sm:$0xf0] }
  0xb8   :  { %2735 = vmatpush.bf16.msra.mxu0 %v4437_v49  ;;  %v4853_v49 = vor.u32 %v5990_v46, %v4852_v45 }
  0xb9   :  { %2763 = vmatpush.bf16.msra.mxu2 %v4693_v57  ;;  %v5268_v57 = vld [vmem:[#allocation8 + $0x6c0] sm:$0xf] }
  0xba   :  { %2749 = vmatpush.bf16.msra.mxu1 %v4565_v55  ;;  %v271_v55 = vperm.slane %v6544_v30, 1  ;;  %2775 = vmatpush.bf16.msra.mxu3 %v4853_v49  ;;  %v5060_v49 = vld [vmem:[#allocation8 + $0x520] sm:$0xf] }
  0xbc   :  { %2736 = vmatpush.bf16.msra.mxu0 %v4421_v0 }
  0xbd   :  { %2764 = vmatpush.bf16.msra.mxu2 %v4677_v11  ;;  %v6090_v11 = vld [vmem:[#allocation8 + $0x6ac] sm:$0xf0] }
  0xbe   :  { %2750 = vmatpush.bf16.msra.mxu1 %v4549_v4  ;;  %v6014_v4 = vld [vmem:[#allocation8 + $0x44c] sm:$0xf0]  ;;  %2776 = vmatpush.bf16.msra.mxu3 %v4837_v2 }
  0xbf   :  { %v4949_v5 = vor.u32 %v6014_v4, %v4948_v3  ;;  %v6038_v2 = vld [vmem:[#allocation8 + $0x50c] sm:$0xf0]  ;;  %v5412_v3 = vld [vmem:[#allocation8 + $0x7e0] sm:$0xf] }
  0xc0   :  { %2737 = vmatpush.bf16.msra.mxu0 %v4405_v15  ;;  %v945_v41 = vpop.f32.mrf.mxu0  ;;  %v4820_v15 = vld [vmem:[#allocation8 + $0x340] sm:$0xf]  ;;  %v6130_v4 = vld [vmem:[#allocation8 + $0x7ec] sm:$0xf0] }
  0xc1   :  { %v946_v48 = vadd.f32 %v945_v41, %v270_v35  ;;  %2765 = vmatpush.bf16.msra.mxu2 %v4661_v28  ;;  %v5413_v6 = vor.u32 %v6130_v4, %v5412_v3  ;;  %v4582_v4 = vld [vmem:[#allocation8 + $0x170] sm:$0xf0] }
  0xc2   :  { %2751 = vmatpush.bf16.msra.mxu1 %v4533_v18  ;;  %v959_v43 = vpop.f32.mrf.mxu1 }
  0xc3   :  { %v960_v0 = vadd.f32 %v959_v43, %v946_v48  ;;  %v5904_v43 = vld [vmem:[#allocation8 + $0xe4] sm:$0xf] }
  0xc4   :  { %2786 = vmatpush.bf16.msrb.mxu0 %v5029_v16  ;;  %v5982_v16 = vld [vmem:[#allocation8 + $0x34c] sm:$0xf0] }
  0xc5   :  { %v1160_v18 = vmax.f32 %v960_v0, 0.0  ;;  %2814 = vmatpush.bf16.msrb.mxu2 %v5285_v47  ;;  %v5924_v47 = vld [vmem:[#allocation8 + $0x184] sm:$0xf] }
  0xc6   :  { %2800 = vmatpush.bf16.msrb.mxu1 %v5157_v20  ;;  %v973_v59 = vpop.f32.mrf.mxu2  ;;  %v4821_v20 = vor.u32 %v5982_v16, %v4820_v15  ;;  %v5396_v15 = vld [vmem:[#allocation8 + $0x7c0] sm:$0xf]  ;;  %v6126_v16 = vld [vmem:[#allocation8 + $0x7cc] sm:$0xf0] }
  0xc7   :  { %v974_v9 = vadd.f32 %v973_v59, %v271_v55  ;;  %v5269_v59 = vor.u32 %v6094_v58, %v5268_v57  ;;  %v4438_v57 = vld [vmem:[#allocation8 + $0x50] sm:$0xf0] }
  0xc8   :  { %2787 = vmatpush.bf16.msrb.mxu0 %v5013_v26  ;;  %v987_v1 = vpop.f32.mrf.mxu3  ;;  %v947_v10 = vpop.f32.mrf.mxu0  ;;  %v5076_v26 = vld [vmem:[#allocation8 + $0x540] sm:$0xf]  ;;  %2777 = vmatpush.bf16.msra.mxu3 %v4821_v20  ;;  %v4630_v20 = vld [vmem:[#allocation8 + $0x1d0] sm:$0xf0] }
  0xc9   :  { %v948_v13 = vadd.f32 %v947_v10, %v270_v35  ;;  %v988_v27 = vadd.f32 %v987_v1, %v974_v9  ;;  %v5978_v35 = vld [vmem:[#allocation8 + $0x32c] sm:$0xf0]  ;;  %v5252_v9 = vld [vmem:[#allocation8 + $0x6a0] sm:$0xf]  ;;  %2815 = vmatpush.bf16.msrb.mxu2 %v5269_v59  ;;  %v4649_v10 = vor.u32 %v5936_v7, %v4646_v8  ;;  %v4633_v21 = vor.u32 %v5932_v17, %v4630_v20 }
  0xca   :  { %2801 = vmatpush.bf16.msrb.mxu1 %v5141_v29  ;;  %v961_v19 = vpop.f32.mrf.mxu1  ;;  %v6046_v29 = vld [vmem:[#allocation8 + $0x54c] sm:$0xf0]  ;;  %v5188_v8 = vld [vmem:[#allocation8 + $0x620] sm:$0xf] }
  0xcb   :  { %v962_v22 = vadd.f32 %v961_v19, %v948_v13  ;;  %v5077_v33 = vor.u32 %v6046_v29, %v5076_v26  ;;  %v1161_v45 = vmax.f32 %v988_v27, 0.0  ;;  %v4486_v13 = vld [vmem:[#allocation8 + $0xb0] sm:$0xf0]  ;;  %v5397_v19 = vor.u32 %v6126_v16, %v5396_v15  ;;  %v5380_v29 = vld [vmem:[#allocation8 + $0x7a0] sm:$0xf] }
  0xcc   :  { %2788 = vmatpush.bf16.msrb.mxu0 %v4997_v31  ;;  %v4470_v27 = vld [vmem:[#allocation8 + $0x90] sm:$0xf0]  ;;  %v5332_v17 = vld [vmem:[#allocation8 + $0x740] sm:$0xf] }
  0xcd   :  { %v1168_v31 = vmax.f32 %v962_v22, 0.0  ;;  %v5236_v22 = vld [vmem:[#allocation8 + $0x680] sm:$0xf]  ;;  %v4473_v28 = vor.u32 %v5892_v24, %v4470_v27 }
  0xce   :  { %2802 = vmatpush.bf16.msrb.mxu1 %v5125_v44  ;;  %v975_v32 = vpop.f32.mrf.mxu2  ;;  %v4518_v44 = vld [vmem:[#allocation8 + $0xf0] sm:$0xf0]  ;;  %v5172_v24 = vld [vmem:[#allocation8 + $0x600] sm:$0xf] }
  0xcf   :  { %v976_v36 = vadd.f32 %v975_v32, %v271_v55  ;;  %v6548_v41 = vpack.c.bf16 %v1168_v31, %v1160_v18  ;;  %v4521_v48 = vor.u32 %v5904_v43, %v4518_v44  ;;  %v4789_v55 = vor.u32 %v5974_v53, %v4788_v52  ;;  %v6122_v31 = vld [vmem:[#allocation8 + $0x7ac] sm:$0xf0]  ;;  %v5928_v32 = vld [vmem:[#allocation8 + $0x1a4] sm:$0xf]  ;;  %v5364_v44 = vld [vmem:[#allocation8 + $0x780] sm:$0xf] }
  0xd0   :  { %2789 = vmatpush.bf16.msrb.mxu0 %v4981_v38  ;;  %v989_v37 = vpop.f32.mrf.mxu3  ;;  %v4805_v38 = vor.u32 %v5978_v35, %v4804_v34  ;;  %v4489_v18 = vor.u32 %v5896_v12, %v4486_v13  ;;  %v5381_v34 = vor.u32 %v6122_v31, %v5380_v29  ;;  %v4614_v35 = vld [vmem:[#allocation8 + $0x1b0] sm:$0xf0]  ;;  %v4457_v43 = vor.u32 %v5888_v40, %v4454_v63  ;;  %v5968_v31 = vld [vmem:[#allocation8 + $0x2e4] sm:$0xf]  ;;  %v6106_v40 = vld [vmem:[#allocation8 + $0x72c] sm:$0xf0] }
  0xd1   :  { %v990_v46 = vadd.f32 %v989_v37, %v976_v36  ;;  %2738 = vmatmul.bf16.vlgmr.msra.gmra.mxu0 %v6548_v41  ;;  %v4617_v37 = vor.u32 %v5928_v32, %v4614_v35  ;;  %v273_v53 = vperm.slane %v6544_v30, 3  ;;  %v4406_v29 = vld [vmem:[#allocation8 + $0x10] sm:$0xf0] }
  0xd2   :  { %2803 = vmatpush.bf16.msrb.mxu1 %v5109_v60  ;;  %2778 = vmatpush.bf16.msra.mxu3 %v4805_v38  ;;  %v5900_v60 = vld [vmem:[#allocation8 + $0xc4] sm:$0xf]  ;;  %v5220_v38 = vld [vmem:[#allocation8 + $0x660] sm:$0xf]  ;;  %v4774_v35 = vld [vmem:[#allocation8 + $0x2f0] sm:$0xf0] }
  0xd3   :  { %v1169_v54 = vmax.f32 %v990_v46, 0.0  ;;  %v4505_v1 = vor.u32 %v5900_v60, %v4502_v61  ;;  %v5348_v60 = vld [vmem:[#allocation8 + $0x760] sm:$0xf]  ;;  %v6114_v61 = vld [vmem:[#allocation8 + $0x76c] sm:$0xf0] }
  0xd4   :  { %2790 = vmatpush.bf16.msrb.mxu0 %v4965_v51  ;;  %v5061_v51 = vor.u32 %v6042_v50, %v5060_v49  ;;  %v5204_v50 = vld [vmem:[#allocation8 + $0x640] sm:$0xf]  ;;  %v5349_v3 = vor.u32 %v6114_v61, %v5348_v60  ;;  %v4550_v63 = vld [vmem:[#allocation8 + $0x130] sm:$0xf0]  ;;  %v5960_v61 = vld [vmem:[#allocation8 + $0x2a4] sm:$0xf] }
  0xd5   :  { %v6551_v0 = vpack.c.bf16 %v1169_v54, %v1161_v45  ;;  %v6118_v45 = vld [vmem:[#allocation8 + $0x78c] sm:$0xf0] }
  0xd6   :  { %2804 = vmatpush.bf16.msrb.mxu1 %v5093_v14  ;;  %2779 = vmatpush.bf16.msra.mxu3 %v4789_v55  ;;  %v5253_v14 = vor.u32 %v6090_v11, %v5252_v9  ;;  %v5365_v46 = vor.u32 %v6118_v45, %v5364_v44  ;;  %v5884_v55 = vld [vmem:[#allocation8 + $0x44] sm:$0xf]  ;;  %v6074_v9 = vld [vmem:[#allocation8 + $0x62c] sm:$0xf0] }
  0xd7   :  { %2752 = vmatmul.bf16.vlgmr.msra.gmra.mxu1 %v6551_v0  ;;  %v4441_v59 = vor.u32 %v5884_v55, %v4438_v57  ;;  %v5189_v13 = vor.u32 %v6074_v9, %v5188_v8  ;;  %v6000_v57 = vld [vmem:[#allocation8 + $0x3e4] sm:$0xf]  ;;  %v4870_v9 = vld [vmem:[#allocation8 + $0x3b0] sm:$0xf0] }
  0xd8   :  { %2791 = vmatpush.bf16.msrb.mxu0 %v4949_v5  ;;  %v5045_v5 = vor.u32 %v6038_v2, %v5044_v62  ;;  %2816 = vmatpush.bf16.msrb.mxu2 %v5253_v14  ;;  %v5920_v62 = vld [vmem:[#allocation8 + $0x164] sm:$0xf]  ;;  %v4422_v14 = vld [vmem:[#allocation8 + $0x30] sm:$0xf0] }
  0xd9   :  { %v4585_v7 = vor.u32 %v5920_v62, %v4582_v4  ;;  %v4742_v62 = vld [vmem:[#allocation8 + $0x2b0] sm:$0xf0]  ;;  %v5992_v8 = vld [vmem:[#allocation8 + $0x3a4] sm:$0xf] }
  0xda   :  { %2805 = vmatpush.bf16.msrb.mxu1 %v5077_v33  ;;  %2828 = vmatpush.bf16.msrb.mxu3 %v5413_v6 }
  0xdc   :  { %2792 = vmatpush.bf16.msrb.mxu0 %v4933_v23  ;;  %v6086_v23 = vld [vmem:[#allocation8 + $0x68c] sm:$0xf0] }
  0xdd   :  { %v5237_v26 = vor.u32 %v6086_v23, %v5236_v22 }
  0xde   :  { %2806 = vmatpush.bf16.msrb.mxu1 %v5061_v51  ;;  %2829 = vmatpush.bf16.msrb.mxu3 %v5397_v19  ;;  %v6078_v51 = vld [vmem:[#allocation8 + $0x64c] sm:$0xf0]  ;;  %v5916_v19 = vld [vmem:[#allocation8 + $0x144] sm:$0xf] }
  0xdf   :  { %2817 = vmatpush.bf16.msrb.mxu2 %v5237_v26  ;;  %v5205_v54 = vor.u32 %v6078_v51, %v5204_v50  ;;  %v6102_v50 = vld [vmem:[#allocation8 + $0x70c] sm:$0xf0] }
  0xe0   :  { %2793 = vmatpush.bf16.msrb.mxu0 %v4917_v42  ;;  %v1001_v33 = vpop.f32.mrf.mxu0  ;;  %v5221_v42 = vor.u32 %v6082_v39, %v5220_v38  ;;  %v4777_v38 = vor.u32 %v5968_v31, %v4774_v35  ;;  %v5316_v39 = vld [vmem:[#allocation8 + $0x720] sm:$0xf]  ;;  %v4678_v35 = vld [vmem:[#allocation8 + $0x230] sm:$0xf0] }
  0xe1   :  { %v1002_v56 = vadd.f32 %v1001_v33, %v272_v25 }
  0xe2   :  { %2807 = vmatpush.bf16.msrb.mxu1 %v5045_v5  ;;  %v1015_v36 = vpop.f32.mrf.mxu1  ;;  %2830 = vmatpush.bf16.msrb.mxu3 %v5381_v34 }
  0xe3   :  { %2818 = vmatpush.bf16.msrb.mxu2 %v5221_v42  ;;  %v1016_v52 = vadd.f32 %v1015_v36, %v1002_v56  ;;  %v5912_v56 = vld [vmem:[#allocation8 + $0x124] sm:$0xf]  ;;  %v5317_v42 = vor.u32 %v6106_v40, %v5316_v39 }
  0xe4   :  { %2842 = vmatpush.bf16.msra.mxu0 %v4521_v48  ;;  %v4598_v48 = vld [vmem:[#allocation8 + $0x190] sm:$0xf0]  ;;  %v4553_v45 = vor.u32 %v5912_v56, %v4550_v63  ;;  %v5980_v40 = vld [vmem:[#allocation8 + $0x344] sm:$0xf] }
  0xe5   :  { %v4601_v49 = vor.u32 %v5924_v47, %v4598_v48  ;;  %v1162_v11 = vmax.f32 %v1016_v52, 0.0  ;;  %v4758_v47 = vld [vmem:[#allocation8 + $0x2d0] sm:$0xf0]  ;;  %v5908_v52 = vld [vmem:[#allocation8 + $0x104] sm:$0xf] }
  0xe6   :  { %2856 = vmatpush.bf16.msra.mxu1 %v4649_v10  ;;  %2831 = vmatpush.bf16.msrb.mxu3 %v5365_v46  ;;  %v1029_v58 = vpop.f32.mrf.mxu2  ;;  %v5880_v10 = vld [vmem:[#allocation8 + $0x24] sm:$0xf]  ;;  %v4822_v56 = vld [vmem:[#allocation8 + $0x350] sm:$0xf0] }
  0xe7   :  { %2819 = vmatpush.bf16.msrb.mxu2 %v5205_v54  ;;  %v1030_v12 = vadd.f32 %v1029_v58, %v273_v53  ;;  %v4425_v16 = vor.u32 %v5880_v10, %v4422_v14  ;;  %v5964_v46 = vld [vmem:[#allocation8 + $0x2c4] sm:$0xf]  ;;  %v4902_v58 = vld [vmem:[#allocation8 + $0x3f0] sm:$0xf0]  ;;  %v274_v10 = vperm.slane %v6544_v30, 4 }
  0xe8   :  { %2843 = vmatpush.bf16.msra.mxu0 %v4505_v1  ;;  %v1003_v1 = vpop.f32.mrf.mxu0  ;;  %v1043_v2 = vpop.f32.mrf.mxu3  ;;  %v4761_v48 = vor.u32 %v5964_v46, %v4758_v47  ;;  %v4905_v60 = vor.u32 %v6000_v57, %v4902_v58  ;;  %v4710_v14 = vld [vmem:[#allocation8 + $0x270] sm:$0xf0]  ;;  %v5940_v46 = vld [vmem:[#allocation8 + $0x204] sm:$0xf] }
  0xe9   :  { %v1004_v5 = vadd.f32 %v1003_v1, %v272_v25  ;;  %v6070_v25 = vld [vmem:[#allocation8 + $0x60c] sm:$0xf0]  ;;  %v1044_v26 = vadd.f32 %v1043_v2, %v1030_v12  ;;  %v4745_v1 = vor.u32 %v5960_v61, %v4742_v62  ;;  %v5996_v2 = vld [vmem:[#allocation8 + $0x3c4] sm:$0xf]  ;;  %v4873_v12 = vor.u32 %v5992_v8, %v4870_v9  ;;  %v4662_v47 = vld [vmem:[#allocation8 + $0x210] sm:$0xf0] }
  0xea   :  { %2857 = vmatpush.bf16.msra.mxu1 %v4633_v21  ;;  %v1017_v6 = vpop.f32.mrf.mxu1  ;;  %2832 = vmatpush.bf16.msrb.mxu3 %v5349_v3  ;;  %v4566_v21 = vld [vmem:[#allocation8 + $0x150] sm:$0xf0]  ;;  %v5173_v27 = vor.u32 %v6070_v25, %v5172_v24  ;;  %v275_v24 = vperm.slane %v6544_v30, 5  ;;  %v5984_v25 = vld [vmem:[#allocation8 + $0x364] sm:$0xf] }
  0xeb   :  { %v1018_v15 = vadd.f32 %v1017_v6, %v1004_v5  ;;  %2820 = vmatpush.bf16.msrb.mxu2 %v5189_v13  ;;  %v4569_v23 = vor.u32 %v5916_v19, %v4566_v21  ;;  %v4886_v3 = vld [vmem:[#allocation8 + $0x3d0] sm:$0xf0]  ;;  %v5956_v5 = vld [vmem:[#allocation8 + $0x284] sm:$0xf] }
  0xec   :  { %2844 = vmatpush.bf16.msra.mxu0 %v4489_v18  ;;  %v6110_v18 = vld [vmem:[#allocation8 + $0x74c] sm:$0xf0]  ;;  %v4889_v4 = vor.u32 %v5996_v2, %v4886_v3  ;;  %v4726_v6 = vld [vmem:[#allocation8 + $0x290] sm:$0xf0]  ;;  %v5952_v13 = vld [vmem:[#allocation8 + $0x264] sm:$0xf] }
  0xed   :  { %v5333_v20 = vor.u32 %v6110_v18, %v5332_v17  ;;  %v1170_v22 = vmax.f32 %v1018_v15, 0.0  ;;  %v5988_v17 = vld [vmem:[#allocation8 + $0x384] sm:$0xf]  ;;  %v4854_v18 = vld [vmem:[#allocation8 + $0x390] sm:$0xf0] }
  0xee   :  { %2858 = vmatpush.bf16.msra.mxu1 %v4617_v37  ;;  %v1031_v33 = vpop.f32.mrf.mxu2  ;;  %v5948_v21 = vld [vmem:[#allocation8 + $0x244] sm:$0xf]  ;;  %v4806_v58 = vld [vmem:[#allocation8 + $0x330] sm:$0xf0] }
  0xef   :  { %2833 = vmatpush.bf16.msrb.mxu3 %v5333_v20  ;;  %v6556_v32 = vpack.c.bf16 %v1170_v22, %v1162_v11  ;;  %v1032_v36 = vadd.f32 %v1031_v33, %v273_v53  ;;  %2821 = vmatpush.bf16.msrb.mxu2 %v5173_v27  ;;  %v4534_v53 = vld [vmem:[#allocation8 + $0x110] sm:$0xf0]  ;;  %v4857_v20 = vor.u32 %v5988_v17, %v4854_v18  ;;  %v5976_v57 = vld [vmem:[#allocation8 + $0x324] sm:$0xf] }
  0xf0   :  { %2845 = vmatpush.bf16.msra.mxu0 %v4473_v28  ;;  %v5876_v28 = vld [vmem:[#allocation8 + $0x4] sm:$0xf]  ;;  %v1045_v37 = vpop.f32.mrf.mxu3  ;;  %v4537_v55 = vor.u32 %v5908_v52, %v4534_v53  ;;  %v4694_v22 = vld [vmem:[#allocation8 + $0x250] sm:$0xf0]  ;;  %v4809_v62 = vor.u32 %v5976_v57, %v4806_v58 }
  0xf1   :  { %v4409_v34 = vor.u32 %v5876_v28, %v4406_v29  ;;  %2766 = vmatmul.bf16.vlgmr.msra.gmra.mxu2 %v6556_v32  ;;  %v1046_v44 = vadd.f32 %v1045_v37, %v1032_v36  ;;  %v6028_v52 = vld [vmem:[#allocation8 + $0x4c4] sm:$0xf]  ;;  %v5158_v2 = vld [vmem:[#allocation8 + $0x5f0] sm:$0xf0] }
  0xf2   :  { %2859 = vmatpush.bf16.msra.mxu1 %v4601_v49  ;;  %v5300_v49 = vld [vmem:[#allocation8 + $0x700] sm:$0xf]  ;;  %v6024_v8 = vld [vmem:[#allocation8 + $0x4a4] sm:$0xf]  ;;  %v4998_v9 = vld [vmem:[#allocation8 + $0x4b0] sm:$0xf0] }
  0xf3   :  { %2870 = vmatpush.bf16.msra.mxu2 %v4777_v38  ;;  %v1171_v51 = vmax.f32 %v1046_v44, 0.0  ;;  %2834 = vmatpush.bf16.msrb.mxu3 %v5317_v42  ;;  %v5301_v54 = vor.u32 %v6102_v50, %v5300_v49  ;;  %v5030_v44 = vld [vmem:[#allocation8 + $0x4f0] sm:$0xf0]  ;;  %v4665_v49 = vor.u32 %v5940_v46, %v4662_v47  ;;  %v6020_v17 = vld [vmem:[#allocation8 + $0x484] sm:$0xf] }
  0xf4   :  { %2846 = vmatpush.bf16.msra.mxu0 %v4457_v43  ;;  %v1163_v43 = vmax.f32 %v1044_v26, 0.0  ;;  %v4838_v26 = vld [vmem:[#allocation8 + $0x370] sm:$0xf0]  ;;  %v6096_v57 = vld [vmem:[#allocation8 + $0x6e4] sm:$0xf] }
  0xf5   :  { %v4841_v33 = vor.u32 %v5984_v25, %v4838_v26  ;;  %v4982_v18 = vld [vmem:[#allocation8 + $0x490] sm:$0xf0] }
  0xf6   :  { %2860 = vmatpush.bf16.msra.mxu1 %v4585_v7  ;;  %v4729_v7 = vor.u32 %v5956_v5, %v4726_v6  ;;  %v5972_v6 = vld [vmem:[#allocation8 + $0x304] sm:$0xf] }
  0xf7   :  { %2871 = vmatpush.bf16.msra.mxu2 %v4761_v48  ;;  %2835 = vmatpush.bf16.msrb.mxu3 %v5301_v54 }
  0xf8   :  { %2847 = vmatpush.bf16.msra.mxu0 %v4441_v59  ;;  %v6559_v59 = vpack.c.bf16 %v1171_v51, %v1163_v43  ;;  %v6032_v43 = vld [vmem:[#allocation8 + $0x4e4] sm:$0xf] }
  0xf9   :  { %v5033_v51 = vor.u32 %v6032_v43, %v5030_v44  ;;  %v277_v43 = vperm.slane %v6544_v30, 7 }
  0xfa   :  { %2861 = vmatpush.bf16.msra.mxu1 %v4569_v23  ;;  %2780 = vmatmul.bf16.vlgmr.msra.gmra.mxu3 %v6559_v59  ;;  %v4697_v23 = vor.u32 %v5948_v21, %v4694_v22  ;;  %v6056_v21 = vld [vmem:[#allocation8 + $0x5a4] sm:$0xf]  ;;  %v5126_v22 = vld [vmem:[#allocation8 + $0x5b0] sm:$0xf0] }
  0xfb   :  { %2884 = vmatpush.bf16.msra.mxu3 %v4905_v60  ;;  %2872 = vmatpush.bf16.msra.mxu2 %v4745_v1  ;;  %v6064_v1 = vld [vmem:[#allocation8 + $0x5e4] sm:$0xf]  ;;  %v5129_v26 = vor.u32 %v6056_v21, %v5126_v22  ;;  %v5046_v21 = vld [vmem:[#allocation8 + $0x510] sm:$0xf0] }
  0xfc   :  { %2848 = vmatpush.bf16.msra.mxu0 %v4425_v16  ;;  %v4713_v16 = vor.u32 %v5952_v13, %v4710_v14  ;;  %v5001_v14 = vor.u32 %v6024_v8, %v4998_v9  ;;  %v6092_v9 = vld [vmem:[#allocation8 + $0x6c4] sm:$0xf] }
  0xfd   :  { %v6128_v22 = vld [vmem:[#allocation8 + $0x7e4] sm:$0xf] }
  0xfe   :  { %2862 = vmatpush.bf16.msra.mxu1 %v4553_v45  ;;  %v4825_v45 = vor.u32 %v5980_v40, %v4822_v56  ;;  %v5094_v40 = vld [vmem:[#allocation8 + $0x570] sm:$0xf0]  ;;  %v6008_v56 = vld [vmem:[#allocation8 + $0x424] sm:$0xf] }
  0xff   :  { %2885 = vmatpush.bf16.msra.mxu3 %v4889_v4  ;;  %2873 = vmatpush.bf16.msra.mxu2 %v4729_v7  ;;  %v4790_v7 = vld [vmem:[#allocation8 + $0x310] sm:$0xf0] }
 0x100   :  { %2849 = vmatpush.bf16.msra.mxu0 %v4409_v34  ;;  %v1057_v11 = vpop.f32.mrf.mxu0  ;;  %v5944_v34 = vld [vmem:[#allocation8 + $0x224] sm:$0xf] }
 0x101   :  { %v1058_v19 = vadd.f32 %v1057_v11, %v274_v10  ;;  %v4681_v38 = vor.u32 %v5944_v34, %v4678_v35  ;;  %v4793_v11 = vor.u32 %v5972_v6, %v4790_v7  ;;  %v6012_v34 = vld [vmem:[#allocation8 + $0x444] sm:$0xf]  ;;  %v4950_v35 = vld [vmem:[#allocation8 + $0x450] sm:$0xf0] }
 0x102   :  { %2863 = vmatpush.bf16.msra.mxu1 %v4537_v55  ;;  %v1071_v15 = vpop.f32.mrf.mxu1  ;;  %v5014_v55 = vld [vmem:[#allocation8 + $0x4d0] sm:$0xf0] }
 0x103   :  { %2886 = vmatpush.bf16.msra.mxu3 %v4873_v12  ;;  %2874 = vmatpush.bf16.msra.mxu2 %v4713_v16  ;;  %v1072_v27 = vadd.f32 %v1071_v15, %v1058_v19  ;;  %v5017_v5 = vor.u32 %v6028_v52, %v5014_v55  ;;  %v5161_v12 = vor.u32 %v6064_v1, %v5158_v2  ;;  %v6060_v15 = vld [vmem:[#allocation8 + $0x5c4] sm:$0xf]  ;;  %v5142_v16 = vld [vmem:[#allocation8 + $0x5d0] sm:$0xf0] }
 0x104   :  { %v5145_v19 = vor.u32 %v6060_v15, %v5142_v16  ;;  %v4918_v55 = vld [vmem:[#allocation8 + $0x410] sm:$0xf0]  ;;  %v5903_v15 = vld [vmem:[#allocation8 + $0xd4] sm:$0xf0] }
 0x105   :  { %v1164_v42 = vmax.f32 %v1072_v27, 0.0  ;;  %v276_v27 = vperm.slane %v6544_v30, 6  ;;  %v5907_v30 = vld [vmem:[#allocation8 + $0xf4] sm:$0xf0]  ;;  %v5062_v6 = vld [vmem:[#allocation8 + $0x530] sm:$0xf0] }
 0x106   :  { %v1085_v28 = vpop.f32.mrf.mxu2 }
 0x107   :  { %2887 = vmatpush.bf16.msra.mxu3 %v4857_v20  ;;  %2875 = vmatpush.bf16.msra.mxu2 %v4697_v23  ;;  %v1086_v39 = vadd.f32 %v1085_v28, %v275_v24  ;;  %v4985_v20 = vor.u32 %v6020_v17, %v4982_v18  ;;  %v6016_v23 = vld [vmem:[#allocation8 + $0x464] sm:$0xf] }
 0x108   :  { %v1059_v29 = vpop.f32.mrf.mxu0  ;;  %v1099_v31 = vpop.f32.mrf.mxu3 }
 0x109   :  { %v1060_v36 = vadd.f32 %v1059_v29, %v274_v10  ;;  %v1100_v50 = vadd.f32 %v1099_v31, %v1086_v39  ;;  %v6052_v31 = vld [vmem:[#allocation8 + $0x584] sm:$0xf] }
 0x10a   :  { %v1073_v37 = vpop.f32.mrf.mxu1  ;;  %v6048_v39 = vld [vmem:[#allocation8 + $0x564] sm:$0xf] }
 0x10b   :  { %v1074_v63 = vadd.f32 %v1073_v37, %v1060_v36  ;;  %2888 = vmatpush.bf16.msra.mxu3 %v4841_v33  ;;  %2876 = vmatpush.bf16.msra.mxu2 %v4681_v38  ;;  %v1165_v3 = vmax.f32 %v1100_v50, 0.0  ;;  %v5110_v33 = vld [vmem:[#allocation8 + $0x590] sm:$0xf0]  ;;  %v4953_v38 = vor.u32 %v6012_v34, %v4950_v35  ;;  %v5097_v46 = vor.u32 %v6048_v39, %v5094_v40  ;;  %v6044_v50 = vld [vmem:[#allocation8 + $0x544] sm:$0xf] }
 0x10c   :  { %v5113_v36 = vor.u32 %v6052_v31, %v5110_v33  ;;  %v5254_v31 = vld [vmem:[#allocation8 + $0x6b0] sm:$0xf0]  ;;  %v4492_v33 = vld [vmem:[#allocation8 + $0xa8] sm:$0xf]  ;;  %v5899_v34 = vld [vmem:[#allocation8 + $0xb4] sm:$0xf0] }
 0x10d   :  { %v1172_v48 = vmax.f32 %v1074_v63, 0.0  ;;  %v6124_v40 = vld [vmem:[#allocation8 + $0x7c4] sm:$0xf] }
 0x10e   :  { %v1087_v54 = vpop.f32.mrf.mxu2 }
 0x10f   :  { %v6564_v53 = vpack.c.bf16 %v1172_v48, %v1164_v42  ;;  %v1088_v60 = vadd.f32 %v1087_v54, %v275_v24  ;;  %2889 = vmatpush.bf16.msra.mxu3 %v4825_v45  ;;  %2877 = vmatpush.bf16.msra.mxu2 %v4665_v49  ;;  %v4966_v24 = vld [vmem:[#allocation8 + $0x470] sm:$0xf0]  ;;  %v6004_v54 = vld [vmem:[#allocation8 + $0x404] sm:$0xf] }
 0x110   :  { %v1101_v61 = vpop.f32.mrf.mxu3  ;;  %v4969_v29 = vor.u32 %v6016_v23, %v4966_v24  ;;  %v4934_v42 = vld [vmem:[#allocation8 + $0x430] sm:$0xf0] }
 0x111   :  { %2794 = vmatmul.bf16.vlgmr.msrb.gmra.mxu0 %v6564_v53  ;;  %v1102_v4 = vadd.f32 %v1101_v61, %v1088_v60  ;;  %v4937_v49 = vor.u32 %v6008_v56, %v4934_v42  ;;  %v5286_v60 = vld [vmem:[#allocation8 + $0x6f0] sm:$0xf0]  ;;  %v4524_v61 = vld [vmem:[#allocation8 + $0xe8] sm:$0xf] }
 0x112   :  { %2898 = vmatpush.bf16.msrb.mxu0 %v5033_v51  ;;  %v5078_v51 = vld [vmem:[#allocation8 + $0x550] sm:$0xf0]  ;;  %v5289_v7 = vor.u32 %v6096_v57, %v5286_v60  ;;  %v4525_v8 = vor.u32 %v5907_v30, %v4524_v61  ;;  %v5931_v60 = vld [vmem:[#allocation8 + $0x1b4] sm:$0xf0]  ;;  %v4460_v61 = vld [vmem:[#allocation8 + $0x68] sm:$0xf] }
 0x113   :  { %v1173_v10 = vmax.f32 %v1102_v4, 0.0  ;;  %2890 = vmatpush.bf16.msra.mxu3 %v4809_v62  ;;  %v5081_v1 = vor.u32 %v6044_v50, %v5078_v51  ;;  %v4921_v4 = vor.u32 %v6004_v54, %v4918_v55  ;;  %v5414_v23 = vld [vmem:[#allocation8 + $0x7f0] sm:$0xf0]  ;;  %v5891_v30 = vld [vmem:[#allocation8 + $0x74] sm:$0xf0] }
 0x114   :  { %v5398_v56 = vld [vmem:[#allocation8 + $0x7d0] sm:$0xf0] }
 0x115   :  { %v6567_v13 = vpack.c.bf16 %v1173_v10, %v1165_v3  ;;  %v5401_v50 = vor.u32 %v6124_v40, %v5398_v56  ;;  %v5382_v57 = vld [vmem:[#allocation8 + $0x7b0] sm:$0xf0]  ;;  %v5879_v40 = vld [vmem:[#allocation8 + $0x14] sm:$0xf0] }
 0x116   :  { %2899 = vmatpush.bf16.msrb.mxu0 %v5017_v5  ;;  %v6040_v5 = vld [vmem:[#allocation8 + $0x524] sm:$0xf]  ;;  %v5174_v56 = vld [vmem:[#allocation8 + $0x610] sm:$0xf0] }
 0x117   :  { %2808 = vmatmul.bf16.vlgmr.msrb.gmra.mxu1 %v6567_v13  ;;  %2891 = vmatpush.bf16.msra.mxu3 %v4793_v11  ;;  %v5065_v18 = vor.u32 %v6040_v5, %v5062_v6  ;;  %v4461_v5 = vor.u32 %v5891_v30, %v4460_v61  ;;  %v5366_v6 = vld [vmem:[#allocation8 + $0x790] sm:$0xf0]  ;;  %v6031_v61 = vld [vmem:[#allocation8 + $0x4d4] sm:$0xf0] }
 0x118   :  { %2912 = vmatpush.bf16.msrb.mxu1 %v5161_v12  ;;  %v5270_v12 = vld [vmem:[#allocation8 + $0x6d0] sm:$0xf0] }
 0x11a   :  { %2900 = vmatpush.bf16.msrb.mxu0 %v5001_v14  ;;  %v4508_v14 = vld [vmem:[#allocation8 + $0xc8] sm:$0xf] }
 0x11c   :  { %2913 = vmatpush.bf16.msrb.mxu1 %v5145_v19  ;;  %v6036_v19 = vld [vmem:[#allocation8 + $0x504] sm:$0xf] }
 0x11e   :  { %2901 = vmatpush.bf16.msrb.mxu0 %v4985_v20 }
 0x120   :  { %v1113_v25 = vpop.f32.mrf.mxu0  ;;  %2914 = vmatpush.bf16.msrb.mxu1 %v5129_v26  ;;  %v4509_v26 = vor.u32 %v5903_v15, %v4508_v14  ;;  %v6076_v14 = vld [vmem:[#allocation8 + $0x644] sm:$0xf]  ;;  %v5206_v15 = vld [vmem:[#allocation8 + $0x650] sm:$0xf0] }
 0x121   :  { %2850 = vmatmul.bf16.vlgmr.msra.gmra.mxu0 %v6548_v41  ;;  %v1114_v37 = vadd.f32 %v1113_v25, %v276_v27  ;;  %v5273_v25 = vor.u32 %v6092_v9, %v5270_v12  ;;  %v5887_v12 = vld [vmem:[#allocation8 + $0x54] sm:$0xf0] }
 0x122   :  { %v1127_v28 = vpop.f32.mrf.mxu1  ;;  %2902 = vmatpush.bf16.msrb.mxu0 %v4969_v29  ;;  %v6088_v29 = vld [vmem:[#allocation8 + $0x6a4] sm:$0xf] }
 0x123   :  { %v1128_v47 = vadd.f32 %v1127_v28, %v1114_v37  ;;  %v5939_v28 = vld [vmem:[#allocation8 + $0x1f4] sm:$0xf0]  ;;  %v5049_v37 = vor.u32 %v6036_v19, %v5046_v21  ;;  %v4588_v21 = vld [vmem:[#allocation8 + $0x168] sm:$0xf] }
 0x124   :  { %2915 = vmatpush.bf16.msrb.mxu1 %v5113_v36 }
 0x125   :  { %v1166_v2 = vmax.f32 %v1128_v47, 0.0  ;;  %v5238_v47 = vld [vmem:[#allocation8 + $0x690] sm:$0xf0] }
 0x126   :  { %v1141_v63 = vpop.f32.mrf.mxu2  ;;  %2903 = vmatpush.bf16.msrb.mxu0 %v4953_v38  ;;  %v5417_v38 = vor.u32 %v6128_v22, %v5414_v23  ;;  %v5923_v22 = vld [vmem:[#allocation8 + $0x174] sm:$0xf0]  ;;  %v5209_v23 = vor.u32 %v6076_v14, %v5206_v15  ;;  %v5004_v14 = vld [vmem:[#allocation8 + $0x4a8] sm:$0xf] }
 0x127   :  { %2864 = vmatmul.bf16.vlgmr.msra.gmra.mxu1 %v6551_v0  ;;  %v1142_v62 = vadd.f32 %v1141_v63, %v277_v43  ;;  %v5257_v63 = vor.u32 %v6088_v29, %v5254_v31  ;;  %v4589_v29 = vor.u32 %v5923_v22, %v4588_v21  ;;  %v6108_v31 = vld [vmem:[#allocation8 + $0x744] sm:$0xf]  ;;  %v6027_v15 = vld [vmem:[#allocation8 + $0x4b4] sm:$0xf0]  ;;  %v4892_v22 = vld [vmem:[#allocation8 + $0x3c8] sm:$0xf] }
 0x128   :  { %v1155_v44 = vpop.f32.mrf.mxu3  ;;  %v1115_v45 = vpop.f32.mrf.mxu0  ;;  %2916 = vmatpush.bf16.msrb.mxu1 %v5097_v46  ;;  %v6084_v46 = vld [vmem:[#allocation8 + $0x684] sm:$0xf] }
 0x129   :  { %v1116_v48 = vadd.f32 %v1115_v45, %v276_v27  ;;  %v1156_v16 = vadd.f32 %v1155_v44, %v1142_v62  ;;  %v4652_v27 = vld [vmem:[#allocation8 + $0x1e8] sm:$0xf]  ;;  %v5935_v45 = vld [vmem:[#allocation8 + $0x1d4] sm:$0xf0]  ;;  %v5241_v54 = vor.u32 %v6084_v46, %v5238_v47  ;;  %v6080_v62 = vld [vmem:[#allocation8 + $0x664] sm:$0xf] }
 0x12a   :  { %v1129_v52 = vpop.f32.mrf.mxu1  ;;  %2904 = vmatpush.bf16.msrb.mxu0 %v4937_v49  ;;  %v4653_v39 = vor.u32 %v5939_v28, %v4652_v27  ;;  %v4636_v44 = vld [vmem:[#allocation8 + $0x1c8] sm:$0xf]  ;;  %v5895_v49 = vld [vmem:[#allocation8 + $0x94] sm:$0xf0]  ;;  %v5190_v27 = vld [vmem:[#allocation8 + $0x630] sm:$0xf0] }
 0x12b   :  { %v1130_v58 = vadd.f32 %v1129_v52, %v1116_v48  ;;  %v1167_v35 = vmax.f32 %v1156_v16, 0.0  ;;  %v4476_v48 = vld [vmem:[#allocation8 + $0x88] sm:$0xf]  ;;  %v4637_v51 = vor.u32 %v5935_v45, %v4636_v44  ;;  %v6120_v52 = vld [vmem:[#allocation8 + $0x7a4] sm:$0xf] }
 0x12c   :  { %2917 = vmatpush.bf16.msrb.mxu1 %v5081_v1  ;;  %v4477_v55 = vor.u32 %v5895_v49, %v4476_v48  ;;  %v5222_v1 = vld [vmem:[#allocation8 + $0x670] sm:$0xf0]  ;;  %v4780_v46 = vld [vmem:[#allocation8 + $0x2e8] sm:$0xf]  ;;  %v5971_v47 = vld [vmem:[#allocation8 + $0x2f4] sm:$0xf0] }
 0x12d   :  { %v1174_v3 = vmax.f32 %v1130_v58, 0.0  ;;  %v4620_v58 = vld [vmem:[#allocation8 + $0x1a8] sm:$0xf]  ;;  %v5225_v9 = vor.u32 %v6080_v62, %v5222_v1  ;;  %v6104_v48 = vld [vmem:[#allocation8 + $0x724] sm:$0xf] }
 0x12e   :  { %v1143_v11 = vpop.f32.mrf.mxu2  ;;  %2905 = vmatpush.bf16.msrb.mxu0 %v4921_v4  ;;  %v6116_v4 = vld [vmem:[#allocation8 + $0x784] sm:$0xf]  ;;  %v5967_v1 = vld [vmem:[#allocation8 + $0x2d4] sm:$0xf0] }
 0x12f   :  { %v6574_v10 = vpack.c.bf16 %v1174_v3, %v1166_v2  ;;  %v1144_v17 = vadd.f32 %v1143_v11, %v277_v43  ;;  %v4493_v43 = vor.u32 %v5899_v34, %v4492_v33  ;;  %v5385_v2 = vor.u32 %v6120_v52, %v5382_v57  ;;  %v4444_v11 = vld [vmem:[#allocation8 + $0x48] sm:$0xf]  ;;  %v5334_v34 = vld [vmem:[#allocation8 + $0x750] sm:$0xf0]  ;;  %v5915_v52 = vld [vmem:[#allocation8 + $0x134] sm:$0xf0] }
 0x130   :  { %v1157_v20 = vpop.f32.mrf.mxu3  ;;  %2918 = vmatpush.bf16.msrb.mxu1 %v5065_v18  ;;  %v4621_v3 = vor.u32 %v5931_v60, %v4620_v58  ;;  %v5369_v16 = vor.u32 %v6116_v4, %v5366_v6  ;;  %v6112_v18 = vld [vmem:[#allocation8 + $0x764] sm:$0xf]  ;;  %v4445_v19 = vor.u32 %v5887_v12, %v4444_v11  ;;  %v5337_v44 = vor.u32 %v6108_v31, %v5334_v34  ;;  %v4764_v58 = vld [vmem:[#allocation8 + $0x2c8] sm:$0xf]  ;;  %v6067_v11 = vld [vmem:[#allocation8 + $0x5f4] sm:$0xf0] }
 0x131   :  { %2822 = vmatmul.bf16.vlgmr.msrb.gmra.mxu2 %v6574_v10  ;;  %v1158_v24 = vadd.f32 %v1157_v20, %v1144_v17  ;;  %2906 = vmatmul.bf16.vlgmr.msrb.gmra.mxu0 %v6564_v53  ;;  %v5350_v20 = vld [vmem:[#allocation8 + $0x770] sm:$0xf0]  ;;  %v4781_v57 = vor.u32 %v5971_v47, %v4780_v46  ;;  %v5020_v60 = vld [vmem:[#allocation8 + $0x4c8] sm:$0xf]  ;;  %v4765_v12 = vor.u32 %v5967_v1, %v4764_v58 }
 0x132   :  { %2926 = vmatpush.bf16.msrb.mxu2 %v5289_v7  ;;  %2954 = vmatpush.bf16.msra.mxu0 %v4525_v8  ;;  %v4604_v7 = vld [vmem:[#allocation8 + $0x188] sm:$0xf]  ;;  %v5927_v8 = vld [vmem:[#allocation8 + $0x194] sm:$0xf0]  ;;  %v5353_v28 = vor.u32 %v6112_v18, %v5350_v20 }
 0x133   :  { %v1175_v36 = vmax.f32 %v1158_v24, 0.0  ;;  %v4605_v17 = vor.u32 %v5927_v8, %v4604_v7  ;;  %v4428_v24 = vld [vmem:[#allocation8 + $0x28] sm:$0xf]  ;;  %v5021_v7 = vor.u32 %v6031_v61, %v5020_v60  ;;  %v6003_v8 = vld [vmem:[#allocation8 + $0x3f4] sm:$0xf0] }
 0x134   :  { %2919 = vmatpush.bf16.msrb.mxu1 %v5049_v37  ;;  %v4540_v4 = vld [vmem:[#allocation8 + $0x108] sm:$0xf]  ;;  %v5951_v60 = vld [vmem:[#allocation8 + $0x254] sm:$0xf0] }
 0x135   :  { %v6578_v42 = vpack.c.bf16 %v1175_v36, %v1167_v35  ;;  %v4572_v35 = vld [vmem:[#allocation8 + $0x148] sm:$0xf]  ;;  %v5919_v36 = vld [vmem:[#allocation8 + $0x154] sm:$0xf0] }
 0x136   :  { %2927 = vmatpush.bf16.msrb.mxu2 %v5273_v25  ;;  %2955 = vmatpush.bf16.msra.mxu0 %v4509_v26  ;;  %v5883_v25 = vld [vmem:[#allocation8 + $0x34] sm:$0xf0]  ;;  %v6072_v26 = vld [vmem:[#allocation8 + $0x624] sm:$0xf]  ;;  %v4573_v45 = vor.u32 %v5919_v36, %v4572_v35  ;;  %v4908_v6 = vld [vmem:[#allocation8 + $0x3e8] sm:$0xf] }
 0x137   :  { %2836 = vmatmul.bf16.vlgmr.msrb.gmra.mxu3 %v6578_v42  ;;  %2920 = vmatmul.bf16.vlgmr.msrb.gmra.mxu1 %v6567_v13  ;;  %v4429_v33 = vor.u32 %v5883_v25, %v4428_v24  ;;  %v5193_v37 = vor.u32 %v6072_v26, %v5190_v27  ;;  %v4748_v18 = vld [vmem:[#allocation8 + $0x2a8] sm:$0xf]  ;;  %v4909_v20 = vor.u32 %v6003_v8, %v4908_v6  ;;  %v5999_v24 = vld [vmem:[#allocation8 + $0x3d4] sm:$0xf0] }
 0x138   :  { %2940 = vmatpush.bf16.msrb.mxu3 %v5417_v38  ;;  %2968 = vmatpush.bf16.msra.mxu1 %v4653_v39  ;;  %v6068_v38 = vld [vmem:[#allocation8 + $0x604] sm:$0xf]  ;;  %v4412_v39 = vld [vmem:[#allocation8 + $0x8] sm:$0xf]  ;;  %v6063_v26 = vld [vmem:[#allocation8 + $0x5d4] sm:$0xf0]  ;;  %v4893_v34 = vor.u32 %v5999_v24, %v4892_v22 }
 0x139   :  { %v4413_v49 = vor.u32 %v5879_v40, %v4412_v39  ;;  %v5148_v25 = vld [vmem:[#allocation8 + $0x5c8] sm:$0xf]  ;;  %v6059_v40 = vld [vmem:[#allocation8 + $0x5b4] sm:$0xf0]  ;;  %v5905_v24 = vld [vmem:[#allocation8 + $0xec] sm:$0xf] }
 0x13a   :  { %2928 = vmatpush.bf16.msrb.mxu2 %v5257_v63  ;;  %2956 = vmatpush.bf16.msra.mxu0 %v4493_v43  ;;  %v5036_v63 = vld [vmem:[#allocation8 + $0x4e8] sm:$0xf]  ;;  %v6035_v43 = vld [vmem:[#allocation8 + $0x4f4] sm:$0xf0]  ;;  %v5149_v35 = vor.u32 %v6063_v26, %v5148_v25  ;;  %v4526_v25 = vld [vmem:[#allocation8 + $0xf8] sm:$0xf0] }
 0x13b   :  { %v4732_v31 = vld [vmem:[#allocation8 + $0x288] sm:$0xf]  ;;  %v6007_v22 = vld [vmem:[#allocation8 + $0x414] sm:$0xf0] }
 0x13c   :  { %2941 = vmatpush.bf16.msrb.mxu3 %v5401_v50  ;;  %2969 = vmatpush.bf16.msra.mxu1 %v4637_v51  ;;  %v5318_v50 = vld [vmem:[#allocation8 + $0x730] sm:$0xf0]  ;;  %v4556_v51 = vld [vmem:[#allocation8 + $0x128] sm:$0xf] }
 0x13d   :  { %v5321_v30 = vor.u32 %v6104_v48, %v5318_v50  ;;  %v4557_v62 = vor.u32 %v5915_v52, %v4556_v51  ;;  %v4876_v36 = vld [vmem:[#allocation8 + $0x3a8] sm:$0xf]  ;;  %v5991_v50 = vld [vmem:[#allocation8 + $0x394] sm:$0xf0] }
 0x13e   :  { %2929 = vmatpush.bf16.msrb.mxu2 %v5241_v54  ;;  %2957 = vmatpush.bf16.msra.mxu0 %v4477_v55  ;;  %v5177_v54 = vor.u32 %v6068_v38, %v5174_v56  ;;  %v5037_v55 = vor.u32 %v6035_v43, %v5036_v63  ;;  %v5995_v38 = vld [vmem:[#allocation8 + $0x3b4] sm:$0xf0]  ;;  %v5132_v39 = vld [vmem:[#allocation8 + $0x5a8] sm:$0xf] }
 0x13f   :  { %v4972_v63 = vld [vmem:[#allocation8 + $0x468] sm:$0xf]  ;;  %v6019_v43 = vld [vmem:[#allocation8 + $0x474] sm:$0xf0]  ;;  %v4877_v46 = vor.u32 %v5995_v38, %v4876_v36  ;;  %v5133_v47 = vor.u32 %v6059_v40, %v5132_v39  ;;  %v4529_v38 = vor.u32 %v5905_v24, %v4526_v25  ;;  %v4462_v24 = vld [vmem:[#allocation8 + $0x78] sm:$0xf0] }
 0x140   :  { %2942 = vmatpush.bf16.msrb.mxu3 %v5385_v2  ;;  %2970 = vmatpush.bf16.msra.mxu1 %v4621_v3  ;;  %v6100_v2 = vld [vmem:[#allocation8 + $0x704] sm:$0xf]  ;;  %v5302_v3 = vld [vmem:[#allocation8 + $0x710] sm:$0xf0]  ;;  %v4860_v48 = vld [vmem:[#allocation8 + $0x388] sm:$0xf] }
 0x141   :  { %2878 = vmatmul.bf16.vlgmr.msra.gmra.mxu2 %v6556_v32  ;;  %v5116_v51 = vld [vmem:[#allocation8 + $0x588] sm:$0xf]  ;;  %v6055_v52 = vld [vmem:[#allocation8 + $0x594] sm:$0xf0]  ;;  %v4861_v61 = vor.u32 %v5991_v50, %v4860_v48 }
 0x142   :  { %2958 = vmatpush.bf16.msra.mxu0 %v4461_v5  ;;  %2930 = vmatpush.bf16.msrb.mxu2 %v5225_v9  ;;  %v5911_v5 = vld [vmem:[#allocation8 + $0x114] sm:$0xf0]  ;;  %v5164_v9 = vld [vmem:[#allocation8 + $0x5e8] sm:$0xf] }
 0x143   :  { %v5165_v21 = vor.u32 %v6067_v11, %v5164_v9  ;;  %v4700_v58 = vld [vmem:[#allocation8 + $0x248] sm:$0xf]  ;;  %v5947_v9 = vld [vmem:[#allocation8 + $0x234] sm:$0xf0] }
 0x144   :  { %2943 = vmatpush.bf16.msrb.mxu3 %v5369_v16  ;;  %2971 = vmatpush.bf16.msra.mxu1 %v4605_v17  ;;  %v5305_v16 = vor.u32 %v6100_v2, %v5302_v3  ;;  %v4541_v17 = vor.u32 %v5911_v5, %v4540_v4  ;;  %v5987_v2 = vld [vmem:[#allocation8 + $0x374] sm:$0xf0]  ;;  %v5100_v3 = vld [vmem:[#allocation8 + $0x568] sm:$0xf]  ;;  %v4701_v5 = vor.u32 %v5951_v60, %v4700_v58  ;;  %v5897_v58 = vld [vmem:[#allocation8 + $0xac] sm:$0xf] }
 0x145   :  { %v6051_v4 = vld [vmem:[#allocation8 + $0x574] sm:$0xf0]  ;;  %v4940_v6 = vld [vmem:[#allocation8 + $0x428] sm:$0xf]  ;;  %v4494_v60 = vld [vmem:[#allocation8 + $0xb8] sm:$0xf0] }
 0x146   :  { %2959 = vmatpush.bf16.msra.mxu0 %v4445_v19  ;;  %2931 = vmatpush.bf16.msrb.mxu2 %v5209_v23  ;;  %v5963_v19 = vld [vmem:[#allocation8 + $0x2b4] sm:$0xf0]  ;;  %v5005_v23 = vor.u32 %v6027_v15, %v5004_v14  ;;  %v4684_v8 = vld [vmem:[#allocation8 + $0x228] sm:$0xf] }
 0x147   :  { %2892 = vmatmul.bf16.vlgmr.msra.gmra.mxu3 %v6559_v59  ;;  %v4749_v27 = vor.u32 %v5963_v19, %v4748_v18  ;;  %v4828_v14 = vld [vmem:[#allocation8 + $0x348] sm:$0xf]  ;;  %v6047_v18 = vld [vmem:[#allocation8 + $0x554] sm:$0xf0]  ;;  %v4685_v19 = vor.u32 %v5947_v9, %v4684_v8  ;;  %v4638_v8 = vld [vmem:[#allocation8 + $0x1d8] sm:$0xf0] }
 0x148   :  { %2944 = vmatpush.bf16.msrb.mxu3 %v5353_v28  ;;  %2972 = vmatpush.bf16.msra.mxu1 %v4589_v29  ;;  %v4988_v28 = vld [vmem:[#allocation8 + $0x488] sm:$0xf]  ;;  %v6023_v29 = vld [vmem:[#allocation8 + $0x494] sm:$0xf0]  ;;  %v5893_v9 = vld [vmem:[#allocation8 + $0x8c] sm:$0xf] }
 0x149   :  { %v6043_v36 = vld [vmem:[#allocation8 + $0x534] sm:$0xf0]  ;;  %v5276_v40 = vld [vmem:[#allocation8 + $0x6c8] sm:$0xf] }
 0x14a   :  { %2960 = vmatpush.bf16.msra.mxu0 %v4429_v33  ;;  %2932 = vmatpush.bf16.msrb.mxu2 %v5193_v37  ;;  %v5959_v33 = vld [vmem:[#allocation8 + $0x294] sm:$0xf0]  ;;  %v4989_v37 = vor.u32 %v6023_v29, %v4988_v28  ;;  %v5292_v28 = vld [vmem:[#allocation8 + $0x6e8] sm:$0xf] }
 0x14b   :  { %v4733_v56 = vor.u32 %v5959_v33, %v4732_v31  ;;  %v6099_v29 = vld [vmem:[#allocation8 + $0x6f4] sm:$0xf0]  ;;  %v4812_v31 = vld [vmem:[#allocation8 + $0x328] sm:$0xf] }
 0x14c   :  { %2945 = vmatpush.bf16.msrb.mxu3 %v5337_v44  ;;  %2973 = vmatpush.bf16.msra.mxu1 %v4573_v45  ;;  %v4716_v44 = vld [vmem:[#allocation8 + $0x268] sm:$0xf]  ;;  %v5955_v45 = vld [vmem:[#allocation8 + $0x274] sm:$0xf0]  ;;  %v5293_v39 = vor.u32 %v6099_v29, %v5292_v28 }
 0x14d   :  { %v5052_v48 = vld [vmem:[#allocation8 + $0x508] sm:$0xf]  ;;  %v6083_v29 = vld [vmem:[#allocation8 + $0x674] sm:$0xf0] }
 0x14e   :  { %2961 = vmatpush.bf16.msra.mxu0 %v4413_v49  ;;  %2933 = vmatpush.bf16.msrb.mxu2 %v5177_v54  ;;  %v4973_v49 = vor.u32 %v6019_v43, %v4972_v63  ;;  %v4717_v54 = vor.u32 %v5955_v45, %v4716_v44  ;;  %v4510_v63 = vld [vmem:[#allocation8 + $0xd8] sm:$0xf0]  ;;  %v6095_v45 = vld [vmem:[#allocation8 + $0x6d4] sm:$0xf0]  ;;  %v5420_v50 = vld [vmem:[#allocation8 + $0x7e8] sm:$0xf] }
 0x14f   :  { %v5228_v28 = vld [vmem:[#allocation8 + $0x668] sm:$0xf] }
 0x150   :  { %2946 = vmatpush.bf16.msrb.mxu3 %v5321_v30  ;;  %2974 = vmatpush.bf16.msra.mxu1 %v4557_v62  ;;  %v5117_v30 = vor.u32 %v6055_v52, %v5116_v51  ;;  %v4844_v62 = vld [vmem:[#allocation8 + $0x368] sm:$0xf]  ;;  %v6131_v52 = vld [vmem:[#allocation8 + $0x7f4] sm:$0xf0] }
 0x151   :  { %2962 = vmatmul.bf16.vlgmr.msra.gmra.mxu0 %v6548_v41  ;;  %2934 = vmatmul.bf16.vlgmr.msrb.gmra.mxu2 %v6574_v10  ;;  %v4845_v11 = vor.u32 %v5987_v2, %v4844_v62  ;;  %v5421_v62 = vor.u32 %v6131_v52, %v5420_v50  ;;  %v5260_v2 = vld [vmem:[#allocation8 + $0x6a8] sm:$0xf]  ;;  %v4430_v50 = vld [vmem:[#allocation8 + $0x38] sm:$0xf0] }
 0x152   :  { %3010 = vmatpush.bf16.msrb.mxu0 %v5037_v55  ;;  %2982 = vmatpush.bf16.msra.mxu2 %v4781_v57  ;;  %v4956_v55 = vld [vmem:[#allocation8 + $0x448] sm:$0xf]  ;;  %v6015_v57 = vld [vmem:[#allocation8 + $0x454] sm:$0xf0] }
 0x153   :  { %v4957_v1 = vor.u32 %v6015_v57, %v4956_v55  ;;  %v4654_v55 = vld [vmem:[#allocation8 + $0x1f8] sm:$0xf0]  ;;  %v5277_v57 = vor.u32 %v6095_v45, %v5276_v40 }
 0x154   :  { %2947 = vmatpush.bf16.msrb.mxu3 %v5305_v16  ;;  %2975 = vmatpush.bf16.msra.mxu1 %v4541_v17  ;;  %v5983_v16 = vld [vmem:[#allocation8 + $0x354] sm:$0xf0]  ;;  %v5084_v17 = vld [vmem:[#allocation8 + $0x548] sm:$0xf] }
 0x155   :  { %v4829_v26 = vor.u32 %v5983_v16, %v4828_v14  ;;  %v5244_v16 = vld [vmem:[#allocation8 + $0x688] sm:$0xf] }
 0x156   :  { %3011 = vmatpush.bf16.msrb.mxu0 %v5021_v7  ;;  %2983 = vmatpush.bf16.msra.mxu2 %v4765_v12  ;;  %v6011_v7 = vld [vmem:[#allocation8 + $0x434] sm:$0xf0]  ;;  %v5101_v12 = vor.u32 %v6051_v4, %v5100_v3  ;;  %v5404_v4 = vld [vmem:[#allocation8 + $0x7c8] sm:$0xf] }
 0x157   :  { %2976 = vmatmul.bf16.vlgmr.msra.gmra.mxu1 %v6551_v0  ;;  %2948 = vmatmul.bf16.vlgmr.msrb.gmra.mxu3 %v6578_v42  ;;  %v4941_v15 = vor.u32 %v6011_v7, %v4940_v6  ;;  %v6091_v3 = vld [vmem:[#allocation8 + $0x6b4] sm:$0xf0]  ;;  %v5933_v7 = vld [vmem:[#allocation8 + $0x1cc] sm:$0xf] }
 0x158   :  { %2996 = vmatpush.bf16.msra.mxu3 %v4909_v20  ;;  %3024 = vmatpush.bf16.msrb.mxu1 %v5165_v21  ;;  %v4668_v20 = vld [vmem:[#allocation8 + $0x208] sm:$0xf]  ;;  %v6127_v6 = vld [vmem:[#allocation8 + $0x7d4] sm:$0xf0] }
 0x159   :  { %v4924_v21 = vld [vmem:[#allocation8 + $0x408] sm:$0xf]  ;;  %v5405_v14 = vor.u32 %v6127_v6, %v5404_v4  ;;  %v6033_v4 = vld [vmem:[#allocation8 + $0x4ec] sm:$0xf] }
 0x15a   :  { %3012 = vmatpush.bf16.msrb.mxu0 %v5005_v23  ;;  %2984 = vmatpush.bf16.msra.mxu2 %v4749_v27  ;;  %v5943_v23 = vld [vmem:[#allocation8 + $0x214] sm:$0xf0]  ;;  %v5085_v27 = vor.u32 %v6047_v18, %v5084_v17  ;;  %v4925_v33 = vor.u32 %v6007_v22, %v4924_v21  ;;  %v5388_v18 = vld [vmem:[#allocation8 + $0x7a8] sm:$0xf]  ;;  %v5929_v21 = vld [vmem:[#allocation8 + $0x1ac] sm:$0xf] }
 0x15b   :  { %v6087_v17 = vld [vmem:[#allocation8 + $0x694] sm:$0xf0]  ;;  %v4622_v22 = vld [vmem:[#allocation8 + $0x1b8] sm:$0xf0] }
 0x15c   :  { %2997 = vmatpush.bf16.msra.mxu3 %v4893_v34  ;;  %3025 = vmatpush.bf16.msrb.mxu1 %v5149_v35  ;;  %v5979_v34 = vld [vmem:[#allocation8 + $0x334] sm:$0xf0]  ;;  %v5068_v35 = vld [vmem:[#allocation8 + $0x528] sm:$0xf]  ;;  %v5245_v25 = vor.u32 %v6087_v17, %v5244_v16 }
 0x15d   :  { %v4813_v43 = vor.u32 %v5979_v34, %v4812_v31  ;;  %v5069_v44 = vor.u32 %v6043_v36, %v5068_v35  ;;  %v5372_v31 = vld [vmem:[#allocation8 + $0x788] sm:$0xf]  ;;  %v6119_v34 = vld [vmem:[#allocation8 + $0x794] sm:$0xf0]  ;;  %v5925_v35 = vld [vmem:[#allocation8 + $0x18c] sm:$0xf] }
 0x15e   :  { %3013 = vmatpush.bf16.msrb.mxu0 %v4989_v37  ;;  %2985 = vmatpush.bf16.msra.mxu2 %v4733_v56  ;;  %v4669_v37 = vor.u32 %v5943_v23, %v4668_v20  ;;  %v5901_v56 = vld [vmem:[#allocation8 + $0xcc] sm:$0xf]  ;;  %v6123_v20 = vld [vmem:[#allocation8 + $0x7b4] sm:$0xf0]  ;;  %v4606_v36 = vld [vmem:[#allocation8 + $0x198] sm:$0xf0]  ;;  %v5373_v40 = vor.u32 %v6119_v34, %v5372_v31 }
 0x15f   :  { %v4513_v51 = vor.u32 %v5901_v56, %v4510_v63  ;;  %v5889_v23 = vld [vmem:[#allocation8 + $0x6c] sm:$0xf]  ;;  %v4609_v56 = vor.u32 %v5925_v35, %v4606_v36  ;;  %v5212_v63 = vld [vmem:[#allocation8 + $0x648] sm:$0xf]  ;;  %v6107_v16 = vld [vmem:[#allocation8 + $0x734] sm:$0xf0] }
 0x160   :  { %2998 = vmatpush.bf16.msra.mxu3 %v4877_v46  ;;  %3026 = vmatpush.bf16.msrb.mxu1 %v5133_v47  ;;  %v4796_v46 = vld [vmem:[#allocation8 + $0x308] sm:$0xf]  ;;  %v5975_v47 = vld [vmem:[#allocation8 + $0x314] sm:$0xf0]  ;;  %v5909_v31 = vld [vmem:[#allocation8 + $0x10c] sm:$0xf] }
 0x161   :  { %v6001_v35 = vld [vmem:[#allocation8 + $0x3ec] sm:$0xf]  ;;  %v4910_v36 = vld [vmem:[#allocation8 + $0x3f8] sm:$0xf0] }
 0x162   :  { %3014 = vmatpush.bf16.msrb.mxu0 %v4973_v49  ;;  %2986 = vmatpush.bf16.msra.mxu2 %v4717_v54  ;;  %v6039_v49 = vld [vmem:[#allocation8 + $0x514] sm:$0xf0]  ;;  %v5937_v54 = vld [vmem:[#allocation8 + $0x1ec] sm:$0xf] }
 0x164   :  { %2999 = vmatpush.bf16.msra.mxu3 %v4861_v61  ;;  %3027 = vmatpush.bf16.msrb.mxu1 %v5117_v30  ;;  %v4797_v61 = vor.u32 %v5975_v47, %v4796_v46  ;;  %v5053_v30 = vor.u32 %v6039_v49, %v5052_v48  ;;  %v6115_v46 = vld [vmem:[#allocation8 + $0x774] sm:$0xf0]  ;;  %v5921_v47 = vld [vmem:[#allocation8 + $0x16c] sm:$0xf]  ;;  %v4590_v48 = vld [vmem:[#allocation8 + $0x178] sm:$0xf0] }
 0x165   :  { %v5881_v49 = vld [vmem:[#allocation8 + $0x2c] sm:$0xf] }
 0x166   :  { %3015 = vmatpush.bf16.msrb.mxu0 %v4957_v1  ;;  %2987 = vmatpush.bf16.msra.mxu2 %v4701_v5  ;;  %v4657_v1 = vor.u32 %v5937_v54, %v4654_v55  ;;  %v4497_v5 = vor.u32 %v5897_v58, %v4494_v60  ;;  %v4593_v54 = vor.u32 %v5921_v47, %v4590_v48  ;;  %v5196_v55 = vld [vmem:[#allocation8 + $0x628] sm:$0xf] }
 0x167   :  { %v5340_v58 = vld [vmem:[#allocation8 + $0x748] sm:$0xf]  ;;  %v4433_v60 = vor.u32 %v5881_v49, %v4430_v50  ;;  %v5997_v49 = vld [vmem:[#allocation8 + $0x3cc] sm:$0xf]  ;;  %v4894_v50 = vld [vmem:[#allocation8 + $0x3d8] sm:$0xf0] }
 0x168   :  { %3000 = vmatpush.bf16.msra.mxu3 %v4845_v11  ;;  %3028 = vmatpush.bf16.msrb.mxu1 %v5101_v12  ;;  %v4478_v11 = vld [vmem:[#allocation8 + $0x98] sm:$0xf0]  ;;  %v5261_v12 = vor.u32 %v6091_v3, %v5260_v2 }
 0x169   :  { %v4414_v2 = vld [vmem:[#allocation8 + $0x18] sm:$0xf0] }
 0x16a   :  { %3016 = vmatpush.bf16.msrb.mxu0 %v4941_v15  ;;  %2988 = vmatpush.bf16.msra.mxu2 %v4685_v19  ;;  %v4641_v15 = vor.u32 %v5933_v7, %v4638_v8  ;;  %v4481_v19 = vor.u32 %v5893_v9, %v4478_v11  ;;  %v5180_v8 = vld [vmem:[#allocation8 + $0x608] sm:$0xf]  ;;  %v6071_v9 = vld [vmem:[#allocation8 + $0x614] sm:$0xf0]  ;;  %v5969_v11 = vld [vmem:[#allocation8 + $0x2ec] sm:$0xf] }
 0x16c   :  { %3001 = vmatpush.bf16.msra.mxu3 %v4829_v26  ;;  %3029 = vmatpush.bf16.msrb.mxu1 %v5085_v27  ;;  %v5389_v26 = vor.u32 %v6123_v20, %v5388_v18  ;;  %v4625_v27 = vor.u32 %v5929_v21, %v4622_v22  ;;  %v5913_v18 = vld [vmem:[#allocation8 + $0x12c] sm:$0xf]  ;;  %v5181_v20 = vor.u32 %v6071_v9, %v5180_v8  ;;  %v5022_v22 = vld [vmem:[#allocation8 + $0x4d8] sm:$0xf0] }
 0x16d   :  { %v6029_v21 = vld [vmem:[#allocation8 + $0x4cc] sm:$0xf]  ;;  %v4718_v9 = vld [vmem:[#allocation8 + $0x278] sm:$0xf0] }
 0x16e   :  { %3017 = vmatpush.bf16.msrb.mxu0 %v4925_v33  ;;  %2989 = vmatpush.bf16.msra.mxu2 %v4669_v37  ;;  %v4465_v33 = vor.u32 %v5889_v23, %v4462_v24  ;;  %v5885_v37 = vld [vmem:[#allocation8 + $0x4c] sm:$0xf]  ;;  %v5025_v34 = vor.u32 %v6029_v21, %v5022_v22  ;;  %v6596_v21 = vpop.f32.mrf.mxu0 }
 0x16f   :  { %v5953_v8 = vld [vmem:[#allocation8 + $0x26c] sm:$0xf] }
 0x170   :  { %3002 = vmatpush.bf16.msra.mxu3 %v4813_v43  ;;  %3030 = vmatpush.bf16.msrb.mxu1 %v5069_v44  ;;  %v6079_v43 = vld [vmem:[#allocation8 + $0x654] sm:$0xf0]  ;;  %v5356_v44 = vld [vmem:[#allocation8 + $0x768] sm:$0xf]  ;;  %v5949_v22 = vld [vmem:[#allocation8 + $0x24c] sm:$0xf] }
 0x171   :  { %2990 = vmatmul.bf16.vlgmr.msra.gmra.mxu2 %v6556_v32  ;;  %3018 = vmatmul.bf16.vlgmr.msrb.gmra.mxu0 %v6564_v53  ;;  %v5357_v52 = vor.u32 %v6115_v46, %v5356_v44  ;;  %v4913_v44 = vor.u32 %v6001_v35, %v4910_v36  ;;  %v4750_v46 = vld [vmem:[#allocation8 + $0x2b8] sm:$0xf0]  ;;  %v6598_v35 = vpop.f32.mrf.mxu1 }
 0x172   :  { %3066 = vmatpush.bf16.msra.mxu0 %v4529_v38  ;;  %3038 = vmatpush.bf16.msrb.mxu2 %v5293_v39  ;;  %v4446_v38 = vld [vmem:[#allocation8 + $0x58] sm:$0xf0]  ;;  %v5229_v39 = vor.u32 %v6083_v29, %v5228_v28  ;;  %v6103_v29 = vld [vmem:[#allocation8 + $0x714] sm:$0xf0] }
 0x173   :  { %v4449_v45 = vor.u32 %v5885_v37, %v4446_v38  ;;  %v6065_v37 = vld [vmem:[#allocation8 + $0x5ec] sm:$0xf]  ;;  %v5166_v38 = vld [vmem:[#allocation8 + $0x5f8] sm:$0xf0] }
 0x174   :  { %3003 = vmatpush.bf16.msra.mxu3 %v4797_v61  ;;  %3031 = vmatpush.bf16.msrb.mxu1 %v5053_v30  ;;  %v6111_v61 = vld [vmem:[#allocation8 + $0x754] sm:$0xf0]  ;;  %v5917_v30 = vld [vmem:[#allocation8 + $0x14c] sm:$0xf]  ;;  %v5169_v47 = vor.u32 %v6065_v37, %v5166_v38  ;;  %v4686_v38 = vld [vmem:[#allocation8 + $0x238] sm:$0xf0] }
 0x175   :  { %v5341_v6 = vor.u32 %v6111_v61, %v5340_v58  ;;  %v5957_v58 = vld [vmem:[#allocation8 + $0x28c] sm:$0xf] }
 0x176   :  { %3067 = vmatpush.bf16.msra.mxu0 %v4513_v51  ;;  %3039 = vmatpush.bf16.msrb.mxu2 %v5277_v57  ;;  %v5213_v51 = vor.u32 %v6079_v43, %v5212_v63  ;;  %v6075_v57 = vld [vmem:[#allocation8 + $0x634] sm:$0xf0]  ;;  %v5945_v37 = vld [vmem:[#allocation8 + $0x22c] sm:$0xf] }
 0x177   :  { %3004 = vmatmul.bf16.vlgmr.msra.gmra.mxu3 %v6559_v59  ;;  %3032 = vmatmul.bf16.vlgmr.msrb.gmra.mxu1 %v6567_v13  ;;  %v5197_v3 = vor.u32 %v6075_v57, %v5196_v55  ;;  %v4990_v55 = vld [vmem:[#allocation8 + $0x498] sm:$0xf0] }
 0x178   :  { %3052 = vmatpush.bf16.msrb.mxu3 %v5421_v62  ;;  %3080 = vmatpush.bf16.msra.mxu1 %v4657_v1  ;;  %v4574_v62 = vld [vmem:[#allocation8 + $0x158] sm:$0xf0]  ;;  %v5877_v1 = vld [vmem:[#allocation8 + $0xc] sm:$0xf] }
 0x179   :  { %v4577_v7 = vor.u32 %v5917_v30, %v4574_v62  ;;  %v5993_v62 = vld [vmem:[#allocation8 + $0x3ac] sm:$0xf] }
 0x17a   :  { %3068 = vmatpush.bf16.msra.mxu0 %v4497_v5  ;;  %3040 = vmatpush.bf16.msrb.mxu2 %v5261_v12  ;;  %v5038_v5 = vld [vmem:[#allocation8 + $0x4f8] sm:$0xf0]  ;;  %v4417_v12 = vor.u32 %v5877_v1, %v4414_v2  ;;  %v6057_v2 = vld [vmem:[#allocation8 + $0x5ac] sm:$0xf] }
 0x17b   :  { %v5041_v17 = vor.u32 %v6033_v4, %v5038_v5  ;;  %v4878_v1 = vld [vmem:[#allocation8 + $0x3b8] sm:$0xf0]  ;;  %v6017_v4 = vld [vmem:[#allocation8 + $0x46c] sm:$0xf] }
 0x17c   :  { %3053 = vmatpush.bf16.msrb.mxu3 %v5405_v14  ;;  %3081 = vmatpush.bf16.msra.mxu1 %v4641_v15  ;;  %v4782_v14 = vld [vmem:[#allocation8 + $0x2f8] sm:$0xf0]  ;;  %v5324_v15 = vld [vmem:[#allocation8 + $0x728] sm:$0xf] }
 0x17d   :  { %v4785_v23 = vor.u32 %v5969_v11, %v4782_v14  ;;  %v5325_v24 = vor.u32 %v6107_v16, %v5324_v15  ;;  %v4974_v5 = vld [vmem:[#allocation8 + $0x478] sm:$0xf0]  ;;  %v5989_v14 = vld [vmem:[#allocation8 + $0x38c] sm:$0xf] }
 0x17e   :  { %3069 = vmatpush.bf16.msra.mxu0 %v4481_v19  ;;  %3041 = vmatpush.bf16.msrb.mxu2 %v5245_v25  ;;  %v4558_v19 = vld [vmem:[#allocation8 + $0x138] sm:$0xf0]  ;;  %v5965_v25 = vld [vmem:[#allocation8 + $0x2cc] sm:$0xf] }
 0x17f   :  { %v4561_v28 = vor.u32 %v5913_v18, %v4558_v19  ;;  %v4862_v15 = vld [vmem:[#allocation8 + $0x398] sm:$0xf0]  ;;  %v6053_v16 = vld [vmem:[#allocation8 + $0x58c] sm:$0xf] }
 0x180   :  { %3054 = vmatpush.bf16.msrb.mxu3 %v5389_v26  ;;  %3082 = vmatpush.bf16.msra.mxu1 %v4625_v27  ;;  %v4766_v26 = vld [vmem:[#allocation8 + $0x2d8] sm:$0xf0]  ;;  %v5308_v27 = vld [vmem:[#allocation8 + $0x708] sm:$0xf]  ;;  %v6013_v18 = vld [vmem:[#allocation8 + $0x44c] sm:$0xf] }
 0x181   :  { %v5309_v63 = vor.u32 %v6103_v29, %v5308_v27  ;;  %v4958_v19 = vld [vmem:[#allocation8 + $0x458] sm:$0xf0] }
 0x182   :  { %3070 = vmatpush.bf16.msra.mxu0 %v4465_v33  ;;  %3042 = vmatpush.bf16.msrb.mxu2 %v5229_v39  ;;  %v4542_v33 = vld [vmem:[#allocation8 + $0x118] sm:$0xf0]  ;;  %v6025_v39 = vld [vmem:[#allocation8 + $0x4ac] sm:$0xf] }
 0x183   :  { %v4545_v43 = vor.u32 %v5909_v31, %v4542_v33  ;;  %v4846_v27 = vld [vmem:[#allocation8 + $0x378] sm:$0xf0]  ;;  %v6009_v31 = vld [vmem:[#allocation8 + $0x42c] sm:$0xf] }
 0x184   :  { %3055 = vmatpush.bf16.msrb.mxu3 %v5373_v40  ;;  %3083 = vmatpush.bf16.msra.mxu1 %v4609_v56  ;;  %v5006_v40 = vld [vmem:[#allocation8 + $0x4b8] sm:$0xf0]  ;;  %v4769_v56 = vor.u32 %v5965_v25, %v4766_v26  ;;  %v4961_v25 = vor.u32 %v6013_v18, %v4958_v19  ;;  %v5985_v26 = vld [vmem:[#allocation8 + $0x36c] sm:$0xf] }
 0x185   :  { %v5009_v48 = vor.u32 %v6025_v39, %v5006_v40  ;;  %v5102_v29 = vld [vmem:[#allocation8 + $0x578] sm:$0xf0]  ;;  %v4849_v36 = vor.u32 %v5985_v26, %v4846_v27  ;;  %v6129_v19 = vld [vmem:[#allocation8 + $0x7ec] sm:$0xf]  ;;  %v6606_v27 = vld [vmem:[#allocation10] sm:$0xf] }
 0x186   :  { %3071 = vmatpush.bf16.msra.mxu0 %v4449_v45  ;;  %3043 = vmatpush.bf16.msrb.mxu2 %v5213_v51  ;;  %v5961_v45 = vld [vmem:[#allocation8 + $0x2ac] sm:$0xf]  ;;  %v4942_v33 = vld [vmem:[#allocation8 + $0x438] sm:$0xf0] }
 0x187   :  { %v6061_v51 = vld [vmem:[#allocation8 + $0x5cc] sm:$0xf]  ;;  %v4753_v57 = vor.u32 %v5961_v45, %v4750_v46  ;;  %v4945_v40 = vor.u32 %v6009_v31, %v4942_v33  ;;  %v4926_v46 = vld [vmem:[#allocation8 + $0x418] sm:$0xf0] }
 0x188   :  { %3056 = vmatpush.bf16.msrb.mxu3 %v5357_v52  ;;  %3084 = vmatpush.bf16.msra.mxu1 %v4593_v54  ;;  %v5150_v52 = vld [vmem:[#allocation8 + $0x5d8] sm:$0xf0]  ;;  %v6021_v54 = vld [vmem:[#allocation8 + $0x48c] sm:$0xf] }
 0x189   :  { %v5153_v61 = vor.u32 %v6061_v51, %v5150_v52  ;;  %v4993_v30 = vor.u32 %v6021_v54, %v4990_v55  ;;  %v6005_v45 = vld [vmem:[#allocation8 + $0x40c] sm:$0xf]  ;;  %v4670_v52 = vld [vmem:[#allocation8 + $0x218] sm:$0xf0] }
 0x18a   :  { %3072 = vmatpush.bf16.msra.mxu0 %v4433_v60  ;;  %3044 = vmatpush.bf16.msrb.mxu2 %v5197_v3  ;;  %v4734_v60 = vld [vmem:[#allocation8 + $0x298] sm:$0xf0]  ;;  %v5941_v51 = vld [vmem:[#allocation8 + $0x20c] sm:$0xf] }
 0x18b   :  { %v5134_v3 = vld [vmem:[#allocation8 + $0x5b8] sm:$0xf0]  ;;  %v6097_v54 = vld [vmem:[#allocation8 + $0x6ec] sm:$0xf] }
 0x18c   :  { %3057 = vmatpush.bf16.msrb.mxu3 %v5341_v6  ;;  %3085 = vmatpush.bf16.msra.mxu1 %v4577_v7  ;;  %v4737_v6 = vor.u32 %v5957_v58, %v4734_v60  ;;  %v4881_v7 = vor.u32 %v5993_v62, %v4878_v1  ;;  %v5137_v11 = vor.u32 %v6057_v2, %v5134_v3  ;;  %v5977_v58 = vld [vmem:[#allocation8 + $0x32c] sm:$0xf]  ;;  %v4814_v60 = vld [vmem:[#allocation8 + $0x338] sm:$0xf0] }
 0x18d   :  { %v6041_v1 = vld [vmem:[#allocation8 + $0x52c] sm:$0xf]  ;;  %v5070_v2 = vld [vmem:[#allocation8 + $0x538] sm:$0xf0]  ;;  %v4673_v3 = vor.u32 %v5941_v51, %v4670_v52 }
 0x18e   :  { %3073 = vmatpush.bf16.msra.mxu0 %v4417_v12  ;;  %3045 = vmatpush.bf16.msrb.mxu2 %v5181_v20  ;;  %v4977_v12 = vor.u32 %v6017_v4, %v4974_v5  ;;  %v4721_v20 = vor.u32 %v5953_v8, %v4718_v9  ;;  %v5476_v4 = vld [vmem:[#allocation11 + $0x60] sm:$0xf]  ;;  %v6145_v5 = vld [vmem:[#allocation11 + $0x64] sm:$0xf0]  ;;  %v5278_v9 = vld [vmem:[#allocation8 + $0x6d8] sm:$0xf0] }
 0x18f   :  { %v6093_v8 = vld [vmem:[#allocation8 + $0x6cc] sm:$0xf]  ;;  %v5477_v18 = vor.u32 %v6145_v5, %v5476_v4  ;;  %v5390_v52 = vld [vmem:[#allocation8 + $0x7b8] sm:$0xf0] }
 0x190   :  { %3058 = vmatpush.bf16.msrb.mxu3 %v5325_v24  ;;  %3086 = vmatpush.bf16.msra.mxu1 %v4561_v28  ;;  %v6049_v28 = vld [vmem:[#allocation8 + $0x56c] sm:$0xf] }
 0x191   :  { %3074 = vmatmul.bf16.vlgmr.msra.gmra.mxu0 %v6548_v41  ;;  %3046 = vmatmul.bf16.vlgmr.msrb.gmra.mxu2 %v6574_v10  ;;  %v4897_v41 = vor.u32 %v5997_v49, %v4894_v50  ;;  %v5105_v39 = vor.u32 %v6049_v28, %v5102_v29  ;;  %v6147_v49 = vld [vmem:[#allocation11 + $0x74] sm:$0xf0]  ;;  %v6608_v28 = vpop.f32.mrf.mxu3  ;;  %v6089_v33 = vld [vmem:[#allocation8 + $0x6ac] sm:$0xf] }
 0x192   :  { %3122 = vmatpush.bf16.msrb.mxu0 %v5041_v17  ;;  %3094 = vmatpush.bf16.msra.mxu2 %v4785_v23  ;;  %v5118_v17 = vld [vmem:[#allocation8 + $0x598] sm:$0xf0]  ;;  %v6121_v51 = vld [vmem:[#allocation8 + $0x7ac] sm:$0xf] }
 0x193   :  { %v4702_v23 = vld [vmem:[#allocation8 + $0x258] sm:$0xf0]  ;;  %v5121_v24 = vor.u32 %v6053_v16, %v5118_v17  ;;  %v6604_v17 = vpop.f32.mrf.mxu1  ;;  %v6117_v5 = vld [vmem:[#allocation8 + $0x78c] sm:$0xf] }
 0x194   :  { %3059 = vmatpush.bf16.msrb.mxu3 %v5309_v63  ;;  %3087 = vmatpush.bf16.msra.mxu1 %v4545_v43  ;;  %v4830_v63 = vld [vmem:[#allocation8 + $0x358] sm:$0xf0]  ;;  %v6045_v43 = vld [vmem:[#allocation8 + $0x54c] sm:$0xf] }
 0x195   :  { %v5054_v16 = vld [vmem:[#allocation8 + $0x518] sm:$0xf0] }
 0x196   :  { %3123 = vmatpush.bf16.msrb.mxu0 %v5025_v34  ;;  %3095 = vmatpush.bf16.msra.mxu2 %v4769_v56  ;;  %v4705_v34 = vor.u32 %v5949_v22, %v4702_v23  ;;  %v5981_v56 = vld [vmem:[#allocation8 + $0x34c] sm:$0xf]  ;;  %v6143_v22 = vld [vmem:[#allocation11 + $0x54] sm:$0xf0]  ;;  %v5548_v23 = vld [vmem:[#allocation11 + $0xf0] sm:$0xf] }
 0x197   :  { %3060 = vmatmul.bf16.vlgmr.msrb.gmra.mxu3 %v6578_v42  ;;  %3088 = vmatmul.bf16.vlgmr.msra.gmra.mxu1 %v6551_v0  ;;  %v4865_v0 = vor.u32 %v5989_v14, %v4862_v15  ;;  %v4833_v50 = vor.u32 %v5981_v56, %v4830_v63  ;;  %v4798_v14 = vld [vmem:[#allocation8 + $0x318] sm:$0xf0]  ;;  %v6037_v15 = vld [vmem:[#allocation8 + $0x50c] sm:$0xf] }
 0x198   :  { %3108 = vmatpush.bf16.msra.mxu3 %v4913_v44  ;;  %3136 = vmatpush.bf16.msrb.mxu1 %v5169_v47  ;;  %v5086_v44 = vld [vmem:[#allocation8 + $0x558] sm:$0xf0]  ;;  %v4689_v47 = vor.u32 %v5945_v37, %v4686_v38  ;;  %v5057_v29 = vor.u32 %v6037_v15, %v5054_v16  ;;  %v6125_v38 = vld [vmem:[#allocation8 + $0x7cc] sm:$0xf] }
 0x199   :  { %v5089_v55 = vor.u32 %v6045_v43, %v5086_v44  ;;  %v6141_v63 = vld [vmem:[#allocation11 + $0x44] sm:$0xf0]  ;;  %v5540_v43 = vld [vmem:[#allocation11 + $0xe0] sm:$0xf] }
 0x19a   :  { %3124 = vmatpush.bf16.msrb.mxu0 %v5009_v48  ;;  %3096 = vmatpush.bf16.msra.mxu2 %v4753_v57  ;;  %v5484_v48 = vld [vmem:[#allocation11 + $0x70] sm:$0xf]  ;;  %v4929_v57 = vor.u32 %v6005_v45, %v4926_v46  ;;  %v6161_v44 = vld [vmem:[#allocation11 + $0xe4] sm:$0xf0]  ;;  %v1442_v46 = vperm.slane %v6606_v27, 0 }
 0x19b   :  { %v5485_v62 = vor.u32 %v6147_v49, %v5484_v48  ;;  %v5246_v48 = vld [vmem:[#allocation8 + $0x698] sm:$0xf0]  ;;  %v6617_v49 = vpop.f32.mrf.mxu1 }
 0x19c   :  { %3109 = vmatpush.bf16.msra.mxu3 %v4897_v41  ;;  %3137 = vmatpush.bf16.msrb.mxu1 %v5153_v61  ;;  %v5294_v41 = vld [vmem:[#allocation8 + $0x6f8] sm:$0xf0]  ;;  %v6600_v61 = vpop.f32.mrf.mxu0 }
 0x19e   :  { %3125 = vmatpush.bf16.msrb.mxu0 %v4993_v30  ;;  %3097 = vmatpush.bf16.msra.mxu2 %v4737_v6  ;;  %v6602_v30 = vpop.f32.mrf.mxu2  ;;  %v5297_v6 = vor.u32 %v6097_v54, %v5294_v41  ;;  %v5452_v54 = vld [vmem:[#allocation11 + $0x30] sm:$0xf] }
 0x19f   :  { %v5532_v41 = vld [vmem:[#allocation11 + $0xd0] sm:$0xf] }
 0x1a0   :  { %3110 = vmatpush.bf16.msra.mxu3 %v4881_v7  ;;  %3138 = vmatpush.bf16.msrb.mxu1 %v5137_v11  ;;  %v4817_v7 = vor.u32 %v5977_v58, %v4814_v60  ;;  %v5973_v11 = vld [vmem:[#allocation8 + $0x30c] sm:$0xf]  ;;  %v6159_v58 = vld [vmem:[#allocation11 + $0xd4] sm:$0xf0] }
 0x1a1   :  { %v4801_v26 = vor.u32 %v5973_v11, %v4798_v14  ;;  %v5524_v11 = vld [vmem:[#allocation11 + $0xc0] sm:$0xf] }
 0x1a2   :  { %3126 = vmatpush.bf16.msrb.mxu0 %v4977_v12  ;;  %3098 = vmatpush.bf16.msra.mxu2 %v4721_v20  ;;  %v5073_v12 = vor.u32 %v6041_v1, %v5070_v2  ;;  %v5422_v20 = vld [vmem:[#allocation8 + $0x7f8] sm:$0xf0]  ;;  %v5393_v1 = vor.u32 %v6121_v51, %v5390_v52  ;;  %v6081_v2 = vld [vmem:[#allocation8 + $0x66c] sm:$0xf]  ;;  %v6146_v52 = vld [vmem:[#allocation11 + $0x74] sm:$0xf] }
 0x1a3   :  { %v5425_v31 = vor.u32 %v6129_v19, %v5422_v20  ;;  %v6077_v19 = vld [vmem:[#allocation8 + $0x64c] sm:$0xf]  ;;  %v5214_v20 = vld [vmem:[#allocation8 + $0x658] sm:$0xf0] }
 0x1a4   :  { %3111 = vmatpush.bf16.msra.mxu3 %v4865_v0  ;;  %3139 = vmatpush.bf16.msrb.mxu1 %v5121_v24  ;;  %v5468_v0 = vld [vmem:[#allocation11 + $0x50] sm:$0xf]  ;;  %v6163_v24 = vld [vmem:[#allocation11 + $0xf4] sm:$0xf0] }
 0x1a5   :  { %v5469_v37 = vor.u32 %v6143_v22, %v5468_v0  ;;  %v5549_v56 = vor.u32 %v6163_v24, %v5548_v23  ;;  %v6113_v22 = vld [vmem:[#allocation8 + $0x76c] sm:$0xf]  ;;  %v5358_v23 = vld [vmem:[#allocation8 + $0x778] sm:$0xf0]  ;;  %v5436_v24 = vld [vmem:[#allocation11 + $0x10] sm:$0xf] }
 0x1a6   :  { %3127 = vmatpush.bf16.msrb.mxu0 %v4961_v25  ;;  %3099 = vmatpush.bf16.msra.mxu2 %v4705_v34  ;;  %v5281_v25 = vor.u32 %v6093_v8, %v5278_v9  ;;  %v5262_v34 = vld [vmem:[#allocation8 + $0x6b8] sm:$0xf0]  ;;  %v6614_v45 = vpop.f32.mrf.mxu2  ;;  %v2783_v8 = vpop.f32.mrf.mxu3  ;;  %v6137_v9 = vld [vmem:[#allocation11 + $0x24] sm:$0xf0] }
 0x1a8   :  { %3112 = vmatpush.bf16.msra.mxu3 %v4849_v36  ;;  %3140 = vmatpush.bf16.msrb.mxu1 %v5105_v39  ;;  %v6611_v36 = vpop.f32.mrf.mxu0  ;;  %v5406_v39 = vld [vmem:[#allocation8 + $0x7d8] sm:$0xf0] }
 0x1aa   :  { %3128 = vmatpush.bf16.msrb.mxu0 %v4945_v40  ;;  %3100 = vmatpush.bf16.msra.mxu2 %v4689_v47  ;;  %v5460_v40 = vld [vmem:[#allocation11 + $0x40] sm:$0xf]  ;;  %v5409_v47 = vor.u32 %v6125_v38, %v5406_v39  ;;  %v5361_v38 = vor.u32 %v6113_v22, %v5358_v23  ;;  %v6073_v39 = vld [vmem:[#allocation8 + $0x62c] sm:$0xf]  ;;  %v5470_v23 = vld [vmem:[#allocation11 + $0x58] sm:$0xf0] }
 0x1ac   :  { %3113 = vmatpush.bf16.msra.mxu3 %v4833_v50  ;;  %3141 = vmatpush.bf16.msrb.mxu1 %v5089_v55  ;;  %v5461_v50 = vor.u32 %v6141_v63, %v5460_v40  ;;  %v5541_v55 = vor.u32 %v6161_v44, %v5540_v43  ;;  %v5198_v40 = vld [vmem:[#allocation8 + $0x638] sm:$0xf0]  ;;  %v6109_v43 = vld [vmem:[#allocation8 + $0x74c] sm:$0xf]  ;;  %v5428_v44 = vld [vmem:[#allocation11] sm:$0xf] }
 0x1ad   :  { %v5201_v51 = vor.u32 %v6073_v39, %v5198_v40  ;;  %v5462_v40 = vld [vmem:[#allocation11 + $0x48] sm:$0xf0] }
 0x1ae   :  { %3129 = vmatpush.bf16.msrb.mxu0 %v4929_v57  ;;  %3101 = vmatpush.bf16.msra.mxu2 %v4673_v3  ;;  %v6139_v57 = vld [vmem:[#allocation11 + $0x34] sm:$0xf0] }
 0x1af   :  { %v5230_v3 = vld [vmem:[#allocation8 + $0x678] sm:$0xf0]  ;;  %v5453_v4 = vor.u32 %v6139_v57, %v5452_v54  ;;  %v5486_v54 = vld [vmem:[#allocation11 + $0x78] sm:$0xf0]  ;;  %v6069_v57 = vld [vmem:[#allocation8 + $0x60c] sm:$0xf] }
 0x1b0   :  { %3114 = vmatpush.bf16.msra.mxu3 %v4817_v7  ;;  %3142 = vmatpush.bf16.msrb.mxu1 %v5073_v12  ;;  %v5444_v7 = vld [vmem:[#allocation11 + $0x20] sm:$0xf]  ;;  %v6157_v12 = vld [vmem:[#allocation11 + $0xc4] sm:$0xf0]  ;;  %v2797_v14 = vpop.f32.mrf.mxu0  ;;  %v5233_v15 = vor.u32 %v6081_v2, %v5230_v3  ;;  %v5489_v3 = vor.u32 %v6146_v52, %v5486_v54  ;;  %v5446_v54 = vld [vmem:[#allocation11 + $0x28] sm:$0xf0] }
 0x1b1   :  { %3130 = vmatmul.bf16.vlgmr.msrb.gmra.mxu0 %v6564_v53  ;;  %3102 = vmatmul.bf16.vlgmr.msra.gmra.mxu2 %v6556_v32  ;;  %v5265_v53 = vor.u32 %v6089_v33, %v5262_v34  ;;  %v6085_v32 = vld [vmem:[#allocation8 + $0x68c] sm:$0xf]  ;;  %v5445_v0 = vor.u32 %v6137_v9, %v5444_v7  ;;  %v2811_v34 = vpop.f32.mrf.mxu1 }
 0x1b2   :  { %3580 = vmatpush.bf16.msra.mxu0 %v5485_v62  ;;  %3150 = vmatpush.bf16.msrb.mxu2 %v5297_v6  ;;  %v5249_v60 = vor.u32 %v6085_v32, %v5246_v48  ;;  %v2740_v62 = vadd.f32 %v6596_v21, %v1442_v46  ;;  %v5374_v6 = vld [vmem:[#allocation8 + $0x798] sm:$0xf0]  ;;  %v5508_v32 = vld [vmem:[#allocation11 + $0xa0] sm:$0xf]  ;;  %v6153_v48 = vld [vmem:[#allocation11 + $0xa4] sm:$0xf0] }
 0x1b3   :  { %v5509_v2 = vor.u32 %v6153_v48, %v5508_v32  ;;  %v5534_v32 = vld [vmem:[#allocation11 + $0xd8] sm:$0xf0] }
 0x1b4   :  { %3115 = vmatpush.bf16.msra.mxu3 %v4801_v26  ;;  %3143 = vmatpush.bf16.msrb.mxu1 %v5057_v29  ;;  %v6623_v21 = vpop.f32.mrf.mxu2  ;;  %v2754_v16 = vadd.f32 %v6598_v35, %v2740_v62  ;;  %v6135_v26 = vld [vmem:[#allocation11 + $0x14] sm:$0xf0]  ;;  %v5516_v29 = vld [vmem:[#allocation11 + $0xb0] sm:$0xf]  ;;  %v5217_v35 = vor.u32 %v6077_v19, %v5214_v20  ;;  %v6105_v62 = vld [vmem:[#allocation8 + $0x72c] sm:$0xf] }
 0x1b5   :  { %v5437_v63 = vor.u32 %v6135_v26, %v5436_v24  ;;  %v6142_v20 = vld [vmem:[#allocation11 + $0x54] sm:$0xf] }
 0x1b6   :  { %3581 = vmatpush.bf16.msra.mxu0 %v5477_v18  ;;  %3151 = vmatpush.bf16.msrb.mxu2 %v5281_v25  ;;  %v5377_v18 = vor.u32 %v6117_v5, %v5374_v6  ;;  %v5525_v25 = vor.u32 %v6157_v12, %v5524_v11  ;;  %v6151_v5 = vld [vmem:[#allocation11 + $0x94] sm:$0xf0]  ;;  %v6162_v24 = vld [vmem:[#allocation11 + $0xf4] sm:$0xf] }
 0x1b7   :  { %3116 = vmatmul.bf16.vlgmr.msra.gmra.mxu3 %v6559_v59  ;;  %3144 = vmatmul.bf16.vlgmr.msrb.gmra.mxu1 %v6567_v13  ;;  %v5533_v59 = vor.u32 %v6159_v58, %v5532_v41  ;;  %v2742_v13 = vadd.f32 %v6600_v61, %v1442_v46  ;;  %v2768_v61 = vadd.f32 %v6602_v30, %v2754_v16  ;;  %v5342_v30 = vld [vmem:[#allocation8 + $0x758] sm:$0xf0] }
 0x1b8   :  { %3164 = vmatpush.bf16.msrb.mxu3 %v5425_v31  ;;  %3594 = vmatpush.bf16.msra.mxu1 %v5549_v56  ;;  %v6155_v31 = vld [vmem:[#allocation11 + $0xb4] sm:$0xf0] }
 0x1b9   :  { %v2756_v33 = vadd.f32 %v6604_v17, %v2742_v13  ;;  %v5182_v41 = vld [vmem:[#allocation8 + $0x618] sm:$0xf0]  ;;  %v2865_v11 = vpop.f32.mrf.mxu1 }
 0x1ba   :  { %3582 = vmatpush.bf16.msra.mxu0 %v5469_v37  ;;  %3152 = vmatpush.bf16.msrb.mxu2 %v5265_v53  ;;  %v2782_v37 = vadd.f32 %v6608_v28, %v2768_v61  ;;  %v5517_v53 = vor.u32 %v6155_v31, %v5516_v29  ;;  %v2837_v46 = vpop.f32.mrf.mxu3 }
 0x1bb   :  { %v2770_v56 = vadd.f32 %v6614_v45, %v2756_v33 }
 0x1bc   :  { %3165 = vmatpush.bf16.msrb.mxu3 %v5409_v47  ;;  %3595 = vmatpush.bf16.msra.mxu1 %v5541_v55  ;;  %v2796_v17 = vadd.f32 %v6611_v36, %v2782_v37  ;;  %v6133_v47 = vld [vmem:[#allocation11 + $0x4] sm:$0xf0]  ;;  %v5345_v55 = vor.u32 %v6109_v43, %v5342_v30  ;;  %v1443_v43 = vperm.slane %v6606_v27, 1 }
 0x1bd   :  { %v2784_v28 = vadd.f32 %v2783_v8, %v2770_v56  ;;  %v5429_v36 = vor.u32 %v6133_v47, %v5428_v44  ;;  %v5478_v8 = vld [vmem:[#allocation11 + $0x68] sm:$0xf0]  ;;  %v6160_v56 = vld [vmem:[#allocation11 + $0xe4] sm:$0xf]  ;;  %v6158_v47 = vld [vmem:[#allocation11 + $0xd4] sm:$0xf] }
 0x1be   :  { %3583 = vmatpush.bf16.msra.mxu0 %v5461_v50  ;;  %3153 = vmatpush.bf16.msrb.mxu2 %v5249_v60  ;;  %v2825_v50 = vpop.f32.mrf.mxu2  ;;  %v2810_v45 = vadd.f32 %v6617_v49, %v2796_v17  ;;  %v6632_v60 = vpop.f32.mrf.mxu0  ;;  %v5185_v49 = vor.u32 %v6069_v57, %v5182_v41 }
 0x1bf   :  { %v2798_v58 = vadd.f32 %v2797_v14, %v2784_v28  ;;  %v6101_v14 = vld [vmem:[#allocation8 + $0x70c] sm:$0xf]  ;;  %v2852_v52 = vadd.f32 %v6632_v60, %v1443_v43 }
 0x1c0   :  { %3166 = vmatpush.bf16.msrb.mxu3 %v5393_v1  ;;  %3596 = vmatpush.bf16.msra.mxu1 %v5533_v59  ;;  %v5326_v1 = vld [vmem:[#allocation8 + $0x738] sm:$0xf0]  ;;  %v2824_v7 = vadd.f32 %v6623_v21, %v2810_v45  ;;  %v6144_v59 = vld [vmem:[#allocation11 + $0x64] sm:$0xf]  ;;  %v6149_v21 = vld [vmem:[#allocation11 + $0x84] sm:$0xf0] }
 0x1c1   :  { %v2812_v6 = vadd.f32 %v2811_v34, %v2798_v58  ;;  %v5329_v9 = vor.u32 %v6105_v62, %v5326_v1  ;;  %v5481_v19 = vor.u32 %v6144_v59, %v5478_v8  ;;  %v5473_v34 = vor.u32 %v6142_v20, %v5470_v23  ;;  %v2867_v17 = vpop.f32.mrf.mxu1  ;;  %v6156_v45 = vld [vmem:[#allocation11 + $0xc4] sm:$0xf]  ;;  %v6134_v58 = vld [vmem:[#allocation11 + $0x14] sm:$0xf]  ;;  %v5438_v1 = vld [vmem:[#allocation11 + $0x18] sm:$0xf0] }
 0x1c2   :  { %3584 = vmatpush.bf16.msra.mxu0 %v5453_v4  ;;  %3154 = vmatpush.bf16.msrb.mxu2 %v5233_v15  ;;  %v5500_v4 = vld [vmem:[#allocation11 + $0x90] sm:$0xf]  ;;  %v2838_v12 = vadd.f32 %v2837_v46, %v2824_v7  ;;  %v5310_v15 = vld [vmem:[#allocation8 + $0x718] sm:$0xf0]  ;;  %v5454_v46 = vld [vmem:[#allocation11 + $0x38] sm:$0xf0]  ;;  %v2866_v57 = vadd.f32 %v2865_v11, %v2852_v52  ;;  %v5441_v60 = vor.u32 %v6134_v58, %v5438_v1 }
 0x1c3   :  { %v2826_v13 = vadd.f32 %v2825_v50, %v2812_v6  ;;  %v5501_v16 = vor.u32 %v6151_v5, %v5500_v4  ;;  %v5313_v26 = vor.u32 %v6101_v14, %v5310_v15  ;;  %v6136_v50 = vld [vmem:[#allocation11 + $0x24] sm:$0xf]  ;;  %v5518_v4 = vld [vmem:[#allocation11 + $0xb8] sm:$0xf0]  ;;  %v5612_v8 = vld [vmem:[#allocation11 + $0x170] sm:$0xf] }
 0x1c4   :  { %3167 = vmatpush.bf16.msrb.mxu3 %v5377_v18  ;;  %3597 = vmatpush.bf16.msra.mxu1 %v5525_v25  ;;  %v2839_v18 = vpop.f32.mrf.mxu3  ;;  %v5550_v25 = vld [vmem:[#allocation11 + $0xf8] sm:$0xf0]  ;;  %v3178_v29 = vmax.f32 %v2838_v12, 0.0  ;;  %v5430_v14 = vld [vmem:[#allocation11 + $0x8] sm:$0xf0] }
 0x1c5   :  { %v2840_v22 = vadd.f32 %v2839_v18, %v2826_v13  ;;  %v5553_v37 = vor.u32 %v6162_v24, %v5550_v25  ;;  %v6132_v13 = vld [vmem:[#allocation11 + $0x4] sm:$0xf]  ;;  %v5510_v18 = vld [vmem:[#allocation11 + $0xa8] sm:$0xf0]  ;;  %v5564_v58 = vld [vmem:[#allocation11 + $0x110] sm:$0xf] }
 0x1c6   :  { %3585 = vmatpush.bf16.msra.mxu0 %v5445_v0  ;;  %3155 = vmatpush.bf16.msrb.mxu2 %v5217_v35  ;;  %v5492_v0 = vld [vmem:[#allocation11 + $0x80] sm:$0xf]  ;;  %v2879_v61 = vpop.f32.mrf.mxu2  ;;  %v6140_v35 = vld [vmem:[#allocation11 + $0x44] sm:$0xf]  ;;  %v5433_v20 = vor.u32 %v6132_v13, %v5430_v14  ;;  %v6165_v1 = vld [vmem:[#allocation11 + $0x104] sm:$0xf0] }
 0x1c7   :  { %v3182_v31 = vmax.f32 %v2840_v22, 0.0  ;;  %v5493_v33 = vor.u32 %v6149_v21, %v5492_v0  ;;  %v5465_v44 = vor.u32 %v6140_v35, %v5462_v40  ;;  %v2880_v6 = vadd.f32 %v2879_v61, %v2866_v57  ;;  %v5604_v0 = vld [vmem:[#allocation11 + $0x160] sm:$0xf]  ;;  %v6177_v21 = vld [vmem:[#allocation11 + $0x164] sm:$0xf0] }
 0x1c8   :  { %3168 = vmatpush.bf16.msrb.mxu3 %v5361_v38  ;;  %3598 = vmatpush.bf16.msra.mxu1 %v5517_v53  ;;  %v2853_v38 = vpop.f32.mrf.mxu0  ;;  %v5605_v24 = vor.u32 %v6177_v21, %v5604_v0  ;;  %v5572_v57 = vld [vmem:[#allocation11 + $0x120] sm:$0xf]  ;;  %v6172_v13 = vld [vmem:[#allocation11 + $0x144] sm:$0xf]  ;;  %v5590_v14 = vld [vmem:[#allocation11 + $0x148] sm:$0xf0] }
 0x1c9   :  { %v6636_v39 = vpack.c.bf16 %v3182_v31, %v3178_v29  ;;  %v2921_v7 = vpop.f32.mrf.mxu1  ;;  %v5502_v29 = vld [vmem:[#allocation11 + $0x98] sm:$0xf0]  ;;  %v1444_v21 = vperm.slane %v6606_v27, 2 }
 0x1ca   :  { %3586 = vmatpush.bf16.msra.mxu0 %v5437_v63  ;;  %3156 = vmatpush.bf16.msrb.mxu2 %v5201_v51  ;;  %v5542_v63 = vld [vmem:[#allocation11 + $0xe8] sm:$0xf0]  ;;  %v5537_v51 = vor.u32 %v6158_v47, %v5534_v32 }
 0x1cb   :  { %v5545_v53 = vor.u32 %v6160_v56, %v5542_v63  ;;  %v6148_v63 = vld [vmem:[#allocation11 + $0x84] sm:$0xf] }
 0x1cc   :  { %3169 = vmatpush.bf16.msrb.mxu3 %v5345_v55  ;;  %3599 = vmatpush.bf16.msra.mxu1 %v5509_v2  ;;  %v2893_v30 = vpop.f32.mrf.mxu3  ;;  %v5526_v55 = vld [vmem:[#allocation11 + $0xc8] sm:$0xf0] }
 0x1cd   :  { %v5529_v2 = vor.u32 %v6156_v45, %v5526_v55  ;;  %v2894_v11 = vadd.f32 %v2893_v30, %v2880_v6  ;;  %v6176_v6 = vld [vmem:[#allocation11 + $0x164] sm:$0xf] }
 0x1ce   :  { %3587 = vmatpush.bf16.msra.mxu0 %v5429_v36  ;;  %3157 = vmatpush.bf16.msrb.mxu2 %v5185_v49  ;;  %v2881_v48 = vpop.f32.mrf.mxu2  ;;  %v2854_v36 = vadd.f32 %v2853_v38, %v1443_v43  ;;  %v5494_v43 = vld [vmem:[#allocation11 + $0x88] sm:$0xf0] }
 0x1cf   :  { %v5497_v47 = vor.u32 %v6148_v63, %v5494_v43  ;;  %v6164_v63 = vld [vmem:[#allocation11 + $0x104] sm:$0xf]  ;;  %v5558_v43 = vld [vmem:[#allocation11 + $0x108] sm:$0xf0] }
 0x1d0   :  { %3170 = vmatpush.bf16.msrb.mxu3 %v5329_v9  ;;  %3600 = vmatpush.bf16.msra.mxu1 %v5501_v16  ;;  %v2907_v41 = vpop.f32.mrf.mxu0  ;;  %v2868_v5 = vadd.f32 %v2867_v17, %v2854_v36  ;;  %v6179_v9 = vld [vmem:[#allocation11 + $0x174] sm:$0xf0]  ;;  %v6152_v16 = vld [vmem:[#allocation11 + $0xa4] sm:$0xf] }
 0x1d1   :  { %3158 = vmatmul.bf16.vlgmr.msrb.gmra.mxu2 %v6574_v10  ;;  %3588 = vmatmul.bf16.vlgmr.msra.gmra.mxu0 %v6636_v39  ;;  %v6138_v10 = vld [vmem:[#allocation11 + $0x34] sm:$0xf]  ;;  %v5613_v15 = vor.u32 %v6179_v9, %v5612_v8  ;;  %v2908_v22 = vadd.f32 %v2907_v41, %v2894_v11  ;;  %v5513_v23 = vor.u32 %v6152_v16, %v5510_v18  ;;  %v2923_v40 = vpop.f32.mrf.mxu1  ;;  %v6167_v36 = vld [vmem:[#allocation11 + $0x114] sm:$0xf0]  ;;  %v5598_v8 = vld [vmem:[#allocation11 + $0x158] sm:$0xf0] }
 0x1d2   :  { %3636 = vmatpush.bf16.msrb.mxu0 %v5489_v3  ;;  %v5457_v28 = vor.u32 %v6138_v10, %v5454_v46  ;;  %v6154_v3 = vld [vmem:[#allocation11 + $0xb4] sm:$0xf]  ;;  %v2882_v12 = vadd.f32 %v2881_v48, %v2868_v5  ;;  %v5588_v10 = vld [vmem:[#allocation11 + $0x140] sm:$0xf]  ;;  %v5580_v48 = vld [vmem:[#allocation11 + $0x130] sm:$0xf] }
 0x1d3   :  { %v5521_v59 = vor.u32 %v6154_v3, %v5518_v4  ;;  %3608 = vmatpush.bf16.msra.mxu2 %v5613_v15  ;;  %v2922_v35 = vadd.f32 %v2921_v7, %v2908_v22  ;;  %v6178_v3 = vld [vmem:[#allocation11 + $0x174] sm:$0xf]  ;;  %v5614_v4 = vld [vmem:[#allocation11 + $0x178] sm:$0xf0]  ;;  %v5606_v7 = vld [vmem:[#allocation11 + $0x168] sm:$0xf0]  ;;  %v5593_v15 = vor.u32 %v6172_v13, %v5590_v14 }
 0x1d4   :  { %3171 = vmatpush.bf16.msrb.mxu3 %v5313_v26  ;;  %3601 = vmatpush.bf16.msra.mxu1 %v5493_v33  ;;  %v2895_v62 = vpop.f32.mrf.mxu3  ;;  %v6150_v26 = vld [vmem:[#allocation11 + $0x94] sm:$0xf]  ;;  %v5596_v33 = vld [vmem:[#allocation11 + $0x150] sm:$0xf]  ;;  %v5617_v5 = vor.u32 %v6178_v3, %v5614_v4  ;;  %v6168_v22 = vld [vmem:[#allocation11 + $0x124] sm:$0xf] }
 0x1d5   :  { %v5652_v4 = vld [vmem:[#allocation11 + $0x1c0] sm:$0xf]  ;;  %v6185_v13 = vld [vmem:[#allocation11 + $0x1a4] sm:$0xf0] }
 0x1d6   :  { %3637 = vmatpush.bf16.msrb.mxu0 %v5481_v19  ;;  %v2935_v49 = vpop.f32.mrf.mxu2  ;;  %v2896_v19 = vadd.f32 %v2895_v62, %v2882_v12  ;;  %v5565_v62 = vor.u32 %v6167_v36, %v5564_v58 }
 0x1d7   :  { %3172 = vmatmul.bf16.vlgmr.msrb.gmra.mxu3 %v6578_v42  ;;  %v5449_v42 = vor.u32 %v6136_v50, %v5446_v54  ;;  %3609 = vmatpush.bf16.msra.mxu2 %v5605_v24  ;;  %v2936_v30 = vadd.f32 %v2935_v49, %v2922_v35  ;;  %v5609_v49 = vor.u32 %v6176_v6, %v5606_v7 }
 0x1d8   :  { %3650 = vmatpush.bf16.msrb.mxu1 %v5553_v37  ;;  %v2909_v25 = vpop.f32.mrf.mxu0  ;;  %v5505_v37 = vor.u32 %v6150_v26, %v5502_v29 }
 0x1d9   :  { %v2910_v31 = vadd.f32 %v2909_v25, %v2896_v19  ;;  %v2977_v11 = vpop.f32.mrf.mxu1  ;;  %v6170_v19 = vld [vmem:[#allocation11 + $0x134] sm:$0xf] }
 0x1da   :  { %3638 = vmatpush.bf16.msrb.mxu0 %v5473_v34  ;;  %v6175_v34 = vld [vmem:[#allocation11 + $0x154] sm:$0xf0] }
 0x1db   :  { %v5597_v38 = vor.u32 %v6175_v34, %v5596_v33  ;;  %v5566_v33 = vld [vmem:[#allocation11 + $0x118] sm:$0xf0] }
 0x1dc   :  { %3651 = vmatpush.bf16.msrb.mxu1 %v5545_v53  ;;  %v2949_v61 = vpop.f32.mrf.mxu3  ;;  %v6173_v53 = vld [vmem:[#allocation11 + $0x144] sm:$0xf0] }
 0x1dd   :  { %3610 = vmatpush.bf16.msra.mxu2 %v5597_v38  ;;  %v2950_v17 = vadd.f32 %v2949_v61, %v2936_v30  ;;  %v5589_v32 = vor.u32 %v6173_v53, %v5588_v10 }
 0x1de   :  { %3639 = vmatpush.bf16.msrb.mxu0 %v5465_v44  ;;  %v2937_v56 = vpop.f32.mrf.mxu2  ;;  %v2924_v44 = vadd.f32 %v2923_v40, %v2910_v31  ;;  %v6166_v31 = vld [vmem:[#allocation11 + $0x114] sm:$0xf] }
 0x1df   :  { %v3179_v54 = vmax.f32 %v2950_v17, 0.0 }
 0x1e0   :  { %3652 = vmatpush.bf16.msrb.mxu1 %v5537_v51  ;;  %v2938_v46 = vadd.f32 %v2937_v56, %v2924_v44  ;;  %v5561_v44 = vor.u32 %v6164_v63, %v5558_v43 }
 0x1e1   :  { %3611 = vmatpush.bf16.msra.mxu2 %v5589_v32  ;;  %v2979_v24 = vpop.f32.mrf.mxu1 }
 0x1e2   :  { %3640 = vmatpush.bf16.msrb.mxu0 %v5457_v28  ;;  %v6171_v28 = vld [vmem:[#allocation11 + $0x134] sm:$0xf0] }
 0x1e3   :  { %v5581_v52 = vor.u32 %v6171_v28, %v5580_v48 }
 0x1e4   :  { %3653 = vmatpush.bf16.msrb.mxu1 %v5529_v2  ;;  %v2951_v50 = vpop.f32.mrf.mxu3 }
 0x1e5   :  { %v2952_v51 = vadd.f32 %v2951_v50, %v2938_v46  ;;  %3612 = vmatpush.bf16.msra.mxu2 %v5581_v52  ;;  %v5676_v46 = vld [vmem:[#allocation11 + $0x1f0] sm:$0xf]  ;;  %v5668_v50 = vld [vmem:[#allocation11 + $0x1e0] sm:$0xf] }
 0x1e6   :  { %3641 = vmatpush.bf16.msrb.mxu0 %v5449_v42  ;;  %v5556_v42 = vld [vmem:[#allocation11 + $0x100] sm:$0xf] }
 0x1e7   :  { %v3183_v45 = vmax.f32 %v2952_v51, 0.0  ;;  %v5557_v2 = vor.u32 %v6165_v1, %v5556_v42  ;;  %v6193_v51 = vld [vmem:[#allocation11 + $0x1e4] sm:$0xf0] }
 0x1e8   :  { %3654 = vmatpush.bf16.msrb.mxu1 %v5521_v59  ;;  %v6174_v59 = vld [vmem:[#allocation11 + $0x154] sm:$0xf] }
 0x1e9   :  { %v3187_v55 = vpack.c.bf16 %v3183_v45, %v3179_v54  ;;  %v5601_v9 = vor.u32 %v6174_v59, %v5598_v8  ;;  %v5669_v45 = vor.u32 %v6193_v51, %v5668_v50 }
 0x1ea   :  { %3642 = vmatpush.bf16.msrb.mxu0 %v5441_v60  ;;  %v2963_v60 = vpop.f32.mrf.mxu0 }
 0x1eb   :  { %3602 = vmatmul.bf16.vlgmr.msra.gmra.mxu1 %v3187_v55  ;;  %v2964_v26 = vadd.f32 %v2963_v60, %v1444_v21  ;;  %v6187_v60 = vld [vmem:[#allocation11 + $0x1b4] sm:$0xf0] }
 0x1ec   :  { %3655 = vmatpush.bf16.msrb.mxu1 %v5513_v23  ;;  %v5574_v23 = vld [vmem:[#allocation11 + $0x128] sm:$0xf0] }
 0x1ed   :  { %v5577_v25 = vor.u32 %v6168_v22, %v5574_v23  ;;  %v2978_v34 = vadd.f32 %v2977_v11, %v2964_v26  ;;  %v6194_v22 = vld [vmem:[#allocation11 + $0x1f4] sm:$0xf]  ;;  %v5678_v23 = vld [vmem:[#allocation11 + $0x1f8] sm:$0xf0] }
 0x1ee   :  { %3643 = vmatpush.bf16.msrb.mxu0 %v5433_v20  ;;  %v5582_v20 = vld [vmem:[#allocation11 + $0x138] sm:$0xf0] }
 0x1ef   :  { %v5585_v0 = vor.u32 %v6170_v19, %v5582_v20  ;;  %v5620_v20 = vld [vmem:[#allocation11 + $0x180] sm:$0xf] }
 0x1f0   :  { %3656 = vmatpush.bf16.msrb.mxu1 %v5505_v37  ;;  %v5569_v37 = vor.u32 %v6166_v31, %v5566_v33  ;;  %v6190_v31 = vld [vmem:[#allocation11 + $0x1d4] sm:$0xf]  ;;  %v5662_v33 = vld [vmem:[#allocation11 + $0x1d8] sm:$0xf0] }
 0x1f1   :  { %3644 = vmatmul.bf16.vlgmr.msrb.gmra.mxu0 %v6636_v39  ;;  %v6169_v39 = vld [vmem:[#allocation11 + $0x124] sm:$0xf0] }
 0x1f2   :  { %v5573_v41 = vor.u32 %v6169_v39, %v5572_v57  ;;  %v2965_v16 = vpop.f32.mrf.mxu0  ;;  %v5660_v39 = vld [vmem:[#allocation11 + $0x1d0] sm:$0xf] }
 0x1f3   :  { %v2966_v35 = vadd.f32 %v2965_v16, %v1444_v21  ;;  %v5628_v16 = vld [vmem:[#allocation11 + $0x190] sm:$0xf] }
 0x1f4   :  { %3657 = vmatpush.bf16.msrb.mxu1 %v5497_v47  ;;  %3613 = vmatpush.bf16.msra.mxu2 %v5573_v41  ;;  %v2991_v12 = vpop.f32.mrf.mxu2  ;;  %v3033_v30 = vpop.f32.mrf.mxu1  ;;  %v6195_v47 = vld [vmem:[#allocation11 + $0x1f4] sm:$0xf0] }
 0x1f5   :  { %v2980_v40 = vadd.f32 %v2979_v24, %v2966_v35  ;;  %v2992_v56 = vadd.f32 %v2991_v12, %v2978_v34  ;;  %v5677_v32 = vor.u32 %v6195_v47, %v5676_v46  ;;  %v6191_v41 = vld [vmem:[#allocation11 + $0x1d4] sm:$0xf0]  ;;  %v5636_v12 = vld [vmem:[#allocation11 + $0x1a0] sm:$0xf]  ;;  %v5681_v24 = vor.u32 %v6194_v22, %v5678_v23  ;;  %v5638_v46 = vld [vmem:[#allocation11 + $0x1a8] sm:$0xf0] }
 0x1f6   :  { %v5665_v34 = vor.u32 %v6190_v31, %v5662_v33  ;;  %v6199_v22 = vld [vmem:[#allocation13 + $0x18] sm:$0xff]  ;;  %v6208_v31 = vld [vmem:[#allocation13 + $0x60] sm:$0xff] }
 0x1f7   :  { %3622 = vmatpush.bf16.msra.mxu3 %v5677_v32  ;;  %v6211_v23 = vld [vmem:[#allocation13 + $0x78] sm:$0xff] }
 0x1f8   :  { %3614 = vmatpush.bf16.msra.mxu2 %v5565_v62  ;;  %v5661_v62 = vor.u32 %v6191_v41, %v5660_v39  ;;  %3844 = vmatpush.bf16.msra.mxu1 %v6211_v23  ;;  %v6207_v33 = vld [vmem:[#allocation13 + $0x58] sm:$0xff] }
 0x1fa   :  { %v3005_v18 = vpop.f32.mrf.mxu3  ;;  %v3019_v29 = vpop.f32.mrf.mxu0 }
 0x1fb   :  { %3658 = vmatmul.bf16.vlgmr.msrb.gmra.mxu1 %v3187_v55  ;;  %v3006_v10 = vadd.f32 %v3005_v18, %v2992_v56  ;;  %3623 = vmatpush.bf16.msra.mxu3 %v5669_v45  ;;  %v6183_v18 = vld [vmem:[#allocation11 + $0x194] sm:$0xf0] }
 0x1fc   :  { %3615 = vmatpush.bf16.msra.mxu2 %v5557_v2  ;;  %v2993_v61 = vpop.f32.mrf.mxu2  ;;  %v3035_v58 = vpop.f32.mrf.mxu1  ;;  %v5629_v19 = vor.u32 %v6183_v18, %v5628_v16 }
 0x1fd   :  { %v2994_v53 = vadd.f32 %v2993_v61, %v2980_v40  ;;  %v3020_v28 = vadd.f32 %v3019_v29, %v3006_v10  ;;  %v5670_v61 = vld [vmem:[#allocation11 + $0x1e8] sm:$0xf0] }
 0x1fe   :  { %v5654_v40 = vld [vmem:[#allocation11 + $0x1c8] sm:$0xf0] }
 0x1ff   :  { %v3034_v57 = vadd.f32 %v3033_v30, %v3020_v28  ;;  %3624 = vmatpush.bf16.msra.mxu3 %v5661_v62  ;;  %v6186_v30 = vld [vmem:[#allocation11 + $0x1b4] sm:$0xf]  ;;  %v5630_v28 = vld [vmem:[#allocation11 + $0x198] sm:$0xf0] }
 0x200   :  { %3664 = vmatpush.bf16.msrb.mxu2 %v5617_v5  ;;  %v6189_v5 = vld [vmem:[#allocation11 + $0x1c4] sm:$0xf0] }
 0x201   :  { %v5653_v7 = vor.u32 %v6189_v5, %v5652_v4 }
 0x202   :  { %v3007_v38 = vpop.f32.mrf.mxu3  ;;  %v3021_v52 = vpop.f32.mrf.mxu0 }
 0x203   :  { %v3008_v48 = vadd.f32 %v3007_v38, %v2994_v53  ;;  %3625 = vmatpush.bf16.msra.mxu3 %v5653_v7  ;;  %v6188_v38 = vld [vmem:[#allocation11 + $0x1c4] sm:$0xf]  ;;  %v1445_v53 = vperm.slane %v6606_v27, 3 }
 0x204   :  { %3665 = vmatpush.bf16.msrb.mxu2 %v5609_v49  ;;  %v5644_v49 = vld [vmem:[#allocation11 + $0x1b0] sm:$0xf]  ;;  %v5657_v56 = vor.u32 %v6188_v38, %v5654_v40  ;;  %v6180_v27 = vld [vmem:[#allocation11 + $0x184] sm:$0xf]  ;;  %v6205_v40 = vld [vmem:[#allocation13 + $0x48] sm:$0xff] }
 0x205   :  { %v3022_v55 = vadd.f32 %v3021_v52, %v3008_v48  ;;  %v5645_v8 = vor.u32 %v6187_v60, %v5644_v49  ;;  %v6182_v48 = vld [vmem:[#allocation11 + $0x194] sm:$0xf] }
 0x206   :  { %v5633_v52 = vor.u32 %v6182_v48, %v5630_v28 }
 0x207   :  { %v3036_v1 = vadd.f32 %v3035_v58, %v3022_v55  ;;  %3626 = vmatpush.bf16.msra.mxu3 %v5645_v8 }
 0x208   :  { %3666 = vmatpush.bf16.msrb.mxu2 %v5601_v9 }
 0x20c   :  { %3667 = vmatpush.bf16.msrb.mxu2 %v5593_v15  ;;  %v5637_v15 = vor.u32 %v6185_v13, %v5636_v12 }
 0x20e   :  { %3627 = vmatpush.bf16.msra.mxu3 %v5637_v15  ;;  %v3075_v29 = vpop.f32.mrf.mxu0 }
 0x20f   :  { %v3076_v51 = vadd.f32 %v3075_v29, %v1445_v53  ;;  %v6196_v29 = vld [vmem:[#allocation13] sm:$0xff] }
 0x210   :  { %3668 = vmatpush.bf16.msrb.mxu2 %v5585_v0  ;;  %v6181_v0 = vld [vmem:[#allocation11 + $0x184] sm:$0xf0] }
 0x211   :  { %v5621_v21 = vor.u32 %v6181_v0, %v5620_v20  ;;  %v6202_v20 = vld [vmem:[#allocation13 + $0x30] sm:$0xff]  ;;  %v6201_v0 = vld [vmem:[#allocation13 + $0x28] sm:$0xff] }
 0x212   :  { %3628 = vmatpush.bf16.msra.mxu3 %v5629_v19  ;;  %v6203_v19 = vld [vmem:[#allocation13 + $0x38] sm:$0xff] }
 0x213   :  { %3830 = vmatpush.bf16.msra.mxu0 %v6203_v19 }
 0x214   :  { %3669 = vmatpush.bf16.msrb.mxu2 %v5577_v25  ;;  %v3047_v17 = vpop.f32.mrf.mxu2  ;;  %v6192_v25 = vld [vmem:[#allocation11 + $0x1e4] sm:$0xf]  ;;  %v3089_v35 = vpop.f32.mrf.mxu1 }
 0x215   :  { %v3048_v42 = vadd.f32 %v3047_v17, %v3034_v57  ;;  %v5673_v26 = vor.u32 %v6192_v25, %v5670_v61  ;;  %v6184_v17 = vld [vmem:[#allocation11 + $0x1a4] sm:$0xf]  ;;  %v3090_v45 = vadd.f32 %v3089_v35, %v3076_v51  ;;  %v6210_v25 = vld [vmem:[#allocation13 + $0x70] sm:$0xff]  ;;  %v6197_v61 = vld [vmem:[#allocation13 + $0x8] sm:$0xff] }
 0x216   :  { %3629 = vmatpush.bf16.msra.mxu3 %v5621_v21  ;;  %v3077_v63 = vpop.f32.mrf.mxu0  ;;  %v5641_v32 = vor.u32 %v6184_v17, %v5638_v46  ;;  %v6200_v21 = vld [vmem:[#allocation13 + $0x20] sm:$0xff]  ;;  %3845 = vmatpush.bf16.msra.mxu1 %v6210_v25 }
 0x217   :  { %v3078_v55 = vadd.f32 %v3077_v63, %v1445_v53  ;;  %3831 = vmatpush.bf16.msra.mxu0 %v6202_v20  ;;  %v6204_v63 = vld [vmem:[#allocation13 + $0x40] sm:$0xff] }
 0x218   :  { %3670 = vmatpush.bf16.msrb.mxu2 %v5569_v37 }
 0x21a   :  { %v3061_v54 = vpop.f32.mrf.mxu3  ;;  %3678 = vmatpush.bf16.msrb.mxu3 %v5681_v24  ;;  %v6198_v24 = vld [vmem:[#allocation13 + $0x10] sm:$0xff] }
 0x21b   :  { %v3062_v2 = vadd.f32 %v3061_v54, %v3048_v42  ;;  %3832 = vmatpush.bf16.msra.mxu0 %v6201_v0 }
 0x21c   :  { %3671 = vmatpush.bf16.msrb.mxu2 %v5561_v44  ;;  %v3049_v36 = vpop.f32.mrf.mxu2  ;;  %v5646_v44 = vld [vmem:[#allocation11 + $0x1b8] sm:$0xf0]  ;;  %v3091_v47 = vpop.f32.mrf.mxu1 }
 0x21d   :  { %v3050_v3 = vadd.f32 %v3049_v36, %v3036_v1  ;;  %v3180_v9 = vmax.f32 %v3062_v2, 0.0  ;;  %v5649_v10 = vor.u32 %v6186_v30, %v5646_v44  ;;  %v3092_v39 = vadd.f32 %v3091_v47, %v3078_v55  ;;  %v5622_v36 = vld [vmem:[#allocation11 + $0x188] sm:$0xf0] }
 0x21e   :  { %3679 = vmatpush.bf16.msrb.mxu3 %v5673_v26  ;;  %v5625_v2 = vor.u32 %v6180_v27, %v5622_v36  ;;  %v6209_v26 = vld [vmem:[#allocation13 + $0x68] sm:$0xff] }
 0x21f   :  { %3833 = vmatpush.bf16.msra.mxu0 %v6200_v21  ;;  %3846 = vmatpush.bf16.msra.mxu1 %v6209_v26 }
 0x222   :  { %v3063_v6 = vpop.f32.mrf.mxu3  ;;  %3680 = vmatpush.bf16.msrb.mxu3 %v5665_v34  ;;  %v6206_v34 = vld [vmem:[#allocation13 + $0x50] sm:$0xff] }
 0x223   :  { %v3064_v59 = vadd.f32 %v3063_v6, %v3050_v3  ;;  %3834 = vmatpush.bf16.msra.mxu0 %v6199_v22  ;;  %3847 = vmatpush.bf16.msra.mxu1 %v6208_v31 }
 0x225   :  { %v3184_v11 = vmax.f32 %v3064_v59, 0.0 }
 0x226   :  { %3681 = vmatpush.bf16.msrb.mxu3 %v5657_v56  ;;  %v3254_v56 = vld [vmem:[%s6663_s6] sm:$0x3] }
 0x227   :  { %v3188_v14 = vpack.c.bf16 %v3184_v11, %v3180_v9  ;;  %3835 = vmatpush.bf16.msra.mxu0 %v6198_v24  ;;  %3848 = vmatpush.bf16.msra.mxu1 %v6207_v33 }
 0x229   :  { %3616 = vmatmul.bf16.vlgmr.msra.gmra.mxu2 %v3188_v14 }
 0x22a   :  { %3682 = vmatpush.bf16.msrb.mxu3 %v5649_v10 }
 0x22b   :  { %3836 = vmatpush.bf16.msra.mxu0 %v6197_v61  ;;  %3849 = vmatpush.bf16.msra.mxu1 %v6206_v34 }
 0x22e   :  { %3683 = vmatpush.bf16.msrb.mxu3 %v5641_v32  ;;  %v3131_v54 = vpop.f32.mrf.mxu0 }
 0x22f   :  { %3837 = vmatpush.bf16.msra.mxu0 %v6196_v29  ;;  %3850 = vmatpush.bf16.msra.mxu1 %v6205_v40 }
 0x232   :  { %3684 = vmatpush.bf16.msrb.mxu3 %v5633_v52 }
 0x233   :  { %3851 = vmatpush.bf16.msra.mxu1 %v6204_v63 }
 0x234   :  { %v3103_v37 = vpop.f32.mrf.mxu2  ;;  %v3145_v58 = vpop.f32.mrf.mxu1 }
 0x235   :  { %v3104_v41 = vadd.f32 %v3103_v37, %v3090_v45 }
 0x236   :  { %3685 = vmatpush.bf16.msrb.mxu3 %v5625_v2  ;;  %v3133_v5 = vpop.f32.mrf.mxu0 }
 0x239   :  { %3672 = vmatmul.bf16.vlgmr.msrb.gmra.mxu2 %v3188_v14 }
 0x23a   :  { %v3117_v43 = vpop.f32.mrf.mxu3 }
 0x23b   :  { %v3118_v62 = vadd.f32 %v3117_v43, %v3104_v41  ;;  %v3256_v43 = vperm.slane %v3254_v56, 0  ;;  %v3257_v41 = vperm.slane %v3254_v56, 1 }
 0x23c   :  { %v3105_v50 = vpop.f32.mrf.mxu2  ;;  %v3147_v60 = vpop.f32.mrf.mxu1 }
 0x23d   :  { %v3106_v42 = vadd.f32 %v3105_v50, %v3092_v39  ;;  %v3132_v4 = vadd.f32 %v3131_v54, %v3118_v62 }
 0x23f   :  { %v3146_v49 = vadd.f32 %v3145_v58, %v3132_v4 }
 0x242   :  { %v3119_v57 = vpop.f32.mrf.mxu3 }
 0x243   :  { %v3120_v3 = vadd.f32 %v3119_v57, %v3106_v42 }
 0x245   :  { %v3134_v7 = vadd.f32 %v3133_v5, %v3120_v3 }
 0x247   :  { %v3148_v9 = vadd.f32 %v3147_v60, %v3134_v7 }
 0x24e   :  { %v3589_v35 = vpop.f32.mrf.mxu0 }
 0x24f   :  { %v3590_v17 = vadd.f32 %v3589_v35, %v3256_v43 }
 0x254   :  { %v3159_v1 = vpop.f32.mrf.mxu2 }
 0x255   :  { %v3160_v8 = vadd.f32 %v3159_v1, %v3146_v49 }
 0x256   :  { %v3591_v30 = vpop.f32.mrf.mxu0 }
 0x257   :  { %v3592_v46 = vadd.f32 %v3591_v30, %v3256_v43 }
 0x25a   :  { %v3173_v6 = vpop.f32.mrf.mxu3 }
 0x25b   :  { %v3174_v11 = vadd.f32 %v3173_v6, %v3160_v8 }
 0x25c   :  { %v3161_v59 = vpop.f32.mrf.mxu2 }
 0x25d   :  { %v3162_v12 = vadd.f32 %v3161_v59, %v3148_v9  ;;  %v3181_v15 = vmax.f32 %v3174_v11, 0.0 }
 0x262   :  { %v3175_v13 = vpop.f32.mrf.mxu3 }
 0x263   :  { %v3176_v14 = vadd.f32 %v3175_v13, %v3162_v12  ;;  %v6228_v12 = vld [vmem:[%s6665_s8] ss:$0 sm:$0xff] }
 0x265   :  { %v3185_v16 = vmax.f32 %v3176_v14, 0.0 }
 0x267   :  { %v3189_v18 = vpack.c.bf16 %v3185_v16, %v3181_v15 }
 0x268   :  { %v3603_v37 = vpop.f32.mrf.mxu1 }
 0x269   :  { %3630 = vmatmul.bf16.vlgmr.msra.gmra.mxu3 %v3189_v18  ;;  %v3604_v47 = vadd.f32 %v3603_v37, %v3590_v17 }
 0x26e   :  { %v3645_v28 = vpop.f32.mrf.mxu0 }
 0x26f   :  { %v3646_v62 = vadd.f32 %v3645_v28, %v3257_v41 }
 0x270   :  { %v3605_v44 = vpop.f32.mrf.mxu1 }
 0x271   :  { %v3606_v32 = vadd.f32 %v3605_v44, %v3592_v46 }
 0x276   :  { %v3647_v27 = vpop.f32.mrf.mxu0 }
 0x277   :  { %v3648_v1 = vadd.f32 %v3647_v27, %v3257_v41 }
 0x278   :  { %v3659_v52 = vpop.f32.mrf.mxu1 }
 0x279   :  { %3686 = vmatmul.bf16.vlgmr.msrb.gmra.mxu3 %v3189_v18  ;;  %v3660_v2 = vadd.f32 %v3659_v52, %v3646_v62 }
 0x280   :  { %v3661_v42 = vpop.f32.mrf.mxu1 }
 0x281   :  { %v3662_v4 = vadd.f32 %v3661_v42, %v3648_v1 }
 0x2ac   :  { %v3617_v38 = vpop.f32.mrf.mxu2 }
 0x2ad   :  { %v3618_v48 = vadd.f32 %v3617_v38, %v3604_v47 }
 0x2b4   :  { %v3619_v10 = vpop.f32.mrf.mxu2 }
 0x2b5   :  { %v3620_v50 = vadd.f32 %v3619_v10, %v3606_v32 }
 0x2bc   :  { %v3673_v55 = vpop.f32.mrf.mxu2 }
 0x2bd   :  { %v3674_v5 = vadd.f32 %v3673_v55, %v3660_v2 }
 0x2c4   :  { %v3675_v3 = vpop.f32.mrf.mxu2 }
 0x2c5   :  { %v3676_v6 = vadd.f32 %v3675_v3, %v3662_v4 }
 0x2ec   :  { %v3631_v53 = vpop.f32.mrf.mxu3 }
 0x2ed   :  { %v3632_v51 = vadd.f32 %v3631_v53, %v3618_v48 }
 0x2ef   :  { %v3692_v57 = vmax.f32 %v3632_v51, 0.0 }
 0x2f4   :  { %v3633_v54 = vpop.f32.mrf.mxu3 }
 0x2f5   :  { %v3634_v45 = vadd.f32 %v3633_v54, %v3620_v50 }
 0x2f7   :  { %v3694_v39 = vmax.f32 %v3634_v45, 0.0 }
 0x2f9   :  { %v3696_v58 = vpack.c.bf16 %v3694_v39, %v3692_v57 }
 0x2fb   :  { %3838 = vmatmul.bf16.vlgmr.msra.gmra.mxu0 %v3696_v58 }
 0x2fc   :  { %v3687_v36 = vpop.f32.mrf.mxu3 }
 0x2fd   :  { %v3688_v7 = vadd.f32 %v3687_v36, %v3674_v5 }
 0x2ff   :  { %v3693_v59 = vmax.f32 %v3688_v7, 0.0 }
 0x304   :  { %v3689_v49 = vpop.f32.mrf.mxu3 }
 0x305   :  { %v3690_v60 = vadd.f32 %v3689_v49, %v3676_v6 }
 0x307   :  { %v3695_v8 = vmax.f32 %v3690_v60, 0.0 }
 0x309   :  { %v3697_v9 = vpack.c.bf16 %v3695_v8, %v3693_v59 }
 0x30b   :  { %3852 = vmatmul.bf16.vlgmr.msra.gmra.mxu1 %v3697_v9 }
 0x378   :  { %v3839_v11 = vpop.f32.mrf.mxu0 }
 0x379   :  { %v3840_v13 = vadd.f32 %v6228_v12, %v3839_v11 }
 0x380   :  { %v3841_v16 = vpop.f32.mrf.mxu0 }
 0x381   :  { %v3842_v18 = vadd.f32 %v6228_v12, %v3841_v16 }
 0x388   :  { %v3853_v14 = vpop.f32.mrf.mxu1 }
 0x389   :  { %v3854_v15 = vadd.f32 %v3853_v14, %v3840_v13 }
 0x38b   :  { %3858 = vst [vmem:[#allocation14] sm:$0xff] %v3854_v15 }
 0x390   :  { %v3855_v19 = vpop.f32.mrf.mxu1 }
 0x391   :  { %v3856_v20 = vadd.f32 %v3855_v19, %v3842_v18 }
 0x393   :  { %3859 = vst [vmem:[#allocation14 + $0x8] sm:$0xff] %v3856_v20 }
 0x394   :  { %3872 = dma.vmem_to_hbm [thread:$0]  %s3865_s27, 256, %s3867_s10, [#allocation4], %s6438_s29, %s6438_s29, %s6439_s30  }
 0x395   :  { %6429 = dma.done.wait [#allocation4], 256  }
 0x396   :  { %6430 = vsyncadd [#allocation4], 4294967040 }
 0x397   :  { %3877 = vsyncpa [#allocation3], 1 }
 0x398   :  { %3878 = vsyncpa [#allocation6], 1 }
 0x399   :  { %3879 = vsyncpa [#allocation9], 1 }
 0x39a   :  { %3880 = vsyncpa [#allocation12], 1 }
 0x39b   :  { %3881 = vsyncpa [#allocation4], 1 }

</bundles_post_ra>
